<compile_context>
chip_gen: v7x
topology: tpu7x:2x2x1
jax: 0.10.0
libtpu: 0.0.40
codegen_flags: <defaults>
</compile_context>

<pallas_src>
import math

import jax
import jax.numpy as jnp
from jax.experimental import pallas as pl
from jax.experimental.pallas import tpu as pltpu


# ----------------------------------------------------------------------------
# Pallas kernel
# ----------------------------------------------------------------------------
def gru_model_kernel(gi0_ref, lengths_ref,
                     whhcat_ref, bhh0n_ref,
                     wih1_ref, bih1_ref, bhh1n_ref,
                     w1_ref, b1_ref, w2_ref, b2_ref,
                     out_ref):
    T, B, G3 = gi0_ref.shape        # gi0: precomputed x@Wih0 + bih0, (T, B, 3G)
    G = G3 // 3                     # padded per-gate lane width (128)

    lengths = lengths_ref[...]      # (B, 1) int32

    # Small biases: broadcast ONCE (JAX does not CSE broadcast_in_dim).
    bhh0n = jnp.broadcast_to(bhh0n_ref[...], (B, G))
    bhh1n = jnp.broadcast_to(bhh1n_ref[...], (B, G))
    bih1 = jnp.broadcast_to(bih1_ref[...], (B, G3))

    def gru_cell(gi, gh, bhhn, h):
        # gi = x@Wih + b_ih (b_hh pre-folded for r,z); gh = h@Whh (no bias).
        # Gate slices are 128-lane aligned -> free vreg views.
        r = jax.nn.sigmoid(gi[:, :G] + gh[:, :G])
        z = jax.nn.sigmoid(gi[:, G:2 * G] + gh[:, G:2 * G])
        n = jnp.tanh(gi[:, 2 * G:] + r * (gh[:, 2 * G:] + bhhn))
        return (1.0 - z) * n + z * h

    # Hidden states carried zero-padded to the full 128-lane gate slot.
    h0 = jnp.zeros((B, G), jnp.float32)
    h1 = jnp.zeros((B, G), jnp.float32)

    # Fully unrolled recurrence (T static & small): 2 fused MXU pushes / step.
    for t in range(T):
        # pack_padded_sequence semantics: freeze h once t >= length[b].
        m_t = jnp.broadcast_to(lengths > t, (B, G))

        # One block-diagonal push yields gh0|gh1 (both use step t-1 states).
        h_cat = jnp.concatenate([h0, h1], axis=-1)               # (B, 2G)
        gh_all = jnp.dot(h_cat, whhcat_ref[...],
                         preferred_element_type=jnp.float32)     # (B, 6G)

        h0_new = gru_cell(gi0_ref[t], gh_all[:, :G3], bhh0n, h0)
        h0 = jnp.where(m_t, h0_new, h0)

        gi1 = jnp.dot(h0, wih1_ref[...],
                      preferred_element_type=jnp.float32) + bih1
        h1_new = gru_cell(gi1, gh_all[:, G3:], bhh1n, h1)
        h1 = jnp.where(m_t, h1_new, h1)

    # last_hidden = hidden[-1]  ->  fc1 -> ReLU -> fc2
    y = jnp.dot(h1, w1_ref[...], preferred_element_type=jnp.float32) + b1_ref[...]
    y = jnp.maximum(y, 0.0)
    # fc2 (H -> 1) as VPU multiply + lane reduction (no degenerate N=1 matmul).
    out_ref[...] = jnp.sum(y * w2_ref[...], axis=-1, keepdims=True) + b2_ref[...]


# ----------------------------------------------------------------------------
# Wrapper
# ----------------------------------------------------------------------------
def gru_model_forward(tokens, params):
    """tokens: (B, T) int32 token ids, 0 = padding (right-padded).
    NOTE: assumes pad id 0 never occurs inside a valid sequence."""
    B, T = tokens.shape

    lengths = jnp.sum(tokens != 0, axis=1).astype(jnp.int32)[:, None]   # (B, 1)

    # Fold embedding lookup + layer-0 input projection into one table gather:
    #   gi0_table[v] = emb[v] @ Wih0 + bih0     (V, 3G)
    gi0_table = jnp.dot(params["embedding"], params["wih0"],
                        preferred_element_type=jnp.float32) + params["bih0"]
    gi0_all = jnp.take(gi0_table, tokens.T, axis=0)                      # (T, B, 3G)

    args = (gi0_all, lengths,
            params["whh_cat"], params["bhh0n"],
            params["wih1"], params["bih1"], params["bhh1n"],
            params["w1"], params["b1"], params["w2"], params["b2"])

    vmem = pl.BlockSpec(memory_space=pltpu.MemorySpace.VMEM)
    return pl.pallas_call(
        gru_model_kernel,
        out_shape=jax.ShapeDtypeStruct((B, 1), jnp.float32),
        in_specs=[vmem] * len(args),
        out_specs=vmem,
    )(*args)


# ----------------------------------------------------------------------------
# Parameters: raw PyTorch-layout params + lane-aligned packed kernel params
# ----------------------------------------------------------------------------
def init_params(key, vocab, input_size, hidden_size, gate_pad=128):
    D, H, G = input_size, hidden_size, gate_pad
    assert H <= G
    keys = jax.random.split(key, 13)
    bound = 1.0 / math.sqrt(H)

    def u(k, shape):
        return jax.random.uniform(k, shape, jnp.float32, -bound, bound)

    emb = 0.1 * jax.random.normal(keys[0], (vocab, D), jnp.float32)

    # Raw PyTorch-layout params: weight_ih (3H,in), weight_hh (3H,H),
    # bias_ih (3H,), bias_hh (3H,), gate order (r, z, n).
    w_ih0 = u(keys[1], (3 * H, D)); w_hh0 = u(keys[2], (3 * H, H))
    b_ih0 = u(keys[3], (3 * H,));   b_hh0 = u(keys[4], (3 * H,))
    w_ih1 = u(keys[5], (3 * H, H)); w_hh1 = u(keys[6], (3 * H, H))
    b_ih1 = u(keys[7], (3 * H,));   b_hh1 = u(keys[8], (3 * H,))
    fc1_w = u(keys[9], (H, H));     fc1_b = u(keys[10], (H,))
    fc2_w = u(keys[11], (1, H));    fc2_b = u(keys[12], (1,))

    raw = dict(embedding=emb,
               w_ih0=w_ih0, w_hh0=w_hh0, b_ih0=b_ih0, b_hh0=b_hh0,
               w_ih1=w_ih1, w_hh1=w_hh1, b_ih1=b_ih1, b_hh1=b_hh1,
               fc1_w=fc1_w, fc1_b=fc1_b, fc2_w=fc2_w, fc2_b=fc2_b)

    # --- packing helpers -----------------------------------------------------
    def lane_pad_gates(w_t):   # (in, 3H) -> (in, 3G); gate g at lanes [gG, gG+H)
        out = jnp.zeros((w_t.shape[0], 3 * G), jnp.float32)
        for g in range(3):
            out = out.at[:, g * G:g * G + H].set(w_t[:, g * H:(g + 1) * H])
        return out

    def lane_pad_vec(v):       # (3H,) -> (1, 3G)
        out = jnp.zeros((3 * G,), jnp.float32)
        for g in range(3):
            out = out.at[g * G:g * G + H].set(v[g * H:(g + 1) * H])
        return out[None, :]

    def row_pad(w, rows):      # zero-pad input (row) dim up to `rows`
        return jnp.zeros((rows, w.shape[1]), jnp.float32).at[:w.shape[0], :].set(w)

    # layer 0 (input dim D); r,z biases pre-summed, n hidden bias kept separate
    wih0_p = lane_pad_gates(w_ih0.T)                                  # (D, 3G)
    bih0_p = lane_pad_vec(jnp.concatenate(
        [b_ih0[:2 * H] + b_hh0[:2 * H], b_ih0[2 * H:]]))              # (1, 3G)
    bhh0n_p = jnp.zeros((1, G), jnp.float32).at[0, :H].set(b_hh0[2 * H:])
    whh0_p = row_pad(lane_pad_gates(w_hh0.T), G)                      # (G, 3G)

    # layer 1 (input dim H, padded to G since h0 is carried padded)
    wih1_p = row_pad(lane_pad_gates(w_ih1.T), G)                      # (G, 3G)
    bih1_p = lane_pad_vec(jnp.concatenate(
        [b_ih1[:2 * H] + b_hh1[:2 * H], b_ih1[2 * H:]]))              # (1, 3G)
    bhh1n_p = jnp.zeros((1, G), jnp.float32).at[0, :H].set(b_hh1[2 * H:])
    whh1_p = row_pad(lane_pad_gates(w_hh1.T), G)                      # (G, 3G)

    # Fused block-diagonal hidden-state weight: [h0|h1] @ Whh_cat -> gh0|gh1
    whh_cat = jnp.zeros((2 * G, 6 * G), jnp.float32)
    whh_cat = whh_cat.at[:G, :3 * G].set(whh0_p)
    whh_cat = whh_cat.at[G:, 3 * G:].set(whh1_p)

    # fc1 / fc2 padded to the lane width (padded lanes compute exact zeros)
    w1_p = jnp.zeros((G, G), jnp.float32).at[:H, :H].set(fc1_w.T)
    b1_p = jnp.zeros((1, G), jnp.float32).at[0, :H].set(fc1_b)
    w2_p = jnp.zeros((1, G), jnp.float32).at[0, :H].set(fc2_w[0])
    b2_p = fc2_b.reshape(1, 1)

    packed = dict(embedding=emb, wih0=wih0_p, bih0=bih0_p,
                  whh_cat=whh_cat, bhh0n=bhh0n_p,
                  wih1=wih1_p, bih1=bih1_p, bhh1n=bhh1n_p,
                  w1=w1_p, b1=b1_p, w2=w2_p, b2=b2_p)
    return packed, raw


# ----------------------------------------------------------------------------
# Pure-JAX reference (PyTorch GRUModel semantics) for correctness checking
# ----------------------------------------------------------------------------
def gru_model_reference(tokens, raw):
    B, T = tokens.shape
    H = raw["w_hh0"].shape[1]
    lengths = jnp.sum(tokens != 0, axis=1)
    emb = raw["embedding"][tokens]                                  # (B, T, D)

    def cell(x, h, w_ih, w_hh, b_ih, b_hh):
        gi = x @ w_ih.T + b_ih
        gh = h @ w_hh.T + b_hh
        i_r, i_z, i_n = jnp.split(gi, 3, axis=-1)
        h_r, h_z, h_n = jnp.split(gh, 3, axis=-1)
        r = jax.nn.sigmoid(i_r + h_r)
        z = jax.nn.sigmoid(i_z + h_z)
        n = jnp.tanh(i_n + r * h_n)
        return (1.0 - z) * n + z * h

    h0 = jnp.zeros((B, H), jnp.float32)
    h1 = jnp.zeros((B, H), jnp.float32)
    for t in range(T):
        m = (lengths > t)[:, None]
        h0n = cell(emb[:, t], h0, raw["w_ih0"], raw["w_hh0"], raw["b_ih0"], raw["b_hh0"])
        h0 = jnp.where(m, h0n, h0)
        h1n = cell(h0, h1, raw["w_ih1"], raw["w_hh1"], raw["b_ih1"], raw["b_hh1"])
        h1 = jnp.where(m, h1n, h1)

    y = jnp.maximum(h1 @ raw["fc1_w"].T + raw["fc1_b"], 0.0)
    return y @ raw["fc2_w"].T + raw["fc2_b"]


# ----------------------------------------------------------------------------
if __name__ == "__main__":
    key = jax.random.PRNGKey(0)
    VOCAB, B, T, INPUT_SIZE, HIDDEN = 50, 8, 8, 32, 32

    pkey, tkey, lkey = jax.random.split(key, 3)
    params, raw = init_params(pkey, VOCAB, INPUT_SIZE, HIDDEN)

    # Right-padded token ids (0 = pad); every sequence has length >= 1
    # (pack_padded_sequence requires positive lengths).
    tokens = jax.random.randint(tkey, (B, T), 1, VOCAB, dtype=jnp.int32)
    lengths = jax.random.randint(lkey, (B,), 1, T + 1, dtype=jnp.int32)
    tokens = jnp.where(jnp.arange(T)[None, :] < lengths[:, None], tokens, 0)

    out = gru_model_forward(tokens, params)
    jax.block_until_ready(out)
    assert out.shape == (B, 1)

    ref = gru_model_reference(tokens, raw)
    assert jnp.allclose(out, ref, atol=2e-3, rtol=2e-3), (out, ref)
    print("KERNEL_OK")
</pallas_src>

<mosaic_0001>
module attributes {stable_mosaic.version = 11 : i64} {
  func.func @gru_model_kernel(%arg0: memref<8x8x384xf32, #tpu.memory_space<vmem>>, %arg1: memref<8x1xi32, #tpu.memory_space<vmem>>, %arg2: memref<256x768xf32, #tpu.memory_space<vmem>>, %arg3: memref<1x128xf32, #tpu.memory_space<vmem>>, %arg4: memref<128x384xf32, #tpu.memory_space<vmem>>, %arg5: memref<1x384xf32, #tpu.memory_space<vmem>>, %arg6: memref<1x128xf32, #tpu.memory_space<vmem>>, %arg7: memref<128x128xf32, #tpu.memory_space<vmem>>, %arg8: memref<1x128xf32, #tpu.memory_space<vmem>>, %arg9: memref<1x128xf32, #tpu.memory_space<vmem>>, %arg10: memref<1x1xf32, #tpu.memory_space<vmem>>, %arg11: memref<8x1xf32, #tpu.memory_space<vmem>>) attributes {dimension_semantics = [], scalar_prefetch = 0 : i64, scratch_operands = 0 : i64, tpu.core_type = #tpu.core_type<tc>} {
    %c0 = arith.constant 0 : index
    %c0_0 = arith.constant 0 : index
    %0 = vector.load %arg1[%c0, %c0_0] : memref<8x1xi32, #tpu.memory_space<vmem>>, vector<8x1xi32>
    %c0_1 = arith.constant 0 : index
    %c0_2 = arith.constant 0 : index
    %1 = vector.load %arg3[%c0_1, %c0_2] : memref<1x128xf32, #tpu.memory_space<vmem>>, vector<1x128xf32>
    %2 = vector.shape_cast %1 : vector<1x128xf32> to vector<1x128xf32>
    %3 = vector.broadcast %2 : vector<1x128xf32> to vector<8x128xf32>
    %c0_3 = arith.constant 0 : index
    %c0_4 = arith.constant 0 : index
    %4 = vector.load %arg6[%c0_3, %c0_4] : memref<1x128xf32, #tpu.memory_space<vmem>>, vector<1x128xf32>
    %5 = vector.shape_cast %4 : vector<1x128xf32> to vector<1x128xf32>
    %6 = vector.broadcast %5 : vector<1x128xf32> to vector<8x128xf32>
    %c0_5 = arith.constant 0 : index
    %c0_6 = arith.constant 0 : index
    %7 = vector.load %arg5[%c0_5, %c0_6] : memref<1x384xf32, #tpu.memory_space<vmem>>, vector<1x384xf32>
    %8 = vector.shape_cast %7 : vector<1x384xf32> to vector<1x384xf32>
    %9 = vector.broadcast %8 : vector<1x384xf32> to vector<8x384xf32>
    %cst = arith.constant 0.000000e+00 : f32
    %10 = vector.broadcast %cst : f32 to vector<8x128xf32>
    %cst_7 = arith.constant 0.000000e+00 : f32
    %11 = vector.broadcast %cst_7 : f32 to vector<8x128xf32>
    %c0_i32 = arith.constant 0 : i32
    %12 = vector.broadcast %c0_i32 : i32 to vector<8x1xi32>
    %13 = arith.cmpi sgt, %0, %12 : vector<8x1xi32>
    %14 = vector.shape_cast %13 : vector<8x1xi1> to vector<8x1xi1>
    %15 = vector.broadcast %14 : vector<8x1xi1> to vector<8x128xi1>
    %16 = tpu.concatenate %10, %11 in 1 : vector<8x128xf32>, vector<8x128xf32> -> vector<8x256xf32>
    %c0_8 = arith.constant 0 : index
    %c0_9 = arith.constant 0 : index
    %17 = vector.load %arg2[%c0_8, %c0_9] : memref<256x768xf32, #tpu.memory_space<vmem>>, vector<256x768xf32>
    %cst_10 = arith.constant dense<0.000000e+00> : vector<8x768xf32>
    %18 = tpu.matmul %16, %17, %cst_10 {dimension_numbers = #tpu.dot_dimension_numbers<[1], [0], [0], [1], [0, 0, 1, 1], [], []>} : vector<8x256xf32>, vector<256x768xf32>, vector<8x768xf32> -> vector<8x768xf32>
    %c0_11 = arith.constant 0 : index
    %c0_12 = arith.constant 0 : index
    %c0_13 = arith.constant 0 : index
    %19 = vector.load %arg0[%c0_11, %c0_12, %c0_13] : memref<8x8x384xf32, #tpu.memory_space<vmem>>, vector<1x8x384xf32>
    %20 = vector.shape_cast %19 : vector<1x8x384xf32> to vector<8x384xf32>
    %21 = vector.extract_strided_slice %18 {offsets = [0, 0], sizes = [8, 384], strides = [1, 1]} : vector<8x768xf32> to vector<8x384xf32>
    %22 = vector.extract_strided_slice %20 {offsets = [0, 0], sizes = [8, 128], strides = [1, 1]} : vector<8x384xf32> to vector<8x128xf32>
    %23 = vector.extract_strided_slice %21 {offsets = [0, 0], sizes = [8, 128], strides = [1, 1]} : vector<8x384xf32> to vector<8x128xf32>
    %24 = arith.addf %22, %23 : vector<8x128xf32>
    %25 = arith.negf %24 : vector<8x128xf32>
    %26 = math.exp %25 : vector<8x128xf32>
    %cst_14 = arith.constant 1.000000e+00 : f32
    %27 = vector.broadcast %cst_14 : f32 to vector<8x128xf32>
    %28 = arith.addf %27, %26 : vector<8x128xf32>
    %29 = arith.divf %27, %28 : vector<8x128xf32>
    %30 = vector.extract_strided_slice %20 {offsets = [0, 128], sizes = [8, 128], strides = [1, 1]} : vector<8x384xf32> to vector<8x128xf32>
    %31 = vector.extract_strided_slice %21 {offsets = [0, 128], sizes = [8, 128], strides = [1, 1]} : vector<8x384xf32> to vector<8x128xf32>
    %32 = arith.addf %30, %31 : vector<8x128xf32>
    %33 = arith.negf %32 : vector<8x128xf32>
    %34 = math.exp %33 : vector<8x128xf32>
    %cst_15 = arith.constant 1.000000e+00 : f32
    %35 = vector.broadcast %cst_15 : f32 to vector<8x128xf32>
    %36 = arith.addf %35, %34 : vector<8x128xf32>
    %37 = arith.divf %35, %36 : vector<8x128xf32>
    %38 = vector.extract_strided_slice %20 {offsets = [0, 256], sizes = [8, 128], strides = [1, 1]} : vector<8x384xf32> to vector<8x128xf32>
    %39 = vector.extract_strided_slice %21 {offsets = [0, 256], sizes = [8, 128], strides = [1, 1]} : vector<8x384xf32> to vector<8x128xf32>
    %40 = arith.addf %39, %3 : vector<8x128xf32>
    %41 = arith.mulf %29, %40 : vector<8x128xf32>
    %42 = arith.addf %38, %41 : vector<8x128xf32>
    %43 = math.tanh %42 : vector<8x128xf32>
    %cst_16 = arith.constant 1.000000e+00 : f32
    %44 = vector.broadcast %cst_16 : f32 to vector<8x128xf32>
    %45 = arith.subf %44, %37 : vector<8x128xf32>
    %46 = arith.mulf %45, %43 : vector<8x128xf32>
    %47 = arith.mulf %37, %10 : vector<8x128xf32>
    %48 = arith.addf %46, %47 : vector<8x128xf32>
    %49 = arith.select %15, %48, %10 : vector<8x128xi1>, vector<8x128xf32>
    %c0_17 = arith.constant 0 : index
    %c0_18 = arith.constant 0 : index
    %50 = vector.load %arg4[%c0_17, %c0_18] : memref<128x384xf32, #tpu.memory_space<vmem>>, vector<128x384xf32>
    %cst_19 = arith.constant dense<0.000000e+00> : vector<8x384xf32>
    %51 = tpu.matmul %49, %50, %cst_19 {dimension_numbers = #tpu.dot_dimension_numbers<[1], [0], [0], [1], [0, 0, 1, 1], [], []>} : vector<8x128xf32>, vector<128x384xf32>, vector<8x384xf32> -> vector<8x384xf32>
    %52 = arith.addf %51, %9 : vector<8x384xf32>
    %53 = vector.extract_strided_slice %18 {offsets = [0, 384], sizes = [8, 384], strides = [1, 1]} : vector<8x768xf32> to vector<8x384xf32>
    %54 = vector.extract_strided_slice %52 {offsets = [0, 0], sizes = [8, 128], strides = [1, 1]} : vector<8x384xf32> to vector<8x128xf32>
    %55 = vector.extract_strided_slice %53 {offsets = [0, 0], sizes = [8, 128], strides = [1, 1]} : vector<8x384xf32> to vector<8x128xf32>
    %56 = arith.addf %54, %55 : vector<8x128xf32>
    %57 = arith.negf %56 : vector<8x128xf32>
    %58 = math.exp %57 : vector<8x128xf32>
    %cst_20 = arith.constant 1.000000e+00 : f32
    %59 = vector.broadcast %cst_20 : f32 to vector<8x128xf32>
    %60 = arith.addf %59, %58 : vector<8x128xf32>
    %61 = arith.divf %59, %60 : vector<8x128xf32>
    %62 = vector.extract_strided_slice %52 {offsets = [0, 128], sizes = [8, 128], strides = [1, 1]} : vector<8x384xf32> to vector<8x128xf32>
    %63 = vector.extract_strided_slice %53 {offsets = [0, 128], sizes = [8, 128], strides = [1, 1]} : vector<8x384xf32> to vector<8x128xf32>
    %64 = arith.addf %62, %63 : vector<8x128xf32>
    %65 = arith.negf %64 : vector<8x128xf32>
    %66 = math.exp %65 : vector<8x128xf32>
    %cst_21 = arith.constant 1.000000e+00 : f32
    %67 = vector.broadcast %cst_21 : f32 to vector<8x128xf32>
    %68 = arith.addf %67, %66 : vector<8x128xf32>
    %69 = arith.divf %67, %68 : vector<8x128xf32>
    %70 = vector.extract_strided_slice %52 {offsets = [0, 256], sizes = [8, 128], strides = [1, 1]} : vector<8x384xf32> to vector<8x128xf32>
    %71 = vector.extract_strided_slice %53 {offsets = [0, 256], sizes = [8, 128], strides = [1, 1]} : vector<8x384xf32> to vector<8x128xf32>
    %72 = arith.addf %71, %6 : vector<8x128xf32>
    %73 = arith.mulf %61, %72 : vector<8x128xf32>
    %74 = arith.addf %70, %73 : vector<8x128xf32>
    %75 = math.tanh %74 : vector<8x128xf32>
    %cst_22 = arith.constant 1.000000e+00 : f32
    %76 = vector.broadcast %cst_22 : f32 to vector<8x128xf32>
    %77 = arith.subf %76, %69 : vector<8x128xf32>
    %78 = arith.mulf %77, %75 : vector<8x128xf32>
    %79 = arith.mulf %69, %11 : vector<8x128xf32>
    %80 = arith.addf %78, %79 : vector<8x128xf32>
    %81 = arith.select %15, %80, %11 : vector<8x128xi1>, vector<8x128xf32>
    %c1_i32 = arith.constant 1 : i32
    %82 = vector.broadcast %c1_i32 : i32 to vector<8x1xi32>
    %83 = arith.cmpi sgt, %0, %82 : vector<8x1xi32>
    %84 = vector.shape_cast %83 : vector<8x1xi1> to vector<8x1xi1>
    %85 = vector.broadcast %84 : vector<8x1xi1> to vector<8x128xi1>
    %86 = tpu.concatenate %49, %81 in 1 : vector<8x128xf32>, vector<8x128xf32> -> vector<8x256xf32>
    %c0_23 = arith.constant 0 : index
    %c0_24 = arith.constant 0 : index
    %87 = vector.load %arg2[%c0_23, %c0_24] : memref<256x768xf32, #tpu.memory_space<vmem>>, vector<256x768xf32>
    %cst_25 = arith.constant dense<0.000000e+00> : vector<8x768xf32>
    %88 = tpu.matmul %86, %87, %cst_25 {dimension_numbers = #tpu.dot_dimension_numbers<[1], [0], [0], [1], [0, 0, 1, 1], [], []>} : vector<8x256xf32>, vector<256x768xf32>, vector<8x768xf32> -> vector<8x768xf32>
    %c1 = arith.constant 1 : index
    %c0_26 = arith.constant 0 : index
    %c0_27 = arith.constant 0 : index
    %89 = vector.load %arg0[%c1, %c0_26, %c0_27] : memref<8x8x384xf32, #tpu.memory_space<vmem>>, vector<1x8x384xf32>
    %90 = vector.shape_cast %89 : vector<1x8x384xf32> to vector<8x384xf32>
    %91 = vector.extract_strided_slice %88 {offsets = [0, 0], sizes = [8, 384], strides = [1, 1]} : vector<8x768xf32> to vector<8x384xf32>
    %92 = vector.extract_strided_slice %90 {offsets = [0, 0], sizes = [8, 128], strides = [1, 1]} : vector<8x384xf32> to vector<8x128xf32>
    %93 = vector.extract_strided_slice %91 {offsets = [0, 0], sizes = [8, 128], strides = [1, 1]} : vector<8x384xf32> to vector<8x128xf32>
    %94 = arith.addf %92, %93 : vector<8x128xf32>
    %95 = arith.negf %94 : vector<8x128xf32>
    %96 = math.exp %95 : vector<8x128xf32>
    %cst_28 = arith.constant 1.000000e+00 : f32
    %97 = vector.broadcast %cst_28 : f32 to vector<8x128xf32>
    %98 = arith.addf %97, %96 : vector<8x128xf32>
    %99 = arith.divf %97, %98 : vector<8x128xf32>
    %100 = vector.extract_strided_slice %90 {offsets = [0, 128], sizes = [8, 128], strides = [1, 1]} : vector<8x384xf32> to vector<8x128xf32>
    %101 = vector.extract_strided_slice %91 {offsets = [0, 128], sizes = [8, 128], strides = [1, 1]} : vector<8x384xf32> to vector<8x128xf32>
    %102 = arith.addf %100, %101 : vector<8x128xf32>
    %103 = arith.negf %102 : vector<8x128xf32>
    %104 = math.exp %103 : vector<8x128xf32>
    %cst_29 = arith.constant 1.000000e+00 : f32
    %105 = vector.broadcast %cst_29 : f32 to vector<8x128xf32>
    %106 = arith.addf %105, %104 : vector<8x128xf32>
    %107 = arith.divf %105, %106 : vector<8x128xf32>
    %108 = vector.extract_strided_slice %90 {offsets = [0, 256], sizes = [8, 128], strides = [1, 1]} : vector<8x384xf32> to vector<8x128xf32>
    %109 = vector.extract_strided_slice %91 {offsets = [0, 256], sizes = [8, 128], strides = [1, 1]} : vector<8x384xf32> to vector<8x128xf32>
    %110 = arith.addf %109, %3 : vector<8x128xf32>
    %111 = arith.mulf %99, %110 : vector<8x128xf32>
    %112 = arith.addf %108, %111 : vector<8x128xf32>
    %113 = math.tanh %112 : vector<8x128xf32>
    %cst_30 = arith.constant 1.000000e+00 : f32
    %114 = vector.broadcast %cst_30 : f32 to vector<8x128xf32>
    %115 = arith.subf %114, %107 : vector<8x128xf32>
    %116 = arith.mulf %115, %113 : vector<8x128xf32>
    %117 = arith.mulf %107, %49 : vector<8x128xf32>
    %118 = arith.addf %116, %117 : vector<8x128xf32>
    %119 = arith.select %85, %118, %49 : vector<8x128xi1>, vector<8x128xf32>
    %c0_31 = arith.constant 0 : index
    %c0_32 = arith.constant 0 : index
    %120 = vector.load %arg4[%c0_31, %c0_32] : memref<128x384xf32, #tpu.memory_space<vmem>>, vector<128x384xf32>
    %cst_33 = arith.constant dense<0.000000e+00> : vector<8x384xf32>
    %121 = tpu.matmul %119, %120, %cst_33 {dimension_numbers = #tpu.dot_dimension_numbers<[1], [0], [0], [1], [0, 0, 1, 1], [], []>} : vector<8x128xf32>, vector<128x384xf32>, vector<8x384xf32> -> vector<8x384xf32>
    %122 = arith.addf %121, %9 : vector<8x384xf32>
    %123 = vector.extract_strided_slice %88 {offsets = [0, 384], sizes = [8, 384], strides = [1, 1]} : vector<8x768xf32> to vector<8x384xf32>
    %124 = vector.extract_strided_slice %122 {offsets = [0, 0], sizes = [8, 128], strides = [1, 1]} : vector<8x384xf32> to vector<8x128xf32>
    %125 = vector.extract_strided_slice %123 {offsets = [0, 0], sizes = [8, 128], strides = [1, 1]} : vector<8x384xf32> to vector<8x128xf32>
    %126 = arith.addf %124, %125 : vector<8x128xf32>
    %127 = arith.negf %126 : vector<8x128xf32>
    %128 = math.exp %127 : vector<8x128xf32>
    %cst_34 = arith.constant 1.000000e+00 : f32
    %129 = vector.broadcast %cst_34 : f32 to vector<8x128xf32>
    %130 = arith.addf %129, %128 : vector<8x128xf32>
    %131 = arith.divf %129, %130 : vector<8x128xf32>
    %132 = vector.extract_strided_slice %122 {offsets = [0, 128], sizes = [8, 128], strides = [1, 1]} : vector<8x384xf32> to vector<8x128xf32>
    %133 = vector.extract_strided_slice %123 {offsets = [0, 128], sizes = [8, 128], strides = [1, 1]} : vector<8x384xf32> to vector<8x128xf32>
    %134 = arith.addf %132, %133 : vector<8x128xf32>
    %135 = arith.negf %134 : vector<8x128xf32>
    %136 = math.exp %135 : vector<8x128xf32>
    %cst_35 = arith.constant 1.000000e+00 : f32
    %137 = vector.broadcast %cst_35 : f32 to vector<8x128xf32>
    %138 = arith.addf %137, %136 : vector<8x128xf32>
    %139 = arith.divf %137, %138 : vector<8x128xf32>
    %140 = vector.extract_strided_slice %122 {offsets = [0, 256], sizes = [8, 128], strides = [1, 1]} : vector<8x384xf32> to vector<8x128xf32>
    %141 = vector.extract_strided_slice %123 {offsets = [0, 256], sizes = [8, 128], strides = [1, 1]} : vector<8x384xf32> to vector<8x128xf32>
    %142 = arith.addf %141, %6 : vector<8x128xf32>
    %143 = arith.mulf %131, %142 : vector<8x128xf32>
    %144 = arith.addf %140, %143 : vector<8x128xf32>
    %145 = math.tanh %144 : vector<8x128xf32>
    %cst_36 = arith.constant 1.000000e+00 : f32
    %146 = vector.broadcast %cst_36 : f32 to vector<8x128xf32>
    %147 = arith.subf %146, %139 : vector<8x128xf32>
    %148 = arith.mulf %147, %145 : vector<8x128xf32>
    %149 = arith.mulf %139, %81 : vector<8x128xf32>
    %150 = arith.addf %148, %149 : vector<8x128xf32>
    %151 = arith.select %85, %150, %81 : vector<8x128xi1>, vector<8x128xf32>
    %c2_i32 = arith.constant 2 : i32
    %152 = vector.broadcast %c2_i32 : i32 to vector<8x1xi32>
    %153 = arith.cmpi sgt, %0, %152 : vector<8x1xi32>
    %154 = vector.shape_cast %153 : vector<8x1xi1> to vector<8x1xi1>
    %155 = vector.broadcast %154 : vector<8x1xi1> to vector<8x128xi1>
    %156 = tpu.concatenate %119, %151 in 1 : vector<8x128xf32>, vector<8x128xf32> -> vector<8x256xf32>
    %c0_37 = arith.constant 0 : index
    %c0_38 = arith.constant 0 : index
    %157 = vector.load %arg2[%c0_37, %c0_38] : memref<256x768xf32, #tpu.memory_space<vmem>>, vector<256x768xf32>
    %cst_39 = arith.constant dense<0.000000e+00> : vector<8x768xf32>
    %158 = tpu.matmul %156, %157, %cst_39 {dimension_numbers = #tpu.dot_dimension_numbers<[1], [0], [0], [1], [0, 0, 1, 1], [], []>} : vector<8x256xf32>, vector<256x768xf32>, vector<8x768xf32> -> vector<8x768xf32>
    %c2 = arith.constant 2 : index
    %c0_40 = arith.constant 0 : index
    %c0_41 = arith.constant 0 : index
    %159 = vector.load %arg0[%c2, %c0_40, %c0_41] : memref<8x8x384xf32, #tpu.memory_space<vmem>>, vector<1x8x384xf32>
    %160 = vector.shape_cast %159 : vector<1x8x384xf32> to vector<8x384xf32>
    %161 = vector.extract_strided_slice %158 {offsets = [0, 0], sizes = [8, 384], strides = [1, 1]} : vector<8x768xf32> to vector<8x384xf32>
    %162 = vector.extract_strided_slice %160 {offsets = [0, 0], sizes = [8, 128], strides = [1, 1]} : vector<8x384xf32> to vector<8x128xf32>
    %163 = vector.extract_strided_slice %161 {offsets = [0, 0], sizes = [8, 128], strides = [1, 1]} : vector<8x384xf32> to vector<8x128xf32>
    %164 = arith.addf %162, %163 : vector<8x128xf32>
    %165 = arith.negf %164 : vector<8x128xf32>
    %166 = math.exp %165 : vector<8x128xf32>
    %cst_42 = arith.constant 1.000000e+00 : f32
    %167 = vector.broadcast %cst_42 : f32 to vector<8x128xf32>
    %168 = arith.addf %167, %166 : vector<8x128xf32>
    %169 = arith.divf %167, %168 : vector<8x128xf32>
    %170 = vector.extract_strided_slice %160 {offsets = [0, 128], sizes = [8, 128], strides = [1, 1]} : vector<8x384xf32> to vector<8x128xf32>
    %171 = vector.extract_strided_slice %161 {offsets = [0, 128], sizes = [8, 128], strides = [1, 1]} : vector<8x384xf32> to vector<8x128xf32>
    %172 = arith.addf %170, %171 : vector<8x128xf32>
    %173 = arith.negf %172 : vector<8x128xf32>
    %174 = math.exp %173 : vector<8x128xf32>
    %cst_43 = arith.constant 1.000000e+00 : f32
    %175 = vector.broadcast %cst_43 : f32 to vector<8x128xf32>
    %176 = arith.addf %175, %174 : vector<8x128xf32>
    %177 = arith.divf %175, %176 : vector<8x128xf32>
    %178 = vector.extract_strided_slice %160 {offsets = [0, 256], sizes = [8, 128], strides = [1, 1]} : vector<8x384xf32> to vector<8x128xf32>
    %179 = vector.extract_strided_slice %161 {offsets = [0, 256], sizes = [8, 128], strides = [1, 1]} : vector<8x384xf32> to vector<8x128xf32>
    %180 = arith.addf %179, %3 : vector<8x128xf32>
    %181 = arith.mulf %169, %180 : vector<8x128xf32>
    %182 = arith.addf %178, %181 : vector<8x128xf32>
    %183 = math.tanh %182 : vector<8x128xf32>
    %cst_44 = arith.constant 1.000000e+00 : f32
    %184 = vector.broadcast %cst_44 : f32 to vector<8x128xf32>
    %185 = arith.subf %184, %177 : vector<8x128xf32>
    %186 = arith.mulf %185, %183 : vector<8x128xf32>
    %187 = arith.mulf %177, %119 : vector<8x128xf32>
    %188 = arith.addf %186, %187 : vector<8x128xf32>
    %189 = arith.select %155, %188, %119 : vector<8x128xi1>, vector<8x128xf32>
    %c0_45 = arith.constant 0 : index
    %c0_46 = arith.constant 0 : index
    %190 = vector.load %arg4[%c0_45, %c0_46] : memref<128x384xf32, #tpu.memory_space<vmem>>, vector<128x384xf32>
    %cst_47 = arith.constant dense<0.000000e+00> : vector<8x384xf32>
    %191 = tpu.matmul %189, %190, %cst_47 {dimension_numbers = #tpu.dot_dimension_numbers<[1], [0], [0], [1], [0, 0, 1, 1], [], []>} : vector<8x128xf32>, vector<128x384xf32>, vector<8x384xf32> -> vector<8x384xf32>
    %192 = arith.addf %191, %9 : vector<8x384xf32>
    %193 = vector.extract_strided_slice %158 {offsets = [0, 384], sizes = [8, 384], strides = [1, 1]} : vector<8x768xf32> to vector<8x384xf32>
    %194 = vector.extract_strided_slice %192 {offsets = [0, 0], sizes = [8, 128], strides = [1, 1]} : vector<8x384xf32> to vector<8x128xf32>
    %195 = vector.extract_strided_slice %193 {offsets = [0, 0], sizes = [8, 128], strides = [1, 1]} : vector<8x384xf32> to vector<8x128xf32>
    %196 = arith.addf %194, %195 : vector<8x128xf32>
    %197 = arith.negf %196 : vector<8x128xf32>
    %198 = math.exp %197 : vector<8x128xf32>
    %cst_48 = arith.constant 1.000000e+00 : f32
    %199 = vector.broadcast %cst_48 : f32 to vector<8x128xf32>
    %200 = arith.addf %199, %198 : vector<8x128xf32>
    %201 = arith.divf %199, %200 : vector<8x128xf32>
    %202 = vector.extract_strided_slice %192 {offsets = [0, 128], sizes = [8, 128], strides = [1, 1]} : vector<8x384xf32> to vector<8x128xf32>
    %203 = vector.extract_strided_slice %193 {offsets = [0, 128], sizes = [8, 128], strides = [1, 1]} : vector<8x384xf32> to vector<8x128xf32>
    %204 = arith.addf %202, %203 : vector<8x128xf32>
    %205 = arith.negf %204 : vector<8x128xf32>
    %206 = math.exp %205 : vector<8x128xf32>
    %cst_49 = arith.constant 1.000000e+00 : f32
    %207 = vector.broadcast %cst_49 : f32 to vector<8x128xf32>
    %208 = arith.addf %207, %206 : vector<8x128xf32>
    %209 = arith.divf %207, %208 : vector<8x128xf32>
    %210 = vector.extract_strided_slice %192 {offsets = [0, 256], sizes = [8, 128], strides = [1, 1]} : vector<8x384xf32> to vector<8x128xf32>
    %211 = vector.extract_strided_slice %193 {offsets = [0, 256], sizes = [8, 128], strides = [1, 1]} : vector<8x384xf32> to vector<8x128xf32>
    %212 = arith.addf %211, %6 : vector<8x128xf32>
    %213 = arith.mulf %201, %212 : vector<8x128xf32>
    %214 = arith.addf %210, %213 : vector<8x128xf32>
    %215 = math.tanh %214 : vector<8x128xf32>
    %cst_50 = arith.constant 1.000000e+00 : f32
    %216 = vector.broadcast %cst_50 : f32 to vector<8x128xf32>
    %217 = arith.subf %216, %209 : vector<8x128xf32>
    %218 = arith.mulf %217, %215 : vector<8x128xf32>
    %219 = arith.mulf %209, %151 : vector<8x128xf32>
    %220 = arith.addf %218, %219 : vector<8x128xf32>
    %221 = arith.select %155, %220, %151 : vector<8x128xi1>, vector<8x128xf32>
    %c3_i32 = arith.constant 3 : i32
    %222 = vector.broadcast %c3_i32 : i32 to vector<8x1xi32>
    %223 = arith.cmpi sgt, %0, %222 : vector<8x1xi32>
    %224 = vector.shape_cast %223 : vector<8x1xi1> to vector<8x1xi1>
    %225 = vector.broadcast %224 : vector<8x1xi1> to vector<8x128xi1>
    %226 = tpu.concatenate %189, %221 in 1 : vector<8x128xf32>, vector<8x128xf32> -> vector<8x256xf32>
    %c0_51 = arith.constant 0 : index
    %c0_52 = arith.constant 0 : index
    %227 = vector.load %arg2[%c0_51, %c0_52] : memref<256x768xf32, #tpu.memory_space<vmem>>, vector<256x768xf32>
    %cst_53 = arith.constant dense<0.000000e+00> : vector<8x768xf32>
    %228 = tpu.matmul %226, %227, %cst_53 {dimension_numbers = #tpu.dot_dimension_numbers<[1], [0], [0], [1], [0, 0, 1, 1], [], []>} : vector<8x256xf32>, vector<256x768xf32>, vector<8x768xf32> -> vector<8x768xf32>
    %c3 = arith.constant 3 : index
    %c0_54 = arith.constant 0 : index
    %c0_55 = arith.constant 0 : index
    %229 = vector.load %arg0[%c3, %c0_54, %c0_55] : memref<8x8x384xf32, #tpu.memory_space<vmem>>, vector<1x8x384xf32>
    %230 = vector.shape_cast %229 : vector<1x8x384xf32> to vector<8x384xf32>
    %231 = vector.extract_strided_slice %228 {offsets = [0, 0], sizes = [8, 384], strides = [1, 1]} : vector<8x768xf32> to vector<8x384xf32>
    %232 = vector.extract_strided_slice %230 {offsets = [0, 0], sizes = [8, 128], strides = [1, 1]} : vector<8x384xf32> to vector<8x128xf32>
    %233 = vector.extract_strided_slice %231 {offsets = [0, 0], sizes = [8, 128], strides = [1, 1]} : vector<8x384xf32> to vector<8x128xf32>
    %234 = arith.addf %232, %233 : vector<8x128xf32>
    %235 = arith.negf %234 : vector<8x128xf32>
    %236 = math.exp %235 : vector<8x128xf32>
    %cst_56 = arith.constant 1.000000e+00 : f32
    %237 = vector.broadcast %cst_56 : f32 to vector<8x128xf32>
    %238 = arith.addf %237, %236 : vector<8x128xf32>
    %239 = arith.divf %237, %238 : vector<8x128xf32>
    %240 = vector.extract_strided_slice %230 {offsets = [0, 128], sizes = [8, 128], strides = [1, 1]} : vector<8x384xf32> to vector<8x128xf32>
    %241 = vector.extract_strided_slice %231 {offsets = [0, 128], sizes = [8, 128], strides = [1, 1]} : vector<8x384xf32> to vector<8x128xf32>
    %242 = arith.addf %240, %241 : vector<8x128xf32>
    %243 = arith.negf %242 : vector<8x128xf32>
    %244 = math.exp %243 : vector<8x128xf32>
    %cst_57 = arith.constant 1.000000e+00 : f32
    %245 = vector.broadcast %cst_57 : f32 to vector<8x128xf32>
    %246 = arith.addf %245, %244 : vector<8x128xf32>
    %247 = arith.divf %245, %246 : vector<8x128xf32>
    %248 = vector.extract_strided_slice %230 {offsets = [0, 256], sizes = [8, 128], strides = [1, 1]} : vector<8x384xf32> to vector<8x128xf32>
    %249 = vector.extract_strided_slice %231 {offsets = [0, 256], sizes = [8, 128], strides = [1, 1]} : vector<8x384xf32> to vector<8x128xf32>
    %250 = arith.addf %249, %3 : vector<8x128xf32>
    %251 = arith.mulf %239, %250 : vector<8x128xf32>
    %252 = arith.addf %248, %251 : vector<8x128xf32>
    %253 = math.tanh %252 : vector<8x128xf32>
    %cst_58 = arith.constant 1.000000e+00 : f32
    %254 = vector.broadcast %cst_58 : f32 to vector<8x128xf32>
    %255 = arith.subf %254, %247 : vector<8x128xf32>
    %256 = arith.mulf %255, %253 : vector<8x128xf32>
    %257 = arith.mulf %247, %189 : vector<8x128xf32>
    %258 = arith.addf %256, %257 : vector<8x128xf32>
    %259 = arith.select %225, %258, %189 : vector<8x128xi1>, vector<8x128xf32>
    %c0_59 = arith.constant 0 : index
    %c0_60 = arith.constant 0 : index
    %260 = vector.load %arg4[%c0_59, %c0_60] : memref<128x384xf32, #tpu.memory_space<vmem>>, vector<128x384xf32>
    %cst_61 = arith.constant dense<0.000000e+00> : vector<8x384xf32>
    %261 = tpu.matmul %259, %260, %cst_61 {dimension_numbers = #tpu.dot_dimension_numbers<[1], [0], [0], [1], [0, 0, 1, 1], [], []>} : vector<8x128xf32>, vector<128x384xf32>, vector<8x384xf32> -> vector<8x384xf32>
    %262 = arith.addf %261, %9 : vector<8x384xf32>
    %263 = vector.extract_strided_slice %228 {offsets = [0, 384], sizes = [8, 384], strides = [1, 1]} : vector<8x768xf32> to vector<8x384xf32>
    %264 = vector.extract_strided_slice %262 {offsets = [0, 0], sizes = [8, 128], strides = [1, 1]} : vector<8x384xf32> to vector<8x128xf32>
    %265 = vector.extract_strided_slice %263 {offsets = [0, 0], sizes = [8, 128], strides = [1, 1]} : vector<8x384xf32> to vector<8x128xf32>
    %266 = arith.addf %264, %265 : vector<8x128xf32>
    %267 = arith.negf %266 : vector<8x128xf32>
    %268 = math.exp %267 : vector<8x128xf32>
    %cst_62 = arith.constant 1.000000e+00 : f32
    %269 = vector.broadcast %cst_62 : f32 to vector<8x128xf32>
    %270 = arith.addf %269, %268 : vector<8x128xf32>
    %271 = arith.divf %269, %270 : vector<8x128xf32>
    %272 = vector.extract_strided_slice %262 {offsets = [0, 128], sizes = [8, 128], strides = [1, 1]} : vector<8x384xf32> to vector<8x128xf32>
    %273 = vector.extract_strided_slice %263 {offsets = [0, 128], sizes = [8, 128], strides = [1, 1]} : vector<8x384xf32> to vector<8x128xf32>
    %274 = arith.addf %272, %273 : vector<8x128xf32>
    %275 = arith.negf %274 : vector<8x128xf32>
    %276 = math.exp %275 : vector<8x128xf32>
    %cst_63 = arith.constant 1.000000e+00 : f32
    %277 = vector.broadcast %cst_63 : f32 to vector<8x128xf32>
    %278 = arith.addf %277, %276 : vector<8x128xf32>
    %279 = arith.divf %277, %278 : vector<8x128xf32>
    %280 = vector.extract_strided_slice %262 {offsets = [0, 256], sizes = [8, 128], strides = [1, 1]} : vector<8x384xf32> to vector<8x128xf32>
    %281 = vector.extract_strided_slice %263 {offsets = [0, 256], sizes = [8, 128], strides = [1, 1]} : vector<8x384xf32> to vector<8x128xf32>
    %282 = arith.addf %281, %6 : vector<8x128xf32>
    %283 = arith.mulf %271, %282 : vector<8x128xf32>
    %284 = arith.addf %280, %283 : vector<8x128xf32>
    %285 = math.tanh %284 : vector<8x128xf32>
    %cst_64 = arith.constant 1.000000e+00 : f32
    %286 = vector.broadcast %cst_64 : f32 to vector<8x128xf32>
    %287 = arith.subf %286, %279 : vector<8x128xf32>
    %288 = arith.mulf %287, %285 : vector<8x128xf32>
    %289 = arith.mulf %279, %221 : vector<8x128xf32>
    %290 = arith.addf %288, %289 : vector<8x128xf32>
    %291 = arith.select %225, %290, %221 : vector<8x128xi1>, vector<8x128xf32>
    %c4_i32 = arith.constant 4 : i32
    %292 = vector.broadcast %c4_i32 : i32 to vector<8x1xi32>
    %293 = arith.cmpi sgt, %0, %292 : vector<8x1xi32>
    %294 = vector.shape_cast %293 : vector<8x1xi1> to vector<8x1xi1>
    %295 = vector.broadcast %294 : vector<8x1xi1> to vector<8x128xi1>
    %296 = tpu.concatenate %259, %291 in 1 : vector<8x128xf32>, vector<8x128xf32> -> vector<8x256xf32>
    %c0_65 = arith.constant 0 : index
    %c0_66 = arith.constant 0 : index
    %297 = vector.load %arg2[%c0_65, %c0_66] : memref<256x768xf32, #tpu.memory_space<vmem>>, vector<256x768xf32>
    %cst_67 = arith.constant dense<0.000000e+00> : vector<8x768xf32>
    %298 = tpu.matmul %296, %297, %cst_67 {dimension_numbers = #tpu.dot_dimension_numbers<[1], [0], [0], [1], [0, 0, 1, 1], [], []>} : vector<8x256xf32>, vector<256x768xf32>, vector<8x768xf32> -> vector<8x768xf32>
    %c4 = arith.constant 4 : index
    %c0_68 = arith.constant 0 : index
    %c0_69 = arith.constant 0 : index
    %299 = vector.load %arg0[%c4, %c0_68, %c0_69] : memref<8x8x384xf32, #tpu.memory_space<vmem>>, vector<1x8x384xf32>
    %300 = vector.shape_cast %299 : vector<1x8x384xf32> to vector<8x384xf32>
    %301 = vector.extract_strided_slice %298 {offsets = [0, 0], sizes = [8, 384], strides = [1, 1]} : vector<8x768xf32> to vector<8x384xf32>
    %302 = vector.extract_strided_slice %300 {offsets = [0, 0], sizes = [8, 128], strides = [1, 1]} : vector<8x384xf32> to vector<8x128xf32>
    %303 = vector.extract_strided_slice %301 {offsets = [0, 0], sizes = [8, 128], strides = [1, 1]} : vector<8x384xf32> to vector<8x128xf32>
    %304 = arith.addf %302, %303 : vector<8x128xf32>
    %305 = arith.negf %304 : vector<8x128xf32>
    %306 = math.exp %305 : vector<8x128xf32>
    %cst_70 = arith.constant 1.000000e+00 : f32
    %307 = vector.broadcast %cst_70 : f32 to vector<8x128xf32>
    %308 = arith.addf %307, %306 : vector<8x128xf32>
    %309 = arith.divf %307, %308 : vector<8x128xf32>
    %310 = vector.extract_strided_slice %300 {offsets = [0, 128], sizes = [8, 128], strides = [1, 1]} : vector<8x384xf32> to vector<8x128xf32>
    %311 = vector.extract_strided_slice %301 {offsets = [0, 128], sizes = [8, 128], strides = [1, 1]} : vector<8x384xf32> to vector<8x128xf32>
    %312 = arith.addf %310, %311 : vector<8x128xf32>
    %313 = arith.negf %312 : vector<8x128xf32>
    %314 = math.exp %313 : vector<8x128xf32>
    %cst_71 = arith.constant 1.000000e+00 : f32
    %315 = vector.broadcast %cst_71 : f32 to vector<8x128xf32>
    %316 = arith.addf %315, %314 : vector<8x128xf32>
    %317 = arith.divf %315, %316 : vector<8x128xf32>
    %318 = vector.extract_strided_slice %300 {offsets = [0, 256], sizes = [8, 128], strides = [1, 1]} : vector<8x384xf32> to vector<8x128xf32>
    %319 = vector.extract_strided_slice %301 {offsets = [0, 256], sizes = [8, 128], strides = [1, 1]} : vector<8x384xf32> to vector<8x128xf32>
    %320 = arith.addf %319, %3 : vector<8x128xf32>
    %321 = arith.mulf %309, %320 : vector<8x128xf32>
    %322 = arith.addf %318, %321 : vector<8x128xf32>
    %323 = math.tanh %322 : vector<8x128xf32>
    %cst_72 = arith.constant 1.000000e+00 : f32
    %324 = vector.broadcast %cst_72 : f32 to vector<8x128xf32>
    %325 = arith.subf %324, %317 : vector<8x128xf32>
    %326 = arith.mulf %325, %323 : vector<8x128xf32>
    %327 = arith.mulf %317, %259 : vector<8x128xf32>
    %328 = arith.addf %326, %327 : vector<8x128xf32>
    %329 = arith.select %295, %328, %259 : vector<8x128xi1>, vector<8x128xf32>
    %c0_73 = arith.constant 0 : index
    %c0_74 = arith.constant 0 : index
    %330 = vector.load %arg4[%c0_73, %c0_74] : memref<128x384xf32, #tpu.memory_space<vmem>>, vector<128x384xf32>
    %cst_75 = arith.constant dense<0.000000e+00> : vector<8x384xf32>
    %331 = tpu.matmul %329, %330, %cst_75 {dimension_numbers = #tpu.dot_dimension_numbers<[1], [0], [0], [1], [0, 0, 1, 1], [], []>} : vector<8x128xf32>, vector<128x384xf32>, vector<8x384xf32> -> vector<8x384xf32>
    %332 = arith.addf %331, %9 : vector<8x384xf32>
    %333 = vector.extract_strided_slice %298 {offsets = [0, 384], sizes = [8, 384], strides = [1, 1]} : vector<8x768xf32> to vector<8x384xf32>
    %334 = vector.extract_strided_slice %332 {offsets = [0, 0], sizes = [8, 128], strides = [1, 1]} : vector<8x384xf32> to vector<8x128xf32>
    %335 = vector.extract_strided_slice %333 {offsets = [0, 0], sizes = [8, 128], strides = [1, 1]} : vector<8x384xf32> to vector<8x128xf32>
    %336 = arith.addf %334, %335 : vector<8x128xf32>
    %337 = arith.negf %336 : vector<8x128xf32>
    %338 = math.exp %337 : vector<8x128xf32>
    %cst_76 = arith.constant 1.000000e+00 : f32
    %339 = vector.broadcast %cst_76 : f32 to vector<8x128xf32>
    %340 = arith.addf %339, %338 : vector<8x128xf32>
    %341 = arith.divf %339, %340 : vector<8x128xf32>
    %342 = vector.extract_strided_slice %332 {offsets = [0, 128], sizes = [8, 128], strides = [1, 1]} : vector<8x384xf32> to vector<8x128xf32>
    %343 = vector.extract_strided_slice %333 {offsets = [0, 128], sizes = [8, 128], strides = [1, 1]} : vector<8x384xf32> to vector<8x128xf32>
    %344 = arith.addf %342, %343 : vector<8x128xf32>
    %345 = arith.negf %344 : vector<8x128xf32>
    %346 = math.exp %345 : vector<8x128xf32>
    %cst_77 = arith.constant 1.000000e+00 : f32
    %347 = vector.broadcast %cst_77 : f32 to vector<8x128xf32>
    %348 = arith.addf %347, %346 : vector<8x128xf32>
    %349 = arith.divf %347, %348 : vector<8x128xf32>
    %350 = vector.extract_strided_slice %332 {offsets = [0, 256], sizes = [8, 128], strides = [1, 1]} : vector<8x384xf32> to vector<8x128xf32>
    %351 = vector.extract_strided_slice %333 {offsets = [0, 256], sizes = [8, 128], strides = [1, 1]} : vector<8x384xf32> to vector<8x128xf32>
    %352 = arith.addf %351, %6 : vector<8x128xf32>
    %353 = arith.mulf %341, %352 : vector<8x128xf32>
    %354 = arith.addf %350, %353 : vector<8x128xf32>
    %355 = math.tanh %354 : vector<8x128xf32>
    %cst_78 = arith.constant 1.000000e+00 : f32
    %356 = vector.broadcast %cst_78 : f32 to vector<8x128xf32>
    %357 = arith.subf %356, %349 : vector<8x128xf32>
    %358 = arith.mulf %357, %355 : vector<8x128xf32>
    %359 = arith.mulf %349, %291 : vector<8x128xf32>
    %360 = arith.addf %358, %359 : vector<8x128xf32>
    %361 = arith.select %295, %360, %291 : vector<8x128xi1>, vector<8x128xf32>
    %c5_i32 = arith.constant 5 : i32
    %362 = vector.broadcast %c5_i32 : i32 to vector<8x1xi32>
    %363 = arith.cmpi sgt, %0, %362 : vector<8x1xi32>
    %364 = vector.shape_cast %363 : vector<8x1xi1> to vector<8x1xi1>
    %365 = vector.broadcast %364 : vector<8x1xi1> to vector<8x128xi1>
    %366 = tpu.concatenate %329, %361 in 1 : vector<8x128xf32>, vector<8x128xf32> -> vector<8x256xf32>
    %c0_79 = arith.constant 0 : index
    %c0_80 = arith.constant 0 : index
    %367 = vector.load %arg2[%c0_79, %c0_80] : memref<256x768xf32, #tpu.memory_space<vmem>>, vector<256x768xf32>
    %cst_81 = arith.constant dense<0.000000e+00> : vector<8x768xf32>
    %368 = tpu.matmul %366, %367, %cst_81 {dimension_numbers = #tpu.dot_dimension_numbers<[1], [0], [0], [1], [0, 0, 1, 1], [], []>} : vector<8x256xf32>, vector<256x768xf32>, vector<8x768xf32> -> vector<8x768xf32>
    %c5 = arith.constant 5 : index
    %c0_82 = arith.constant 0 : index
    %c0_83 = arith.constant 0 : index
    %369 = vector.load %arg0[%c5, %c0_82, %c0_83] : memref<8x8x384xf32, #tpu.memory_space<vmem>>, vector<1x8x384xf32>
    %370 = vector.shape_cast %369 : vector<1x8x384xf32> to vector<8x384xf32>
    %371 = vector.extract_strided_slice %368 {offsets = [0, 0], sizes = [8, 384], strides = [1, 1]} : vector<8x768xf32> to vector<8x384xf32>
    %372 = vector.extract_strided_slice %370 {offsets = [0, 0], sizes = [8, 128], strides = [1, 1]} : vector<8x384xf32> to vector<8x128xf32>
    %373 = vector.extract_strided_slice %371 {offsets = [0, 0], sizes = [8, 128], strides = [1, 1]} : vector<8x384xf32> to vector<8x128xf32>
    %374 = arith.addf %372, %373 : vector<8x128xf32>
    %375 = arith.negf %374 : vector<8x128xf32>
    %376 = math.exp %375 : vector<8x128xf32>
    %cst_84 = arith.constant 1.000000e+00 : f32
    %377 = vector.broadcast %cst_84 : f32 to vector<8x128xf32>
    %378 = arith.addf %377, %376 : vector<8x128xf32>
    %379 = arith.divf %377, %378 : vector<8x128xf32>
    %380 = vector.extract_strided_slice %370 {offsets = [0, 128], sizes = [8, 128], strides = [1, 1]} : vector<8x384xf32> to vector<8x128xf32>
    %381 = vector.extract_strided_slice %371 {offsets = [0, 128], sizes = [8, 128], strides = [1, 1]} : vector<8x384xf32> to vector<8x128xf32>
    %382 = arith.addf %380, %381 : vector<8x128xf32>
    %383 = arith.negf %382 : vector<8x128xf32>
    %384 = math.exp %383 : vector<8x128xf32>
    %cst_85 = arith.constant 1.000000e+00 : f32
    %385 = vector.broadcast %cst_85 : f32 to vector<8x128xf32>
    %386 = arith.addf %385, %384 : vector<8x128xf32>
    %387 = arith.divf %385, %386 : vector<8x128xf32>
    %388 = vector.extract_strided_slice %370 {offsets = [0, 256], sizes = [8, 128], strides = [1, 1]} : vector<8x384xf32> to vector<8x128xf32>
    %389 = vector.extract_strided_slice %371 {offsets = [0, 256], sizes = [8, 128], strides = [1, 1]} : vector<8x384xf32> to vector<8x128xf32>
    %390 = arith.addf %389, %3 : vector<8x128xf32>
    %391 = arith.mulf %379, %390 : vector<8x128xf32>
    %392 = arith.addf %388, %391 : vector<8x128xf32>
    %393 = math.tanh %392 : vector<8x128xf32>
    %cst_86 = arith.constant 1.000000e+00 : f32
    %394 = vector.broadcast %cst_86 : f32 to vector<8x128xf32>
    %395 = arith.subf %394, %387 : vector<8x128xf32>
    %396 = arith.mulf %395, %393 : vector<8x128xf32>
    %397 = arith.mulf %387, %329 : vector<8x128xf32>
    %398 = arith.addf %396, %397 : vector<8x128xf32>
    %399 = arith.select %365, %398, %329 : vector<8x128xi1>, vector<8x128xf32>
    %c0_87 = arith.constant 0 : index
    %c0_88 = arith.constant 0 : index
    %400 = vector.load %arg4[%c0_87, %c0_88] : memref<128x384xf32, #tpu.memory_space<vmem>>, vector<128x384xf32>
    %cst_89 = arith.constant dense<0.000000e+00> : vector<8x384xf32>
    %401 = tpu.matmul %399, %400, %cst_89 {dimension_numbers = #tpu.dot_dimension_numbers<[1], [0], [0], [1], [0, 0, 1, 1], [], []>} : vector<8x128xf32>, vector<128x384xf32>, vector<8x384xf32> -> vector<8x384xf32>
    %402 = arith.addf %401, %9 : vector<8x384xf32>
    %403 = vector.extract_strided_slice %368 {offsets = [0, 384], sizes = [8, 384], strides = [1, 1]} : vector<8x768xf32> to vector<8x384xf32>
    %404 = vector.extract_strided_slice %402 {offsets = [0, 0], sizes = [8, 128], strides = [1, 1]} : vector<8x384xf32> to vector<8x128xf32>
    %405 = vector.extract_strided_slice %403 {offsets = [0, 0], sizes = [8, 128], strides = [1, 1]} : vector<8x384xf32> to vector<8x128xf32>
    %406 = arith.addf %404, %405 : vector<8x128xf32>
    %407 = arith.negf %406 : vector<8x128xf32>
    %408 = math.exp %407 : vector<8x128xf32>
    %cst_90 = arith.constant 1.000000e+00 : f32
    %409 = vector.broadcast %cst_90 : f32 to vector<8x128xf32>
    %410 = arith.addf %409, %408 : vector<8x128xf32>
    %411 = arith.divf %409, %410 : vector<8x128xf32>
    %412 = vector.extract_strided_slice %402 {offsets = [0, 128], sizes = [8, 128], strides = [1, 1]} : vector<8x384xf32> to vector<8x128xf32>
    %413 = vector.extract_strided_slice %403 {offsets = [0, 128], sizes = [8, 128], strides = [1, 1]} : vector<8x384xf32> to vector<8x128xf32>
    %414 = arith.addf %412, %413 : vector<8x128xf32>
    %415 = arith.negf %414 : vector<8x128xf32>
    %416 = math.exp %415 : vector<8x128xf32>
    %cst_91 = arith.constant 1.000000e+00 : f32
    %417 = vector.broadcast %cst_91 : f32 to vector<8x128xf32>
    %418 = arith.addf %417, %416 : vector<8x128xf32>
    %419 = arith.divf %417, %418 : vector<8x128xf32>
    %420 = vector.extract_strided_slice %402 {offsets = [0, 256], sizes = [8, 128], strides = [1, 1]} : vector<8x384xf32> to vector<8x128xf32>
    %421 = vector.extract_strided_slice %403 {offsets = [0, 256], sizes = [8, 128], strides = [1, 1]} : vector<8x384xf32> to vector<8x128xf32>
    %422 = arith.addf %421, %6 : vector<8x128xf32>
    %423 = arith.mulf %411, %422 : vector<8x128xf32>
    %424 = arith.addf %420, %423 : vector<8x128xf32>
    %425 = math.tanh %424 : vector<8x128xf32>
    %cst_92 = arith.constant 1.000000e+00 : f32
    %426 = vector.broadcast %cst_92 : f32 to vector<8x128xf32>
    %427 = arith.subf %426, %419 : vector<8x128xf32>
    %428 = arith.mulf %427, %425 : vector<8x128xf32>
    %429 = arith.mulf %419, %361 : vector<8x128xf32>
    %430 = arith.addf %428, %429 : vector<8x128xf32>
    %431 = arith.select %365, %430, %361 : vector<8x128xi1>, vector<8x128xf32>
    %c6_i32 = arith.constant 6 : i32
    %432 = vector.broadcast %c6_i32 : i32 to vector<8x1xi32>
    %433 = arith.cmpi sgt, %0, %432 : vector<8x1xi32>
    %434 = vector.shape_cast %433 : vector<8x1xi1> to vector<8x1xi1>
    %435 = vector.broadcast %434 : vector<8x1xi1> to vector<8x128xi1>
    %436 = tpu.concatenate %399, %431 in 1 : vector<8x128xf32>, vector<8x128xf32> -> vector<8x256xf32>
    %c0_93 = arith.constant 0 : index
    %c0_94 = arith.constant 0 : index
    %437 = vector.load %arg2[%c0_93, %c0_94] : memref<256x768xf32, #tpu.memory_space<vmem>>, vector<256x768xf32>
    %cst_95 = arith.constant dense<0.000000e+00> : vector<8x768xf32>
    %438 = tpu.matmul %436, %437, %cst_95 {dimension_numbers = #tpu.dot_dimension_numbers<[1], [0], [0], [1], [0, 0, 1, 1], [], []>} : vector<8x256xf32>, vector<256x768xf32>, vector<8x768xf32> -> vector<8x768xf32>
    %c6 = arith.constant 6 : index
    %c0_96 = arith.constant 0 : index
    %c0_97 = arith.constant 0 : index
    %439 = vector.load %arg0[%c6, %c0_96, %c0_97] : memref<8x8x384xf32, #tpu.memory_space<vmem>>, vector<1x8x384xf32>
    %440 = vector.shape_cast %439 : vector<1x8x384xf32> to vector<8x384xf32>
    %441 = vector.extract_strided_slice %438 {offsets = [0, 0], sizes = [8, 384], strides = [1, 1]} : vector<8x768xf32> to vector<8x384xf32>
    %442 = vector.extract_strided_slice %440 {offsets = [0, 0], sizes = [8, 128], strides = [1, 1]} : vector<8x384xf32> to vector<8x128xf32>
    %443 = vector.extract_strided_slice %441 {offsets = [0, 0], sizes = [8, 128], strides = [1, 1]} : vector<8x384xf32> to vector<8x128xf32>
    %444 = arith.addf %442, %443 : vector<8x128xf32>
    %445 = arith.negf %444 : vector<8x128xf32>
    %446 = math.exp %445 : vector<8x128xf32>
    %cst_98 = arith.constant 1.000000e+00 : f32
    %447 = vector.broadcast %cst_98 : f32 to vector<8x128xf32>
    %448 = arith.addf %447, %446 : vector<8x128xf32>
    %449 = arith.divf %447, %448 : vector<8x128xf32>
    %450 = vector.extract_strided_slice %440 {offsets = [0, 128], sizes = [8, 128], strides = [1, 1]} : vector<8x384xf32> to vector<8x128xf32>
    %451 = vector.extract_strided_slice %441 {offsets = [0, 128], sizes = [8, 128], strides = [1, 1]} : vector<8x384xf32> to vector<8x128xf32>
    %452 = arith.addf %450, %451 : vector<8x128xf32>
    %453 = arith.negf %452 : vector<8x128xf32>
    %454 = math.exp %453 : vector<8x128xf32>
    %cst_99 = arith.constant 1.000000e+00 : f32
    %455 = vector.broadcast %cst_99 : f32 to vector<8x128xf32>
    %456 = arith.addf %455, %454 : vector<8x128xf32>
    %457 = arith.divf %455, %456 : vector<8x128xf32>
    %458 = vector.extract_strided_slice %440 {offsets = [0, 256], sizes = [8, 128], strides = [1, 1]} : vector<8x384xf32> to vector<8x128xf32>
    %459 = vector.extract_strided_slice %441 {offsets = [0, 256], sizes = [8, 128], strides = [1, 1]} : vector<8x384xf32> to vector<8x128xf32>
    %460 = arith.addf %459, %3 : vector<8x128xf32>
    %461 = arith.mulf %449, %460 : vector<8x128xf32>
    %462 = arith.addf %458, %461 : vector<8x128xf32>
    %463 = math.tanh %462 : vector<8x128xf32>
    %cst_100 = arith.constant 1.000000e+00 : f32
    %464 = vector.broadcast %cst_100 : f32 to vector<8x128xf32>
    %465 = arith.subf %464, %457 : vector<8x128xf32>
    %466 = arith.mulf %465, %463 : vector<8x128xf32>
    %467 = arith.mulf %457, %399 : vector<8x128xf32>
    %468 = arith.addf %466, %467 : vector<8x128xf32>
    %469 = arith.select %435, %468, %399 : vector<8x128xi1>, vector<8x128xf32>
    %c0_101 = arith.constant 0 : index
    %c0_102 = arith.constant 0 : index
    %470 = vector.load %arg4[%c0_101, %c0_102] : memref<128x384xf32, #tpu.memory_space<vmem>>, vector<128x384xf32>
    %cst_103 = arith.constant dense<0.000000e+00> : vector<8x384xf32>
    %471 = tpu.matmul %469, %470, %cst_103 {dimension_numbers = #tpu.dot_dimension_numbers<[1], [0], [0], [1], [0, 0, 1, 1], [], []>} : vector<8x128xf32>, vector<128x384xf32>, vector<8x384xf32> -> vector<8x384xf32>
    %472 = arith.addf %471, %9 : vector<8x384xf32>
    %473 = vector.extract_strided_slice %438 {offsets = [0, 384], sizes = [8, 384], strides = [1, 1]} : vector<8x768xf32> to vector<8x384xf32>
    %474 = vector.extract_strided_slice %472 {offsets = [0, 0], sizes = [8, 128], strides = [1, 1]} : vector<8x384xf32> to vector<8x128xf32>
    %475 = vector.extract_strided_slice %473 {offsets = [0, 0], sizes = [8, 128], strides = [1, 1]} : vector<8x384xf32> to vector<8x128xf32>
    %476 = arith.addf %474, %475 : vector<8x128xf32>
    %477 = arith.negf %476 : vector<8x128xf32>
    %478 = math.exp %477 : vector<8x128xf32>
    %cst_104 = arith.constant 1.000000e+00 : f32
    %479 = vector.broadcast %cst_104 : f32 to vector<8x128xf32>
    %480 = arith.addf %479, %478 : vector<8x128xf32>
    %481 = arith.divf %479, %480 : vector<8x128xf32>
    %482 = vector.extract_strided_slice %472 {offsets = [0, 128], sizes = [8, 128], strides = [1, 1]} : vector<8x384xf32> to vector<8x128xf32>
    %483 = vector.extract_strided_slice %473 {offsets = [0, 128], sizes = [8, 128], strides = [1, 1]} : vector<8x384xf32> to vector<8x128xf32>
    %484 = arith.addf %482, %483 : vector<8x128xf32>
    %485 = arith.negf %484 : vector<8x128xf32>
    %486 = math.exp %485 : vector<8x128xf32>
    %cst_105 = arith.constant 1.000000e+00 : f32
    %487 = vector.broadcast %cst_105 : f32 to vector<8x128xf32>
    %488 = arith.addf %487, %486 : vector<8x128xf32>
    %489 = arith.divf %487, %488 : vector<8x128xf32>
    %490 = vector.extract_strided_slice %472 {offsets = [0, 256], sizes = [8, 128], strides = [1, 1]} : vector<8x384xf32> to vector<8x128xf32>
    %491 = vector.extract_strided_slice %473 {offsets = [0, 256], sizes = [8, 128], strides = [1, 1]} : vector<8x384xf32> to vector<8x128xf32>
    %492 = arith.addf %491, %6 : vector<8x128xf32>
    %493 = arith.mulf %481, %492 : vector<8x128xf32>
    %494 = arith.addf %490, %493 : vector<8x128xf32>
    %495 = math.tanh %494 : vector<8x128xf32>
    %cst_106 = arith.constant 1.000000e+00 : f32
    %496 = vector.broadcast %cst_106 : f32 to vector<8x128xf32>
    %497 = arith.subf %496, %489 : vector<8x128xf32>
    %498 = arith.mulf %497, %495 : vector<8x128xf32>
    %499 = arith.mulf %489, %431 : vector<8x128xf32>
    %500 = arith.addf %498, %499 : vector<8x128xf32>
    %501 = arith.select %435, %500, %431 : vector<8x128xi1>, vector<8x128xf32>
    %c7_i32 = arith.constant 7 : i32
    %502 = vector.broadcast %c7_i32 : i32 to vector<8x1xi32>
    %503 = arith.cmpi sgt, %0, %502 : vector<8x1xi32>
    %504 = vector.shape_cast %503 : vector<8x1xi1> to vector<8x1xi1>
    %505 = vector.broadcast %504 : vector<8x1xi1> to vector<8x128xi1>
    %506 = tpu.concatenate %469, %501 in 1 : vector<8x128xf32>, vector<8x128xf32> -> vector<8x256xf32>
    %c0_107 = arith.constant 0 : index
    %c0_108 = arith.constant 0 : index
    %507 = vector.load %arg2[%c0_107, %c0_108] : memref<256x768xf32, #tpu.memory_space<vmem>>, vector<256x768xf32>
    %cst_109 = arith.constant dense<0.000000e+00> : vector<8x768xf32>
    %508 = tpu.matmul %506, %507, %cst_109 {dimension_numbers = #tpu.dot_dimension_numbers<[1], [0], [0], [1], [0, 0, 1, 1], [], []>} : vector<8x256xf32>, vector<256x768xf32>, vector<8x768xf32> -> vector<8x768xf32>
    %c7 = arith.constant 7 : index
    %c0_110 = arith.constant 0 : index
    %c0_111 = arith.constant 0 : index
    %509 = vector.load %arg0[%c7, %c0_110, %c0_111] : memref<8x8x384xf32, #tpu.memory_space<vmem>>, vector<1x8x384xf32>
    %510 = vector.shape_cast %509 : vector<1x8x384xf32> to vector<8x384xf32>
    %511 = vector.extract_strided_slice %508 {offsets = [0, 0], sizes = [8, 384], strides = [1, 1]} : vector<8x768xf32> to vector<8x384xf32>
    %512 = vector.extract_strided_slice %510 {offsets = [0, 0], sizes = [8, 128], strides = [1, 1]} : vector<8x384xf32> to vector<8x128xf32>
    %513 = vector.extract_strided_slice %511 {offsets = [0, 0], sizes = [8, 128], strides = [1, 1]} : vector<8x384xf32> to vector<8x128xf32>
    %514 = arith.addf %512, %513 : vector<8x128xf32>
    %515 = arith.negf %514 : vector<8x128xf32>
    %516 = math.exp %515 : vector<8x128xf32>
    %cst_112 = arith.constant 1.000000e+00 : f32
    %517 = vector.broadcast %cst_112 : f32 to vector<8x128xf32>
    %518 = arith.addf %517, %516 : vector<8x128xf32>
    %519 = arith.divf %517, %518 : vector<8x128xf32>
    %520 = vector.extract_strided_slice %510 {offsets = [0, 128], sizes = [8, 128], strides = [1, 1]} : vector<8x384xf32> to vector<8x128xf32>
    %521 = vector.extract_strided_slice %511 {offsets = [0, 128], sizes = [8, 128], strides = [1, 1]} : vector<8x384xf32> to vector<8x128xf32>
    %522 = arith.addf %520, %521 : vector<8x128xf32>
    %523 = arith.negf %522 : vector<8x128xf32>
    %524 = math.exp %523 : vector<8x128xf32>
    %cst_113 = arith.constant 1.000000e+00 : f32
    %525 = vector.broadcast %cst_113 : f32 to vector<8x128xf32>
    %526 = arith.addf %525, %524 : vector<8x128xf32>
    %527 = arith.divf %525, %526 : vector<8x128xf32>
    %528 = vector.extract_strided_slice %510 {offsets = [0, 256], sizes = [8, 128], strides = [1, 1]} : vector<8x384xf32> to vector<8x128xf32>
    %529 = vector.extract_strided_slice %511 {offsets = [0, 256], sizes = [8, 128], strides = [1, 1]} : vector<8x384xf32> to vector<8x128xf32>
    %530 = arith.addf %529, %3 : vector<8x128xf32>
    %531 = arith.mulf %519, %530 : vector<8x128xf32>
    %532 = arith.addf %528, %531 : vector<8x128xf32>
    %533 = math.tanh %532 : vector<8x128xf32>
    %cst_114 = arith.constant 1.000000e+00 : f32
    %534 = vector.broadcast %cst_114 : f32 to vector<8x128xf32>
    %535 = arith.subf %534, %527 : vector<8x128xf32>
    %536 = arith.mulf %535, %533 : vector<8x128xf32>
    %537 = arith.mulf %527, %469 : vector<8x128xf32>
    %538 = arith.addf %536, %537 : vector<8x128xf32>
    %539 = arith.select %505, %538, %469 : vector<8x128xi1>, vector<8x128xf32>
    %c0_115 = arith.constant 0 : index
    %c0_116 = arith.constant 0 : index
    %540 = vector.load %arg4[%c0_115, %c0_116] : memref<128x384xf32, #tpu.memory_space<vmem>>, vector<128x384xf32>
    %cst_117 = arith.constant dense<0.000000e+00> : vector<8x384xf32>
    %541 = tpu.matmul %539, %540, %cst_117 {dimension_numbers = #tpu.dot_dimension_numbers<[1], [0], [0], [1], [0, 0, 1, 1], [], []>} : vector<8x128xf32>, vector<128x384xf32>, vector<8x384xf32> -> vector<8x384xf32>
    %542 = arith.addf %541, %9 : vector<8x384xf32>
    %543 = vector.extract_strided_slice %508 {offsets = [0, 384], sizes = [8, 384], strides = [1, 1]} : vector<8x768xf32> to vector<8x384xf32>
    %544 = vector.extract_strided_slice %542 {offsets = [0, 0], sizes = [8, 128], strides = [1, 1]} : vector<8x384xf32> to vector<8x128xf32>
    %545 = vector.extract_strided_slice %543 {offsets = [0, 0], sizes = [8, 128], strides = [1, 1]} : vector<8x384xf32> to vector<8x128xf32>
    %546 = arith.addf %544, %545 : vector<8x128xf32>
    %547 = arith.negf %546 : vector<8x128xf32>
    %548 = math.exp %547 : vector<8x128xf32>
    %cst_118 = arith.constant 1.000000e+00 : f32
    %549 = vector.broadcast %cst_118 : f32 to vector<8x128xf32>
    %550 = arith.addf %549, %548 : vector<8x128xf32>
    %551 = arith.divf %549, %550 : vector<8x128xf32>
    %552 = vector.extract_strided_slice %542 {offsets = [0, 128], sizes = [8, 128], strides = [1, 1]} : vector<8x384xf32> to vector<8x128xf32>
    %553 = vector.extract_strided_slice %543 {offsets = [0, 128], sizes = [8, 128], strides = [1, 1]} : vector<8x384xf32> to vector<8x128xf32>
    %554 = arith.addf %552, %553 : vector<8x128xf32>
    %555 = arith.negf %554 : vector<8x128xf32>
    %556 = math.exp %555 : vector<8x128xf32>
    %cst_119 = arith.constant 1.000000e+00 : f32
    %557 = vector.broadcast %cst_119 : f32 to vector<8x128xf32>
    %558 = arith.addf %557, %556 : vector<8x128xf32>
    %559 = arith.divf %557, %558 : vector<8x128xf32>
    %560 = vector.extract_strided_slice %542 {offsets = [0, 256], sizes = [8, 128], strides = [1, 1]} : vector<8x384xf32> to vector<8x128xf32>
    %561 = vector.extract_strided_slice %543 {offsets = [0, 256], sizes = [8, 128], strides = [1, 1]} : vector<8x384xf32> to vector<8x128xf32>
    %562 = arith.addf %561, %6 : vector<8x128xf32>
    %563 = arith.mulf %551, %562 : vector<8x128xf32>
    %564 = arith.addf %560, %563 : vector<8x128xf32>
    %565 = math.tanh %564 : vector<8x128xf32>
    %cst_120 = arith.constant 1.000000e+00 : f32
    %566 = vector.broadcast %cst_120 : f32 to vector<8x128xf32>
    %567 = arith.subf %566, %559 : vector<8x128xf32>
    %568 = arith.mulf %567, %565 : vector<8x128xf32>
    %569 = arith.mulf %559, %501 : vector<8x128xf32>
    %570 = arith.addf %568, %569 : vector<8x128xf32>
    %571 = arith.select %505, %570, %501 : vector<8x128xi1>, vector<8x128xf32>
    %c0_121 = arith.constant 0 : index
    %c0_122 = arith.constant 0 : index
    %572 = vector.load %arg7[%c0_121, %c0_122] : memref<128x128xf32, #tpu.memory_space<vmem>>, vector<128x128xf32>
    %cst_123 = arith.constant dense<0.000000e+00> : vector<8x128xf32>
    %573 = tpu.matmul %571, %572, %cst_123 {dimension_numbers = #tpu.dot_dimension_numbers<[1], [0], [0], [1], [0, 0, 1, 1], [], []>} : vector<8x128xf32>, vector<128x128xf32>, vector<8x128xf32> -> vector<8x128xf32>
    %c0_124 = arith.constant 0 : index
    %c0_125 = arith.constant 0 : index
    %574 = vector.load %arg8[%c0_124, %c0_125] : memref<1x128xf32, #tpu.memory_space<vmem>>, vector<1x128xf32>
    %575 = vector.broadcast %574 : vector<1x128xf32> to vector<8x128xf32>
    %576 = arith.addf %573, %575 : vector<8x128xf32>
    %cst_126 = arith.constant 0.000000e+00 : f32
    %577 = vector.broadcast %cst_126 : f32 to vector<8x128xf32>
    %578 = arith.maximumf %576, %577 : vector<8x128xf32>
    %c0_127 = arith.constant 0 : index
    %c0_128 = arith.constant 0 : index
    %579 = vector.load %arg9[%c0_127, %c0_128] : memref<1x128xf32, #tpu.memory_space<vmem>>, vector<1x128xf32>
    %580 = vector.broadcast %579 : vector<1x128xf32> to vector<8x128xf32>
    %581 = arith.mulf %578, %580 : vector<8x128xf32>
    %cst_129 = arith.constant dense<0.000000e+00> : vector<8xf32>
    %582 = vector.multi_reduction <add>, %581, %cst_129 [1] : vector<8x128xf32> to vector<8xf32>
    %583 = vector.shape_cast %582 : vector<8xf32> to vector<8x1xf32>
    %c0_130 = arith.constant 0 : index
    %c0_131 = arith.constant 0 : index
    %584 = vector.load %arg10[%c0_130, %c0_131] : memref<1x1xf32, #tpu.memory_space<vmem>>, vector<1x1xf32>
    %585 = vector.broadcast %584 : vector<1x1xf32> to vector<8x1xf32>
    %586 = arith.addf %583, %585 : vector<8x1xf32>
    %c0_132 = arith.constant 0 : index
    %c0_133 = arith.constant 0 : index
    %587 = vector.load %arg11[%c0_132, %c0_133] : memref<8x1xf32, #tpu.memory_space<vmem>>, vector<8x1xf32>
    tpu.vector_store %arg11[%c0_132, %c0_133], %586 {strides = array<i32>} : memref<8x1xf32, #tpu.memory_space<vmem>>, vector<8x1xf32>,
    return
  }
}

</mosaic_0001>

<bundles_post_ra>
// kernel: tpu_custom_call.1
= control target key start
LH: loop header
LB: loop body
LE: loop exit
PB: predicated region body
PF: predicated region fallthrough
CT: control target
= control target key end

     0   :  { %s8315_s0 = inlined_call_operand.hbm [shape: f32[8,8,384], index: 0, kind: input, shape index: {}]   ;;  %s8316_s1 = inlined_call_operand.vmem [shape: s32[8,1], index: 1, kind: input, shape index: {}]   ;;  %s8317_s2 = inlined_call_operand.hbm [shape: f32[256,768], index: 2, kind: input, shape index: {}]   ;;  %s8318_s3 = inlined_call_operand.vmem [shape: f32[1,128], index: 3, kind: input, shape index: {}]   ;;  %s8319_s4 = inlined_call_operand.hbm [shape: f32[128,384], index: 4, kind: input, shape index: {}]   ;;  %s8320_s5 = inlined_call_operand.vmem [shape: f32[1,384], index: 5, kind: input, shape index: {}]   ;;  %s8321_s6 = inlined_call_operand.vmem [shape: f32[1,128], index: 6, kind: input, shape index: {}]   ;;  %s8322_s7 = inlined_call_operand.hbm [shape: f32[128,128], index: 7, kind: input, shape index: {}]   ;;  %s8323_s8 = inlined_call_operand.vmem [shape: f32[1,128], index: 8, kind: input, shape index: {}]   ;;  %s8324_s9 = inlined_call_operand.vmem [shape: f32[1,128], index: 9, kind: input, shape index: {}]   ;;  %s8325_s10 = inlined_call_operand.<no memory space> [shape: f32[1,1], index: 10, kind: input, shape index: {}]   ;;  %s8326_s11 = inlined_call_operand.vmem [shape: f32[8,1], index: 11, kind: output, shape index: {}]  }
   0x1   :  { %v16_v0 = vstv %s8325_s10 }
   0x2   :  { %17 = vst [vmem:[#allocation2] sm:$0x1] %v16_v0 }
   0x3   :  { %18 = vsyncpa [#allocation4], 0 }
   0x4   :  { %19 = vsyncpa [#allocation6], 0 }
   0x5   :  { %20 = vsyncpa [#allocation9], 0  ;;  %s6563_s19 = smov [#allocation5]   ;;  %s6469_s23 = scalar_lea.hbm %s8317_s2, 24576 }
   0x6   :  { %s40_s20 = sshll.u32 %s6563_s19, 4  ;;  %p6470_p0 = scmp.ne.s32.totalorder %s8317_s2, %s6469_s23  ;;  %s41_s20 = int_to_ptr.vmem [resolvable:$true] %s40_s20 }
   0x7   :  { %p6473_p1 = scmp.lt.u32.totalorder %s6469_s23, %s8317_s2 }
   0x9   :  { %p6475_p2 = pnand %p6473_p1, %p6470_p0 }
   0xb   :  { %6478 = shalt.err (!%p6475_p2)
}
   0xc   :  { %s6479_s10 = scalar_lea.vmem %s41_s20, 24576  ;;  %p6484_p4 = scmp.lt.s32.totalorder %s41_s20, %s41_s20 }
   0xd   :  { %p6480_p3 = scmp.ne.s32.totalorder %s41_s20, %s6479_s10  ;;  %p6485_p5 = scmp.lt.s32.totalorder %s6479_s10, %s6479_s10 }
   0xf   :  { %p6486_p6 = por %p6485_p5, %p6484_p4 }
  0x11   :  { %p6487_p7 = pnand %p6486_p6, %p6480_p3 }
  0x13   :  { %6490 = shalt.err (!%p6487_p7)
}
  0x14   :  { %s6564_s28 = smov 768   ;;  %s6565_s29 = smov 48  }
  0x15   :  { %46 = dma.hbm_to_vmem [thread:$0]  %s8317_s2, 24576, %s41_s20, [#allocation6], %s6564_s28, %s6564_s28, %s6565_s29  }
  0x16   :  { %s6566_s13 = smov [#allocation3]   ;;  %s6491_s17 = scalar_lea.hbm %s8315_s0, 3072 }
  0x17   :  { %s26_s14 = sshll.u32 %s6566_s13, 4  ;;  %p6492_p8 = scmp.ne.s32.totalorder %s8315_s0, %s6491_s17  ;;  %s27_s14 = int_to_ptr.vmem [resolvable:$true] %s26_s14 }
  0x18   :  { %p6495_p9 = scmp.lt.u32.totalorder %s6491_s17, %s8315_s0 }
  0x1a   :  { %p6497_p10 = pnand %p6495_p9, %p6492_p8 }
  0x1c   :  { %6500 = shalt.err (!%p6497_p10)
}
  0x1d   :  { %s6501_s23 = scalar_lea.vmem %s27_s14, 3072  ;;  %p6506_p12 = scmp.lt.s32.totalorder %s27_s14, %s27_s14 }
  0x1e   :  { %p6502_p11 = scmp.ne.s32.totalorder %s27_s14, %s6501_s23  ;;  %p6507_p13 = scmp.lt.s32.totalorder %s6501_s23, %s6501_s23 }
  0x20   :  { %p6508_p0 = por %p6507_p13, %p6506_p12 }
  0x22   :  { %p6509_p1 = pnand %p6508_p0, %p6502_p11 }
  0x24   :  { %6512 = shalt.err (!%p6509_p1)
}
  0x25   :  { %s6567_s2 = smov 384   ;;  %s6568_s20 = smov 24  }
  0x26   :  { %32 = dma.hbm_to_vmem [thread:$0]  %s8315_s0, 3072, %s27_s14, [#allocation4], %s6567_s2, %s6567_s2, %s6568_s20  }
  0x27   :  { %s6569_s26 = smov [#allocation7]   ;;  %s6570_s10 = smov [#allocation8]  }
  0x28   :  { %s54_s27 = sshll.u32 %s6569_s26, 4  ;;  %s70_s28 = sshll.u32 %s6570_s10, 4  ;;  %s55_s27 = int_to_ptr.vmem [resolvable:$true] %s54_s27  ;;  %s6664_s28 = int_to_ptr.vmem [resolvable:$true] %s70_s28 }
  0x29   :  { %s6513_s12 = scalar_lea.hbm %s8319_s4, 6144 }
  0x2a   :  { %p6514_p2 = scmp.ne.s32.totalorder %s8319_s4, %s6513_s12  ;;  %p6517_p3 = scmp.lt.u32.totalorder %s6513_s12, %s8319_s4 }
  0x2c   :  { %p6519_p4 = pnand %p6517_p3, %p6514_p2 }
  0x2e   :  { %6522 = shalt.err (!%p6519_p4)
}
  0x2f   :  { %s6523_s0 = scalar_lea.vmem %s55_s27, 6144  ;;  %p6528_p6 = scmp.lt.s32.totalorder %s55_s27, %s55_s27 }
  0x30   :  { %p6524_p5 = scmp.ne.s32.totalorder %s55_s27, %s6523_s0  ;;  %p6529_p7 = scmp.lt.s32.totalorder %s6523_s0, %s6523_s0 }
  0x32   :  { %p6530_p8 = por %p6529_p7, %p6528_p6 }
  0x34   :  { %p6531_p9 = pnand %p6530_p8, %p6524_p5 }
  0x36   :  { %6534 = shalt.err (!%p6531_p9)
}
  0x37   :  { %60 = dma.hbm_to_vmem [thread:$0]  %s8319_s4, 6144, %s55_s27, [#allocation6], %s6567_s2, %s6567_s2, %s6568_s20  }
  0x38   :  { %s6535_s22 = scalar_lea.hbm %s8322_s7, 2048 }
  0x39   :  { %p6536_p10 = scmp.ne.s32.totalorder %s8322_s7, %s6535_s22  ;;  %p6539_p11 = scmp.lt.u32.totalorder %s6535_s22, %s8322_s7 }
  0x3b   :  { %p6541_p12 = pnand %p6539_p11, %p6536_p10 }
  0x3d   :  { %6544 = shalt.err (!%p6541_p12)
}
  0x3e   :  { %s6545_s10 = scalar_lea.vmem %s6664_s28, 2048  ;;  %p6550_p0 = scmp.lt.s32.totalorder %s6664_s28, %s6664_s28 }
  0x3f   :  { %p6546_p13 = scmp.ne.s32.totalorder %s6664_s28, %s6545_s10  ;;  %p6551_p1 = scmp.lt.s32.totalorder %s6545_s10, %s6545_s10 }
  0x41   :  { %p6552_p2 = por %p6551_p1, %p6550_p0 }
  0x43   :  { %p6553_p3 = pnand %p6552_p2, %p6546_p13 }
  0x45   :  { %6556 = shalt.err (!%p6553_p3)
}
  0x46   :  { %s6571_s4 = smov 128   ;;  %s6572_s2 = smov 8  }
  0x47   :  { %76 = dma.hbm_to_vmem [thread:$0]  %s8322_s7, 2048, %s6664_s28, [#allocation9], %s6571_s4, %s6571_s4, %s6572_s2  }
  0x48   :  { %6557 = dma.done.wait [#allocation4], 3072  }
  0x49   :  { %6558 = vsyncadd [#allocation4], 4294964224 }
  0x4a   :  { %6559 = dma.done.wait [#allocation6], 30720  }
  0x4b   :  { %6560 = vsyncadd [#allocation6], 4294936576 }
  0x4c   :  { %6561 = dma.done.wait [#allocation9], 2048  }
  0x4d   :  { %6562 = vsyncadd [#allocation9], 4294965248  ;;  %v8327_v1 = vmov 0.0   ;;  %v8329_v2 = vmov 0   ;;  %v134_v3 = vld [vmem:[#allocation5 + $0x8] sm:$0xff]  ;;  %v140_v4 = vld [vmem:[#allocation5 + $0x38] sm:$0xff] }
  0x4e   :  { %389 = vmatprep.mubr.f32.mxu0 %v8327_v1  ;;  %460 = vmatprep.mubr.f32.mxu1 %v8327_v1  ;;  %v133_v5 = vld [vmem:[#allocation5] sm:$0xff]  ;;  %v6699_v6 = vpack.c.bf16 %v140_v4, %v134_v3  ;;  %v139_v7 = vld [vmem:[#allocation5 + $0x30] sm:$0xff]  ;;  %v146_v8 = vld [vmem:[#allocation5 + $0x68] sm:$0xff]  ;;  %vm6576_vm5 = vmmov 0  }
  0x4f   :  { %6302 = vset.pattern.permute.xlu0 %v8329_v2  ;;  %6303 = vset.pattern.permute.xlu1 %v8329_v2  ;;  %v152_v9 = vld [vmem:[#allocation5 + $0x98] sm:$0xff]  ;;  %v6701_v10 = vpack.c.bf16 %v139_v7, %v133_v5  ;;  %v145_v12 = vld [vmem:[#allocation5 + $0x60] sm:$0xff]  ;;  %v151_v13 = vld [vmem:[#allocation5 + $0x90] sm:$0xff] }
  0x50   :  { %8588 = vst [vmem:[#allocation13_spill] sm:$0xff] %v6699_v6  ;;  %v6703_v11 = vpack.c.bf16 %v152_v9, %v146_v8  ;;  %v158_v14 = vld [vmem:[#allocation5 + $0xc8] sm:$0xff]  ;;  %4281 = vmatprep.subr.bf16.mxu0 %v6699_v6  ;;  %v164_v15 = vld [vmem:[#allocation5 + $0xf8] sm:$0xff]  ;;  %v6707_v16 = vpack.c.bf16 %v151_v13, %v145_v12  ;;  %v157_v18 = vld [vmem:[#allocation5 + $0xc0] sm:$0xff] }
  0x51   :  { %8589 = vst [vmem:[#allocation14_spill] sm:$0xff] %v6701_v10  ;;  %4283 = vmatpush1.bf16.msra.mxu0 %v6701_v10  ;;  %v6710_v17 = vpack.c.bf16 %v164_v15, %v158_v14  ;;  %v163_v19 = vld [vmem:[#allocation5 + $0xf0] sm:$0xff]  ;;  %v170_v20 = vld [vmem:[#allocation5 + $0x128] sm:$0xff]  ;;  %v176_v21 = vld [vmem:[#allocation5 + $0x158] sm:$0xff] }
  0x52   :  { %8590 = vst [vmem:[#allocation15_spill] sm:$0xff] %v6703_v11  ;;  %8591 = vst [vmem:[#allocation16_spill] sm:$0xff] %v6707_v16  ;;  %4285 = vmatprep.subr.bf16.mxu0 %v6703_v11  ;;  %v6713_v22 = vpack.c.bf16 %v163_v19, %v157_v18  ;;  %v169_v23 = vld [vmem:[#allocation5 + $0x120] sm:$0xff]  ;;  %v175_v24 = vld [vmem:[#allocation5 + $0x150] sm:$0xff]  ;;  %v6716_v25 = vpack.c.bf16 %v176_v21, %v170_v20 }
  0x53   :  { %8592 = vst [vmem:[#allocation17_spill] sm:$0xff] %v6710_v17  ;;  %v182_v26 = vld [vmem:[#allocation5 + $0x188] sm:$0xff]  ;;  %v136_v27 = vld [vmem:[#allocation5 + $0x18] sm:$0xff]  ;;  %v135_v31 = vld [vmem:[#allocation5 + $0x10] sm:$0xff]  ;;  %v6723_v34 = vpack.c.bf16 %v175_v24, %v169_v23 }
  0x54   :  { %8593 = vst [vmem:[#allocation18_spill] sm:$0xff] %v6713_v22  ;;  %8594 = vst [vmem:[#allocation19_spill] sm:$0xff] %v6716_v25  ;;  %v142_v28 = vld [vmem:[#allocation5 + $0x48] sm:$0xff]  ;;  %v188_v29 = vld [vmem:[#allocation5 + $0x1b8] sm:$0xff] }
  0x55   :  { %4287 = vmatpush1.bf16.msra.mxu0 %v6707_v16  ;;  %v6718_v30 = vpack.c.bf16 %v142_v28, %v136_v27  ;;  %v141_v32 = vld [vmem:[#allocation5 + $0x40] sm:$0xff]  ;;  %8597 = vst [vmem:[#allocation22_spill] sm:$0xff] %v6723_v34  ;;  %v148_v35 = vld [vmem:[#allocation5 + $0x78] sm:$0xff]  ;;  %v154_v36 = vld [vmem:[#allocation5 + $0xa8] sm:$0xff]  ;;  %v6727_v38 = vpack.c.bf16 %v188_v29, %v182_v26 }
  0x56   :  { %4289 = vmatprep.subr.bf16.mxu0 %v6710_v17  ;;  %v6720_v33 = vpack.c.bf16 %v141_v32, %v135_v31  ;;  %v147_v37 = vld [vmem:[#allocation5 + $0x70] sm:$0xff]  ;;  %v181_v39 = vld [vmem:[#allocation5 + $0x180] sm:$0xff]  ;;  %v6730_v41 = vpack.c.bf16 %v154_v36, %v148_v35  ;;  %v194_v43 = vld [vmem:[#allocation5 + $0x1e8] sm:$0xff] }
  0x57   :  { %8595 = vst [vmem:[#allocation20_spill] sm:$0xff] %v6718_v30  ;;  %4345 = vmatprep.subr.bf16.mxu1 %v6718_v30  ;;  %8598 = vst [vmem:[#allocation23_spill] sm:$0xff] %v6727_v38  ;;  %v187_v40 = vld [vmem:[#allocation5 + $0x1b0] sm:$0xff]  ;;  %v153_v42 = vld [vmem:[#allocation5 + $0xa0] sm:$0xff] }
  0x58   :  { %8596 = vst [vmem:[#allocation21_spill] sm:$0xff] %v6720_v33  ;;  %4347 = vmatpush1.bf16.msra.mxu1 %v6720_v33  ;;  %8599 = vst [vmem:[#allocation24_spill] sm:$0xff] %v6730_v41  ;;  %v200_v44 = vld [vmem:[#allocation5 + $0x218] sm:$0xff]  ;;  %v6732_v45 = vpack.c.bf16 %v153_v42, %v147_v37  ;;  %v166_v47 = vld [vmem:[#allocation5 + $0x108] sm:$0xff]  ;;  %v6736_v50 = vpack.c.bf16 %v187_v40, %v181_v39 }
  0x59   :  { %4291 = vmatpush1.bf16.msra.mxu0 %v6713_v22  ;;  %v160_v46 = vld [vmem:[#allocation5 + $0xd8] sm:$0xff]  ;;  %4349 = vmatprep.subr.bf16.mxu1 %v6730_v41  ;;  %v159_v48 = vld [vmem:[#allocation5 + $0xd0] sm:$0xff]  ;;  %v165_v49 = vld [vmem:[#allocation5 + $0x100] sm:$0xff]  ;;  %v6741_v54 = vpack.c.bf16 %v200_v44, %v194_v43 }
  0x5a   :  { %4293 = vmatprep.subr.bf16.mxu0 %v6716_v25  ;;  %8600 = vst [vmem:[#allocation25_spill] sm:$0xff] %v6732_v45  ;;  %8601 = vst [vmem:[#allocation26_spill] sm:$0xff] %v6736_v50  ;;  %v193_v51 = vld [vmem:[#allocation5 + $0x1e0] sm:$0xff]  ;;  %v199_v52 = vld [vmem:[#allocation5 + $0x210] sm:$0xff]  ;;  %v6738_v53 = vpack.c.bf16 %v166_v47, %v160_v46  ;;  %v6744_v56 = vpack.c.bf16 %v165_v49, %v159_v48 }
  0x5b   :  { %8603 = vst [vmem:[#allocation28_spill] sm:$0xff] %v6741_v54  ;;  %v206_v55 = vld [vmem:[#allocation5 + $0x248] sm:$0xff]  ;;  %v172_v57 = vld [vmem:[#allocation5 + $0x138] sm:$0xff]  ;;  %v171_v61 = vld [vmem:[#allocation5 + $0x130] sm:$0xff]  ;;  %v6750_v63 = vpack.c.bf16 %v199_v52, %v193_v51 }
  0x5c   :  { %8602 = vst [vmem:[#allocation27_spill] sm:$0xff] %v6738_v53  ;;  %4351 = vmatpush1.bf16.msra.mxu1 %v6732_v45  ;;  %8604 = vst [vmem:[#allocation29_spill] sm:$0xff] %v6744_v56  ;;  %v178_v58 = vld [vmem:[#allocation5 + $0x168] sm:$0xff]  ;;  %v212_v59 = vld [vmem:[#allocation5 + $0x278] sm:$0xff] }
  0x5d   :  { %4295 = vmatpush1.bf16.msra.mxu0 %v6723_v34  ;;  %4353 = vmatprep.subr.bf16.mxu1 %v6738_v53  ;;  %v6747_v60 = vpack.c.bf16 %v178_v58, %v172_v57  ;;  %v177_v62 = vld [vmem:[#allocation5 + $0x160] sm:$0xff]  ;;  %8606 = vst [vmem:[#allocation31_spill] sm:$0xff] %v6750_v63  ;;  %v184_v0 = vld [vmem:[#allocation5 + $0x198] sm:$0xff]  ;;  %v190_v3 = vld [vmem:[#allocation5 + $0x1c8] sm:$0xff]  ;;  %v6753_v4 = vpack.c.bf16 %v212_v59, %v206_v55 }
  0x5e   :  { %4297 = vmatprep.subr.bf16.mxu0 %v6727_v38  ;;  %v205_v5 = vld [vmem:[#allocation5 + $0x240] sm:$0xff]  ;;  %v211_v7 = vld [vmem:[#allocation5 + $0x270] sm:$0xff]  ;;  %v218_v8 = vld [vmem:[#allocation5 + $0x2a8] sm:$0xff]  ;;  %v6756_v9 = vpack.c.bf16 %v177_v62, %v171_v61  ;;  %v6759_v13 = vpack.c.bf16 %v190_v3, %v184_v0 }
  0x5f   :  { %8605 = vst [vmem:[#allocation30_spill] sm:$0xff] %v6747_v60  ;;  %8607 = vst [vmem:[#allocation32_spill] sm:$0xff] %v6753_v4  ;;  %v224_v12 = vld [vmem:[#allocation5 + $0x2d8] sm:$0xff]  ;;  %v183_v14 = vld [vmem:[#allocation5 + $0x190] sm:$0xff]  ;;  %v6762_v20 = vpack.c.bf16 %v211_v7, %v205_v5 }
  0x60   :  { %4355 = vmatpush1.bf16.msra.mxu1 %v6744_v56  ;;  %8608 = vst [vmem:[#allocation33_spill] sm:$0xff] %v6756_v9  ;;  %8609 = vst [vmem:[#allocation34_spill] sm:$0xff] %v6759_v13  ;;  %v189_v15 = vld [vmem:[#allocation5 + $0x1c0] sm:$0xff]  ;;  %v196_v18 = vld [vmem:[#allocation5 + $0x1f8] sm:$0xff]  ;;  %v6765_v21 = vpack.c.bf16 %v224_v12, %v218_v8 }
  0x61   :  { %4299 = vmatpush1.bf16.msra.mxu0 %v6736_v50  ;;  %4357 = vmatprep.subr.bf16.mxu1 %v6747_v60  ;;  %v202_v19 = vld [vmem:[#allocation5 + $0x228] sm:$0xff]  ;;  %8610 = vst [vmem:[#allocation35_spill] sm:$0xff] %v6762_v20  ;;  %v217_v23 = vld [vmem:[#allocation5 + $0x2a0] sm:$0xff]  ;;  %v223_v24 = vld [vmem:[#allocation5 + $0x2d0] sm:$0xff]  ;;  %v6768_v27 = vpack.c.bf16 %v189_v15, %v183_v14 }
  0x62   :  { %4301 = vmatprep.subr.bf16.mxu0 %v6741_v54  ;;  %8611 = vst [vmem:[#allocation36_spill] sm:$0xff] %v6765_v21  ;;  %v230_v26 = vld [vmem:[#allocation5 + $0x308] sm:$0xff]  ;;  %v236_v28 = vld [vmem:[#allocation5 + $0x338] sm:$0xff]  ;;  %v6771_v29 = vpack.c.bf16 %v202_v19, %v196_v18  ;;  %v195_v31 = vld [vmem:[#allocation5 + $0x1f0] sm:$0xff]  ;;  %v6774_v37 = vpack.c.bf16 %v223_v24, %v217_v23 }
  0x63   :  { %8612 = vst [vmem:[#allocation37_spill] sm:$0xff] %v6768_v27  ;;  %v201_v32 = vld [vmem:[#allocation5 + $0x220] sm:$0xff]  ;;  %v208_v35 = vld [vmem:[#allocation5 + $0x258] sm:$0xff]  ;;  %v214_v36 = vld [vmem:[#allocation5 + $0x288] sm:$0xff]  ;;  %v6777_v39 = vpack.c.bf16 %v236_v28, %v230_v26 }
  0x64   :  { %4359 = vmatpush1.bf16.msra.mxu1 %v6756_v9  ;;  %8613 = vst [vmem:[#allocation38_spill] sm:$0xff] %v6771_v29  ;;  %8614 = vst [vmem:[#allocation39_spill] sm:$0xff] %v6774_v37  ;;  %v229_v40 = vld [vmem:[#allocation5 + $0x300] sm:$0xff]  ;;  %v235_v42 = vld [vmem:[#allocation5 + $0x330] sm:$0xff]  ;;  %v6780_v44 = vpack.c.bf16 %v201_v32, %v195_v31  ;;  %v6783_v47 = vpack.c.bf16 %v214_v36, %v208_v35 }
  0x65   :  { %4303 = vmatpush1.bf16.msra.mxu0 %v6750_v63  ;;  %4361 = vmatprep.subr.bf16.mxu1 %v6759_v13  ;;  %8615 = vst [vmem:[#allocation40_spill] sm:$0xff] %v6777_v39  ;;  %v242_v43 = vld [vmem:[#allocation5 + $0x368] sm:$0xff]  ;;  %v248_v46 = vld [vmem:[#allocation5 + $0x398] sm:$0xff]  ;;  %v207_v48 = vld [vmem:[#allocation5 + $0x250] sm:$0xff]  ;;  %v6786_v55 = vpack.c.bf16 %v235_v42, %v229_v40 }
  0x66   :  { %4305 = vmatprep.subr.bf16.mxu0 %v6753_v4  ;;  %8616 = vst [vmem:[#allocation41_spill] sm:$0xff] %v6780_v44  ;;  %8617 = vst [vmem:[#allocation42_spill] sm:$0xff] %v6783_v47  ;;  %v213_v49 = vld [vmem:[#allocation5 + $0x280] sm:$0xff]  ;;  %v220_v51 = vld [vmem:[#allocation5 + $0x2b8] sm:$0xff]  ;;  %v6789_v57 = vpack.c.bf16 %v248_v46, %v242_v43 }
  0x67   :  { %v226_v52 = vld [vmem:[#allocation5 + $0x2e8] sm:$0xff]  ;;  %8618 = vst [vmem:[#allocation43_spill] sm:$0xff] %v6786_v55  ;;  %v241_v58 = vld [vmem:[#allocation5 + $0x360] sm:$0xff]  ;;  %v247_v59 = vld [vmem:[#allocation5 + $0x390] sm:$0xff]  ;;  %v6792_v62 = vpack.c.bf16 %v213_v49, %v207_v48 }
  0x68   :  { %4363 = vmatpush1.bf16.msra.mxu1 %v6768_v27  ;;  %8619 = vst [vmem:[#allocation44_spill] sm:$0xff] %v6789_v57  ;;  %v254_v61 = vld [vmem:[#allocation5 + $0x3c8] sm:$0xff]  ;;  %v260_v0 = vld [vmem:[#allocation5 + $0x3f8] sm:$0xff]  ;;  %v6795_v3 = vpack.c.bf16 %v226_v52, %v220_v51  ;;  %v219_v5 = vld [vmem:[#allocation5 + $0x2b0] sm:$0xff]  ;;  %v6798_v14 = vpack.c.bf16 %v247_v59, %v241_v58 }
  0x69   :  { %4307 = vmatpush1.bf16.msra.mxu0 %v6762_v20  ;;  %4365 = vmatprep.subr.bf16.mxu1 %v6771_v29  ;;  %8620 = vst [vmem:[#allocation45_spill] sm:$0xff] %v6792_v62  ;;  %v225_v7 = vld [vmem:[#allocation5 + $0x2e0] sm:$0xff]  ;;  %v232_v8 = vld [vmem:[#allocation5 + $0x318] sm:$0xff]  ;;  %v238_v12 = vld [vmem:[#allocation5 + $0x348] sm:$0xff]  ;;  %v6801_v15 = vpack.c.bf16 %v260_v0, %v254_v61 }
  0x6a   :  { %4309 = vmatprep.subr.bf16.mxu0 %v6765_v21  ;;  %8621 = vst [vmem:[#allocation46_spill] sm:$0xff] %v6795_v3  ;;  %8622 = vst [vmem:[#allocation47_spill] sm:$0xff] %v6798_v14  ;;  %v253_v18 = vld [vmem:[#allocation5 + $0x3c0] sm:$0xff]  ;;  %v259_v19 = vld [vmem:[#allocation5 + $0x3f0] sm:$0xff]  ;;  %v6804_v24 = vpack.c.bf16 %v225_v7, %v219_v5  ;;  %v6807_v28 = vpack.c.bf16 %v238_v12, %v232_v8 }
  0x6b   :  { %8623 = vst [vmem:[#allocation48_spill] sm:$0xff] %v6801_v15  ;;  %v266_v23 = vld [vmem:[#allocation5 + $0x428] sm:$0xff]  ;;  %v272_v26 = vld [vmem:[#allocation5 + $0x458] sm:$0xff]  ;;  %v231_v31 = vld [vmem:[#allocation5 + $0x310] sm:$0xff]  ;;  %v6810_v40 = vpack.c.bf16 %v259_v19, %v253_v18 }
  0x6c   :  { %4367 = vmatpush1.bf16.msra.mxu1 %v6780_v44  ;;  %8624 = vst [vmem:[#allocation49_spill] sm:$0xff] %v6804_v24  ;;  %8625 = vst [vmem:[#allocation50_spill] sm:$0xff] %v6807_v28  ;;  %v237_v32 = vld [vmem:[#allocation5 + $0x340] sm:$0xff]  ;;  %v244_v35 = vld [vmem:[#allocation5 + $0x378] sm:$0xff]  ;;  %v6813_v43 = vpack.c.bf16 %v272_v26, %v266_v23 }
  0x6d   :  { %4311 = vmatpush1.bf16.msra.mxu0 %v6774_v37  ;;  %4369 = vmatprep.subr.bf16.mxu1 %v6783_v47  ;;  %v250_v36 = vld [vmem:[#allocation5 + $0x3a8] sm:$0xff]  ;;  %8626 = vst [vmem:[#allocation51_spill] sm:$0xff] %v6810_v40  ;;  %v265_v42 = vld [vmem:[#allocation5 + $0x420] sm:$0xff]  ;;  %v271_v46 = vld [vmem:[#allocation5 + $0x450] sm:$0xff]  ;;  %v6816_v51 = vpack.c.bf16 %v237_v32, %v231_v31 }
  0x6e   :  { %4313 = vmatprep.subr.bf16.mxu0 %v6777_v39  ;;  %8627 = vst [vmem:[#allocation52_spill] sm:$0xff] %v6813_v43  ;;  %v278_v48 = vld [vmem:[#allocation5 + $0x488] sm:$0xff]  ;;  %v284_v49 = vld [vmem:[#allocation5 + $0x4b8] sm:$0xff]  ;;  %v6819_v52 = vpack.c.bf16 %v250_v36, %v244_v35  ;;  %v243_v58 = vld [vmem:[#allocation5 + $0x370] sm:$0xff]  ;;  %v6825_v7 = vpack.c.bf16 %v271_v46, %v265_v42 }
  0x6f   :  { %8628 = vst [vmem:[#allocation53_spill] sm:$0xff] %v6816_v51  ;;  %v249_v59 = vld [vmem:[#allocation5 + $0x3a0] sm:$0xff]  ;;  %v256_v0 = vld [vmem:[#allocation5 + $0x3d8] sm:$0xff]  ;;  %v262_v5 = vld [vmem:[#allocation5 + $0x408] sm:$0xff]  ;;  %v6829_v12 = vpack.c.bf16 %v284_v49, %v278_v48 }
  0x70   :  { %4371 = vmatpush1.bf16.msra.mxu1 %v6792_v62  ;;  %8629 = vst [vmem:[#allocation54_spill] sm:$0xff] %v6819_v52  ;;  %v95_v61 = vld [vmem:[%s8316_s1] sm:$0xff]  ;;  %8630 = vst [vmem:[#allocation55_spill] sm:$0xff] %v6825_v7  ;;  %v283_v19 = vld [vmem:[#allocation5 + $0x4b0] sm:$0xff]  ;;  %v6832_v26 = vpack.c.bf16 %v249_v59, %v243_v58  ;;  %v6835_v32 = vpack.c.bf16 %v262_v5, %v256_v0 }
  0x71   :  { %4315 = vmatpush1.bf16.msra.mxu0 %v6786_v55  ;;  %4373 = vmatprep.subr.bf16.mxu1 %v6795_v3  ;;  %vm127_vm0 = vcmp.gt.s32.totalorder %v95_v61, 0  ;;  %vm776_vm1 = vcmp.gt.s32.totalorder %v95_v61, 1  ;;  %8631 = vst [vmem:[#allocation56_spill] sm:$0xff] %v6829_v12  ;;  %v277_v18 = vld [vmem:[#allocation5 + $0x480] sm:$0xff]  ;;  %v290_v23 = vld [vmem:[#allocation5 + $0x4e8] sm:$0xff]  ;;  %v296_v31 = vld [vmem:[#allocation5 + $0x518] sm:$0xff] }
  0x72   :  { %4317 = vmatprep.subr.bf16.mxu0 %v6789_v57  ;;  %v128_v8 = vsel %vm127_vm0, 1, %v8329_v2  ;;  %8632 = vst [vmem:[#allocation57_spill] sm:$0xff] %v6832_v26  ;;  %8633 = vst [vmem:[#allocation58_spill] sm:$0xff] %v6835_v32  ;;  %v255_v35 = vld [vmem:[#allocation5 + $0x3d0] sm:$0xff]  ;;  %v261_v36 = vld [vmem:[#allocation5 + $0x400] sm:$0xff]  ;;  %v777_v48 = vsel %vm776_vm1, 1, %v8329_v2  ;;  %v6840_v49 = vpack.c.bf16 %v283_v19, %v277_v18  ;;  %v6843_v58 = vpack.c.bf16 %v296_v31, %v290_v23 }
  0x73   :  { %130 = vperm.xlu0 %6302, %v128_v8   ;;  %v268_v42 = vld [vmem:[#allocation5 + $0x438] sm:$0xff]  ;;  %v274_v46 = vld [vmem:[#allocation5 + $0x468] sm:$0xff]  ;;  %vm2006_vm2 = vcmp.gt.s32.totalorder %v95_v61, 4  ;;  %v289_v59 = vld [vmem:[#allocation5 + $0x4e0] sm:$0xff]  ;;  %v6846_v8 = vpack.c.bf16 %v261_v36, %v255_v35  ;;  %vm2826_vm3 = vcmp.gt.s32.totalorder %v95_v61, 6  ;;  %vm3758_vm1 = vcmask 7168  }
  0x74   :  { %4375 = vmatpush1.bf16.msra.mxu1 %v6804_v24  ;;  %8634 = vst [vmem:[#allocation59_spill] sm:$0xff] %v6840_v49  ;;  %8635 = vst [vmem:[#allocation60_spill] sm:$0xff] %v6843_v58  ;;  %v295_v0 = vld [vmem:[#allocation5 + $0x510] sm:$0xff]  ;;  %v302_v5 = vld [vmem:[#allocation5 + $0x548] sm:$0xff]  ;;  %v6849_v2 = vpack.c.bf16 %v274_v46, %v268_v42 }
  0x75   :  { %4319 = vmatpush1.bf16.msra.mxu0 %v6798_v14  ;;  %4377 = vmatprep.subr.bf16.mxu1 %v6807_v28  ;;  %8636 = vst [vmem:[#allocation61_spill] sm:$0xff] %v6846_v8  ;;  %v308_v1 = vld [vmem:[#allocation5 + $0x578] sm:$0xff]  ;;  %v273_v18 = vld [vmem:[#allocation5 + $0x460] sm:$0xff]  ;;  %v8638_v28 = vmov 0   ;;  %v6854_v31 = vpack.c.bf16 %v295_v0, %v289_v59  ;;  %v307_v42 = vld [vmem:[#allocation5 + $0x570] sm:$0xff] }
  0x76   :  { %4321 = vmatprep.subr.bf16.mxu0 %v6801_v15  ;;  %8637 = vst [vmem:[#allocation62_spill] sm:$0xff] %v6849_v2  ;;  %v280_v19 = vld [vmem:[#allocation5 + $0x498] sm:$0xff]  ;;  %v2007_v23 = vsel %vm2006_vm2, 1, %v8638_v28  ;;  %v6857_v35 = vpack.c.bf16 %v308_v1, %v302_v5  ;;  %v301_v36 = vld [vmem:[#allocation5 + $0x540] sm:$0xff]  ;;  %v314_v46 = vld [vmem:[#allocation5 + $0x5a8] sm:$0xff]  ;;  %v2827_v1 = vsel %vm2826_vm3, 1, %v8638_v28 }
  0x77   :  { %779 = vperm.xlu0 %6302, %v777_v48   ;;  %8639 = vst [vmem:[#allocation63_spill] sm:$0xff] %v6854_v31  ;;  %v279_v24 = vld [vmem:[#allocation5 + $0x490] sm:$0xff]  ;;  %v285_v59 = vld [vmem:[#allocation5 + $0x4c0] sm:$0xff]  ;;  %v292_v0 = vld [vmem:[#allocation5 + $0x4f8] sm:$0xff]  ;;  %v6868_v5 = vpack.c.bf16 %v307_v42, %v301_v36 }
  0x78   :  { %4379 = vmatpush1.bf16.msra.mxu1 %v6816_v51  ;;  %v286_v51 = vld [vmem:[#allocation5 + $0x4c8] sm:$0xff]  ;;  %8640 = vst [vmem:[#allocation64_spill] sm:$0xff] %v6857_v35  ;;  %v297_v61 = vld [vmem:[#allocation5 + $0x520] sm:$0xff]  ;;  %v144_v36 = vld [vmem:[#allocation5 + $0x58] sm:$0xff] }
  0x79   :  { %4323 = vmatpush1.bf16.msra.mxu0 %v6810_v40  ;;  %4381 = vmatprep.subr.bf16.mxu1 %v6819_v52  ;;  %v267_v52 = vld [vmem:[#allocation5 + $0x430] sm:$0xff]  ;;  %v298_v3 = vld [vmem:[#allocation5 + $0x528] sm:$0xff]  ;;  %8643 = vst [vmem:[#allocation67_spill] sm:$0xff] %v6868_v5  ;;  %v304_v42 = vld [vmem:[#allocation5 + $0x558] sm:$0xff] }
  0x7a   :  { %4325 = vmatprep.subr.bf16.mxu0 %v6813_v43  ;;  %v6860_v48 = vpack.c.bf16 %v273_v18, %v267_v52  ;;  %v313_v18 = vld [vmem:[#allocation5 + $0x5a0] sm:$0xff]  ;;  %v138_v28 = vld [vmem:[#allocation5 + $0x28] sm:$0xff]  ;;  %v156_v62 = vld [vmem:[#allocation5 + $0xb8] sm:$0xff] }
  0x7b   :  { %2009 = vperm.xlu0 %6302, %v2007_v23   ;;  %v6877_v23 = vpack.c.bf16 %v298_v3, %v292_v0  ;;  %v137_v3 = vld [vmem:[#allocation5 + $0x20] sm:$0xff]  ;;  %v143_v0 = vld [vmem:[#allocation5 + $0x50] sm:$0xff]  ;;  %v168_v44 = vld [vmem:[#allocation5 + $0x118] sm:$0xff] }
  0x7c   :  { %4383 = vmatpush1.bf16.msra.mxu1 %v6832_v26  ;;  %8641 = vst [vmem:[#allocation65_spill] sm:$0xff] %v6860_v48  ;;  %v6863_v26 = vpack.c.bf16 %v286_v51, %v280_v19  ;;  %v6874_v51 = vpack.c.bf16 %v285_v59, %v279_v24  ;;  %v291_v19 = vld [vmem:[#allocation5 + $0x4f0] sm:$0xff]  ;;  %v6886_v59 = vpack.c.bf16 %v144_v36, %v138_v28 }
  0x7d   :  { %4327 = vmatpush1.bf16.msra.mxu0 %v6825_v7  ;;  %4385 = vmatprep.subr.bf16.mxu1 %v6835_v32  ;;  %v320_v32 = vld [vmem:[#allocation5 + $0x5d8] sm:$0xff]  ;;  %8646 = vst [vmem:[#allocation70_spill] sm:$0xff] %v6877_v23  ;;  %v6884_v24 = vpack.c.bf16 %v297_v61, %v291_v19  ;;  %v6892_v47 = vpack.c.bf16 %v143_v0, %v137_v3  ;;  %v315_v28 = vld [vmem:[#allocation5 + $0x5b0] sm:$0xff]  ;;  %v8655_v3 = vmov 0.0  }
  0x7e   :  { %4329 = vmatprep.subr.bf16.mxu0 %v6829_v12  ;;  %8642 = vst [vmem:[#allocation66_spill] sm:$0xff] %v6863_v26  ;;  %v6871_v52 = vpack.c.bf16 %v320_v32, %v314_v46  ;;  %8645 = vst [vmem:[#allocation69_spill] sm:$0xff] %v6874_v51  ;;  %v303_v46 = vld [vmem:[#allocation5 + $0x550] sm:$0xff] }
  0x7f   :  { %2829 = vperm.xlu0 %6302, %v2827_v1   ;;  %8648 = vst [vmem:[#allocation72_spill] sm:$0xff] %v6884_v24  ;;  %8649 = vst [vmem:[#allocation73_spill] sm:$0xff] %v6886_v59  ;;  %v155_v36 = vld [vmem:[#allocation5 + $0xb0] sm:$0xff] }
  0x80   :  { %4387 = vmatpush1.bf16.msra.mxu1 %v6846_v8  ;;  %8644 = vst [vmem:[#allocation68_spill] sm:$0xff] %v6871_v52  ;;  %v310_v8 = vld [vmem:[#allocation5 + $0x588] sm:$0xff]  ;;  %8651 = vst [vmem:[#allocation75_spill] sm:$0xff] %v6892_v47  ;;  %v167_v0 = vld [vmem:[#allocation5 + $0x110] sm:$0xff] }
  0x81   :  { %4331 = vmatpush1.bf16.msra.mxu0 %v6840_v49  ;;  %4389 = vmatprep.subr.bf16.mxu1 %v6849_v2  ;;  %v319_v2 = vld [vmem:[#allocation5 + $0x5d0] sm:$0xff]  ;;  %v6889_v1 = vpack.c.bf16 %v310_v8, %v304_v42  ;;  %v149_v8 = vld [vmem:[#allocation5 + $0x80] sm:$0xff] }
  0x82   :  { %4333 = vmatprep.subr.bf16.mxu0 %v6843_v58  ;;  %v6880_v32 = vpack.c.bf16 %v319_v2, %v313_v18  ;;  %v316_v2 = vld [vmem:[#allocation5 + $0x5b8] sm:$0xff]  ;;  %v322_v18 = vld [vmem:[#allocation5 + $0x5e8] sm:$0xff] }
  0x83   :  { %8650 = vst [vmem:[#allocation74_spill] sm:$0xff] %v6889_v1  ;;  %v6901_v42 = vpack.c.bf16 %v322_v18, %v316_v2  ;;  %v174_v2 = vld [vmem:[#allocation5 + $0x148] sm:$0xff]  ;;  %v180_v18 = vld [vmem:[#allocation5 + $0x178] sm:$0xff] }
  0x84   :  { %4391 = vmatpush1.bf16.msra.mxu1 %v6860_v48  ;;  %8647 = vst [vmem:[#allocation71_spill] sm:$0xff] %v6880_v32  ;;  %v150_v48 = vld [vmem:[#allocation5 + $0x88] sm:$0xff] }
  0x85   :  { %4335 = vmatpush1.bf16.msra.mxu0 %v6854_v31  ;;  %4393 = vmatprep.subr.bf16.mxu1 %v6863_v26  ;;  %v309_v26 = vld [vmem:[#allocation5 + $0x580] sm:$0xff]  ;;  %v6898_v61 = vpack.c.bf16 %v156_v62, %v150_v48  ;;  %8654 = vst [vmem:[#allocation78_spill] sm:$0xff] %v6901_v42 }
  0x86   :  { %4337 = vmatprep.subr.bf16.mxu0 %v6857_v35  ;;  %v6895_v19 = vpack.c.bf16 %v309_v26, %v303_v46  ;;  %v6905_v26 = vpack.c.bf16 %v155_v36, %v149_v8  ;;  %v161_v46 = vld [vmem:[#allocation5 + $0xe0] sm:$0xff]  ;;  %v186_v36 = vld [vmem:[#allocation5 + $0x1a8] sm:$0xff] }
  0x87   :  { %8653 = vst [vmem:[#allocation77_spill] sm:$0xff] %v6898_v61  ;;  %v6916_v8 = vpack.c.bf16 %v167_v0, %v161_v46  ;;  %v192_v46 = vld [vmem:[#allocation5 + $0x1d8] sm:$0xff] }
  0x88   :  { %4395 = vmatpush1.bf16.msra.mxu1 %v6874_v51  ;;  %8652 = vst [vmem:[#allocation76_spill] sm:$0xff] %v6895_v19  ;;  %v162_v51 = vld [vmem:[#allocation5 + $0xe8] sm:$0xff]  ;;  %8656 = vst [vmem:[#allocation79_spill] sm:$0xff] %v6905_v26  ;;  %v6929_v0 = vpack.c.bf16 %v192_v46, %v186_v36  ;;  %v216_v46 = vld [vmem:[#allocation5 + $0x298] sm:$0xff] }
  0x89   :  { %4339 = vmatpush1.bf16.msra.mxu0 %v6868_v5  ;;  %4397 = vmatprep.subr.bf16.mxu1 %v6877_v23  ;;  %v321_v23 = vld [vmem:[#allocation5 + $0x5e0] sm:$0xff]  ;;  %v6912_v48 = vpack.c.bf16 %v168_v44, %v162_v51  ;;  %8659 = vst [vmem:[#allocation82_spill] sm:$0xff] %v6916_v8  ;;  %v179_v51 = vld [vmem:[#allocation5 + $0x170] sm:$0xff]  ;;  %v210_v36 = vld [vmem:[#allocation5 + $0x268] sm:$0xff] }
  0x8a   :  { %4341 = vmatprep.subr.bf16.mxu0 %v6871_v52  ;;  %v6909_v62 = vpack.c.bf16 %v321_v23, %v315_v28  ;;  %v6920_v23 = vpack.c.bf16 %v180_v18, %v174_v2  ;;  %v173_v44 = vld [vmem:[#allocation5 + $0x140] sm:$0xff]  ;;  %8662 = vst [vmem:[#allocation85_spill] sm:$0xff] %v6929_v0  ;;  %v191_v18 = vld [vmem:[#allocation5 + $0x1d0] sm:$0xff] }
  0x8b   :  { %8658 = vst [vmem:[#allocation81_spill] sm:$0xff] %v6912_v48  ;;  %v6926_v28 = vpack.c.bf16 %v179_v51, %v173_v44  ;;  %v185_v2 = vld [vmem:[#allocation5 + $0x1a0] sm:$0xff]  ;;  %v203_v51 = vld [vmem:[#allocation5 + $0x230] sm:$0xff] }
  0x8c   :  { %4399 = vmatpush1.bf16.msra.mxu1 %v6884_v24  ;;  %8657 = vst [vmem:[#allocation80_spill] sm:$0xff] %v6909_v62  ;;  %8660 = vst [vmem:[#allocation83_spill] sm:$0xff] %v6920_v23  ;;  %v197_v44 = vld [vmem:[#allocation5 + $0x200] sm:$0xff] }
  0x8d   :  { %4343 = vmatpush1.bf16.msra.mxu0 %v6880_v32  ;;  %4401 = vmatprep.subr.bf16.mxu1 %v6889_v1  ;;  %8661 = vst [vmem:[#allocation84_spill] sm:$0xff] %v6926_v28 }
  0x8e   :  { %4409 = vmatprep.subr.bf16.mxu0 %v6886_v59 }
  0x90   :  { %390 = vmatmul.mubr.f32.vlgmr.msra.gmra.mrb[0].mxu0 %v8655_v3  ;;  %4403 = vmatpush1.bf16.msra.mxu1 %v6895_v19 }
  0x91   :  { %4411 = vmatpush1.bf16.msra.mxu0 %v6892_v47  ;;  %531 = vmatprep.mubr.f32.mxu0 %v8655_v3 }
  0x92   :  { %4413 = vmatprep.subr.bf16.mxu0 %v6898_v61  ;;  %4405 = vmatprep.subr.bf16.mxu1 %v6901_v42  ;;  %v6937_v61 = vpack.c.bf16 %v203_v51, %v197_v44  ;;  %v565_v44 = vld [vmem:[#allocation7 + $0x8] sm:$0xff] }
  0x94   :  { %4407 = vmatpush1.bf16.msra.mxu1 %v6909_v62  ;;  %8665 = vst [vmem:[#allocation88_spill] sm:$0xff] %v6937_v61  ;;  %v567_v62 = vld [vmem:[#allocation7 + $0x18] sm:$0xff] }
  0x95   :  { %4415 = vmatpush1.bf16.msra.mxu0 %v6905_v26 }
  0x96   :  { %4417 = vmatprep.subr.bf16.mxu0 %v6912_v48  ;;  %v6931_v48 = vpack.c.bf16 %v191_v18, %v185_v2  ;;  %v6941_v2 = vpack.c.bf16 %v216_v46, %v210_v36  ;;  %v209_v18 = vld [vmem:[#allocation5 + $0x260] sm:$0xff] }
  0x97   :  { %461 = vmatmul.mubr.f32.vlgmr.msra.gmra.mrb[0].mxu1 %v8655_v3  ;;  %v564_v46 = vld [vmem:[#allocation7] sm:$0xff] }
  0x98   :  { %676 = vmatprep.mubr.f32.mxu1 %v8655_v3  ;;  %8663 = vst [vmem:[#allocation86_spill] sm:$0xff] %v6931_v48  ;;  %8666 = vst [vmem:[#allocation89_spill] sm:$0xff] %v6941_v2 }
  0x99   :  { %4419 = vmatpush1.bf16.msra.mxu0 %v6916_v8  ;;  %v204_v8 = vld [vmem:[#allocation5 + $0x238] sm:$0xff] }
  0x9a   :  { %4421 = vmatprep.subr.bf16.mxu0 %v6920_v23  ;;  %v198_v23 = vld [vmem:[#allocation5 + $0x208] sm:$0xff] }
  0x9b   :  { %v6935_v26 = vpack.c.bf16 %v204_v8, %v198_v23  ;;  %v222_v8 = vld [vmem:[#allocation5 + $0x2c8] sm:$0xff]  ;;  %v228_v23 = vld [vmem:[#allocation5 + $0x2f8] sm:$0xff] }
  0x9c   :  { %v6947_v51 = vpack.c.bf16 %v228_v23, %v222_v8  ;;  %v240_v8 = vld [vmem:[#allocation5 + $0x358] sm:$0xff] }
  0x9d   :  { %4423 = vmatpush1.bf16.msra.mxu0 %v6926_v28  ;;  %8664 = vst [vmem:[#allocation87_spill] sm:$0xff] %v6935_v26  ;;  %v571_v23 = vld [vmem:[#allocation7 + $0x38] sm:$0xff] }
  0x9e   :  { %4425 = vmatprep.subr.bf16.mxu0 %v6929_v0  ;;  %v215_v0 = vld [vmem:[#allocation5 + $0x290] sm:$0xff]  ;;  %8668 = vst [vmem:[#allocation91_spill] sm:$0xff] %v6947_v51 }
  0x9f   :  { %v6943_v28 = vpack.c.bf16 %v215_v0, %v209_v18  ;;  %v6954_v0 = vpack.c.bf16 %v567_v62, %v564_v46  ;;  %v234_v18 = vld [vmem:[#allocation5 + $0x328] sm:$0xff]  ;;  %v570_v62 = vld [vmem:[#allocation7 + $0x30] sm:$0xff] }
  0xa0   :  { %v573_v46 = vld [vmem:[#allocation7 + $0x48] sm:$0xff] }
  0xa1   :  { %4427 = vmatpush1.bf16.msra.mxu0 %v6931_v48  ;;  %8667 = vst [vmem:[#allocation90_spill] sm:$0xff] %v6943_v28  ;;  %v221_v48 = vld [vmem:[#allocation5 + $0x2c0] sm:$0xff]  ;;  %8671 = vst [vmem:[#allocation94_spill] sm:$0xff] %v6954_v0 }
  0xa2   :  { %4429 = vmatprep.subr.bf16.mxu0 %v6935_v26  ;;  %v568_v26 = vld [vmem:[#allocation7 + $0x20] sm:$0xff] }
  0xa3   :  { %v6949_v47 = vpack.c.bf16 %v568_v26, %v565_v44  ;;  %v574_v26 = vld [vmem:[#allocation7 + $0x50] sm:$0xff] }
  0xa4   :  { %v6961_v44 = vpack.c.bf16 %v574_v26, %v571_v23  ;;  %v580_v23 = vld [vmem:[#allocation7 + $0x80] sm:$0xff] }
  0xa5   :  { %4431 = vmatpush1.bf16.msra.mxu0 %v6937_v61  ;;  %v227_v61 = vld [vmem:[#allocation5 + $0x2f0] sm:$0xff]  ;;  %8669 = vst [vmem:[#allocation92_spill] sm:$0xff] %v6949_v47  ;;  %4473 = vmatprep.subr.bf16.mxu1 %v6949_v47  ;;  %v245_v26 = vld [vmem:[#allocation5 + $0x380] sm:$0xff] }
  0xa6   :  { %4433 = vmatprep.subr.bf16.mxu0 %v6941_v2  ;;  %v6951_v36 = vpack.c.bf16 %v227_v61, %v221_v48  ;;  %4475 = vmatpush1.bf16.msra.mxu1 %v6954_v0  ;;  %v233_v61 = vld [vmem:[#allocation5 + $0x320] sm:$0xff]  ;;  %v239_v48 = vld [vmem:[#allocation5 + $0x350] sm:$0xff]  ;;  %8673 = vst [vmem:[#allocation96_spill] sm:$0xff] %v6961_v44 }
  0xa7   :  { %v6963_v2 = vpack.c.bf16 %v239_v48, %v233_v61  ;;  %4477 = vmatprep.subr.bf16.mxu1 %v6961_v44  ;;  %v251_v61 = vld [vmem:[#allocation5 + $0x3b0] sm:$0xff] }
  0xa8   :  { %8670 = vst [vmem:[#allocation93_spill] sm:$0xff] %v6951_v36  ;;  %v6975_v47 = vpack.c.bf16 %v251_v61, %v245_v26  ;;  %v263_v26 = vld [vmem:[#allocation5 + $0x410] sm:$0xff] }
  0xa9   :  { %4435 = vmatpush1.bf16.msra.mxu0 %v6943_v28  ;;  %v6959_v28 = vpack.c.bf16 %v240_v8, %v234_v18  ;;  %8674 = vst [vmem:[#allocation97_spill] sm:$0xff] %v6963_v2  ;;  %v252_v18 = vld [vmem:[#allocation5 + $0x3b8] sm:$0xff]  ;;  %v577_v8 = vld [vmem:[#allocation7 + $0x68] sm:$0xff] }
  0xaa   :  { %4437 = vmatprep.subr.bf16.mxu0 %v6947_v51  ;;  %v6966_v51 = vpack.c.bf16 %v573_v46, %v570_v62  ;;  %v6973_v48 = vpack.c.bf16 %v580_v23, %v577_v8  ;;  %8678 = vst [vmem:[#allocation101_spill] sm:$0xff] %v6975_v47  ;;  %v576_v62 = vld [vmem:[#allocation7 + $0x60] sm:$0xff]  ;;  %v579_v46 = vld [vmem:[#allocation7 + $0x78] sm:$0xff]  ;;  %v586_v8 = vld [vmem:[#allocation7 + $0xb0] sm:$0xff] }
  0xab   :  { %8672 = vst [vmem:[#allocation95_spill] sm:$0xff] %v6959_v28  ;;  %v257_v23 = vld [vmem:[#allocation5 + $0x3e0] sm:$0xff] }
  0xac   :  { %8675 = vst [vmem:[#allocation98_spill] sm:$0xff] %v6966_v51  ;;  %4479 = vmatpush1.bf16.msra.mxu1 %v6966_v51  ;;  %8677 = vst [vmem:[#allocation100_spill] sm:$0xff] %v6973_v48  ;;  %v6987_v44 = vpack.c.bf16 %v263_v26, %v257_v23  ;;  %v275_v23 = vld [vmem:[#allocation5 + $0x470] sm:$0xff] }
  0xad   :  { %4439 = vmatpush1.bf16.msra.mxu0 %v6951_v36  ;;  %v246_v36 = vld [vmem:[#allocation5 + $0x388] sm:$0xff]  ;;  %4481 = vmatprep.subr.bf16.mxu1 %v6973_v48 }
  0xae   :  { %4441 = vmatprep.subr.bf16.mxu0 %v6959_v28  ;;  %v6971_v0 = vpack.c.bf16 %v252_v18, %v246_v36  ;;  %v6978_v28 = vpack.c.bf16 %v579_v46, %v576_v62  ;;  %v264_v36 = vld [vmem:[#allocation5 + $0x418] sm:$0xff]  ;;  %8682 = vst [vmem:[#allocation105_spill] sm:$0xff] %v6987_v44  ;;  %v582_v62 = vld [vmem:[#allocation7 + $0x90] sm:$0xff]  ;;  %v585_v46 = vld [vmem:[#allocation7 + $0xa8] sm:$0xff] }
  0xaf   :  { %v583_v18 = vld [vmem:[#allocation7 + $0x98] sm:$0xff] }
  0xb0   :  { %8676 = vst [vmem:[#allocation99_spill] sm:$0xff] %v6971_v0  ;;  %8679 = vst [vmem:[#allocation102_spill] sm:$0xff] %v6978_v28  ;;  %4483 = vmatpush1.bf16.msra.mxu1 %v6978_v28  ;;  %v6985_v61 = vpack.c.bf16 %v586_v8, %v583_v18  ;;  %v592_v18 = vld [vmem:[#allocation7 + $0xe0] sm:$0xff] }
  0xb1   :  { %4443 = vmatpush1.bf16.msra.mxu0 %v6963_v2  ;;  %v258_v2 = vld [vmem:[#allocation5 + $0x3e8] sm:$0xff]  ;;  %v269_v8 = vld [vmem:[#allocation5 + $0x440] sm:$0xff] }
  0xb2   :  { %4445 = vmatprep.subr.bf16.mxu0 %v6971_v0  ;;  %v6983_v51 = vpack.c.bf16 %v264_v36, %v258_v2  ;;  %8681 = vst [vmem:[#allocation104_spill] sm:$0xff] %v6985_v61  ;;  %v6990_v0 = vpack.c.bf16 %v585_v46, %v582_v62  ;;  %4485 = vmatprep.subr.bf16.mxu1 %v6985_v61  ;;  %v276_v2 = vld [vmem:[#allocation5 + $0x478] sm:$0xff]  ;;  %v589_v36 = vld [vmem:[#allocation7 + $0xc8] sm:$0xff]  ;;  %v588_v62 = vld [vmem:[#allocation7 + $0xc0] sm:$0xff] }
  0xb3   :  { %v6997_v26 = vpack.c.bf16 %v592_v18, %v589_v36  ;;  %v6999_v48 = vpack.c.bf16 %v275_v23, %v269_v8  ;;  %v591_v46 = vld [vmem:[#allocation7 + $0xd8] sm:$0xff]  ;;  %v598_v36 = vld [vmem:[#allocation7 + $0x110] sm:$0xff]  ;;  %v281_v18 = vld [vmem:[#allocation5 + $0x4a0] sm:$0xff] }
  0xb4   :  { %8680 = vst [vmem:[#allocation103_spill] sm:$0xff] %v6983_v51  ;;  %8683 = vst [vmem:[#allocation106_spill] sm:$0xff] %v6990_v0  ;;  %4487 = vmatpush1.bf16.msra.mxu1 %v6990_v0  ;;  %v287_v8 = vld [vmem:[#allocation5 + $0x4d0] sm:$0xff] }
  0xb5   :  { %4447 = vmatpush1.bf16.msra.mxu0 %v6975_v47  ;;  %v270_v47 = vld [vmem:[#allocation5 + $0x448] sm:$0xff]  ;;  %8685 = vst [vmem:[#allocation108_spill] sm:$0xff] %v6997_v26  ;;  %8686 = vst [vmem:[#allocation109_spill] sm:$0xff] %v6999_v48  ;;  %4489 = vmatprep.subr.bf16.mxu1 %v6997_v26  ;;  %v7011_v61 = vpack.c.bf16 %v287_v8, %v281_v18  ;;  %v299_v18 = vld [vmem:[#allocation5 + $0x530] sm:$0xff] }
  0xb6   :  { %4449 = vmatprep.subr.bf16.mxu0 %v6983_v51  ;;  %v6995_v28 = vpack.c.bf16 %v276_v2, %v270_v47  ;;  %v7002_v51 = vpack.c.bf16 %v591_v46, %v588_v62  ;;  %v288_v47 = vld [vmem:[#allocation5 + $0x4d8] sm:$0xff]  ;;  %v594_v62 = vld [vmem:[#allocation7 + $0xf0] sm:$0xff]  ;;  %v597_v46 = vld [vmem:[#allocation7 + $0x108] sm:$0xff] }
  0xb7   :  { %v595_v2 = vld [vmem:[#allocation7 + $0xf8] sm:$0xff]  ;;  %8690 = vst [vmem:[#allocation113_spill] sm:$0xff] %v7011_v61 }
  0xb8   :  { %8684 = vst [vmem:[#allocation107_spill] sm:$0xff] %v6995_v28  ;;  %8687 = vst [vmem:[#allocation110_spill] sm:$0xff] %v7002_v51  ;;  %4491 = vmatpush1.bf16.msra.mxu1 %v7002_v51  ;;  %v7009_v23 = vpack.c.bf16 %v598_v36, %v595_v2  ;;  %v604_v2 = vld [vmem:[#allocation7 + $0x140] sm:$0xff] }
  0xb9   :  { %4451 = vmatpush1.bf16.msra.mxu0 %v6987_v44  ;;  %v282_v44 = vld [vmem:[#allocation5 + $0x4a8] sm:$0xff]  ;;  %v293_v36 = vld [vmem:[#allocation5 + $0x500] sm:$0xff] }
  0xba   :  { %4453 = vmatprep.subr.bf16.mxu0 %v6995_v28  ;;  %v7007_v0 = vpack.c.bf16 %v288_v47, %v282_v44  ;;  %8689 = vst [vmem:[#allocation112_spill] sm:$0xff] %v7009_v23  ;;  %v7014_v28 = vpack.c.bf16 %v597_v46, %v594_v62  ;;  %4493 = vmatprep.subr.bf16.mxu1 %v7009_v23  ;;  %v300_v44 = vld [vmem:[#allocation5 + $0x538] sm:$0xff]  ;;  %v601_v47 = vld [vmem:[#allocation7 + $0x128] sm:$0xff]  ;;  %v600_v62 = vld [vmem:[#allocation7 + $0x120] sm:$0xff] }
  0xbb   :  { %v7021_v8 = vpack.c.bf16 %v604_v2, %v601_v47  ;;  %v7023_v26 = vpack.c.bf16 %v299_v18, %v293_v36  ;;  %v603_v46 = vld [vmem:[#allocation7 + $0x138] sm:$0xff]  ;;  %v610_v47 = vld [vmem:[#allocation7 + $0x170] sm:$0xff]  ;;  %v305_v2 = vld [vmem:[#allocation5 + $0x560] sm:$0xff] }
  0xbc   :  { %8688 = vst [vmem:[#allocation111_spill] sm:$0xff] %v7007_v0  ;;  %8691 = vst [vmem:[#allocation114_spill] sm:$0xff] %v7014_v28  ;;  %4495 = vmatpush1.bf16.msra.mxu1 %v7014_v28  ;;  %v311_v36 = vld [vmem:[#allocation5 + $0x590] sm:$0xff] }
  0xbd   :  { %4455 = vmatpush1.bf16.msra.mxu0 %v6999_v48  ;;  %v294_v48 = vld [vmem:[#allocation5 + $0x508] sm:$0xff]  ;;  %8693 = vst [vmem:[#allocation116_spill] sm:$0xff] %v7021_v8  ;;  %8694 = vst [vmem:[#allocation117_spill] sm:$0xff] %v7023_v26  ;;  %4497 = vmatprep.subr.bf16.mxu1 %v7021_v8  ;;  %v7035_v23 = vpack.c.bf16 %v311_v36, %v305_v2  ;;  %v8444_v2 = vmov 0.0|0.0  }
  0xbe   :  { %4457 = vmatprep.subr.bf16.mxu0 %v7007_v0  ;;  %v7019_v51 = vpack.c.bf16 %v300_v44, %v294_v48  ;;  %v7026_v0 = vpack.c.bf16 %v603_v46, %v600_v62  ;;  %v312_v48 = vld [vmem:[#allocation5 + $0x598] sm:$0xff]  ;;  %v606_v62 = vld [vmem:[#allocation7 + $0x150] sm:$0xff]  ;;  %v609_v46 = vld [vmem:[#allocation7 + $0x168] sm:$0xff] }
  0xbf   :  { %v607_v44 = vld [vmem:[#allocation7 + $0x158] sm:$0xff]  ;;  %8698 = vst [vmem:[#allocation121_spill] sm:$0xff] %v7035_v23 }
  0xc0   :  { %8692 = vst [vmem:[#allocation115_spill] sm:$0xff] %v7019_v51  ;;  %8695 = vst [vmem:[#allocation118_spill] sm:$0xff] %v7026_v0  ;;  %4499 = vmatpush1.bf16.msra.mxu1 %v7026_v0  ;;  %v7033_v18 = vpack.c.bf16 %v610_v47, %v607_v44  ;;  %v317_v44 = vld [vmem:[#allocation5 + $0x5c0] sm:$0xff]  ;;  %v323_v47 = vld [vmem:[#allocation5 + $0x5f0] sm:$0xff] }
  0xc1   :  { %4459 = vmatpush1.bf16.msra.mxu0 %v7011_v61  ;;  %v306_v61 = vld [vmem:[#allocation5 + $0x568] sm:$0xff]  ;;  %v7046_v36 = vpack.c.bf16 %v323_v47, %v317_v44 }
  0xc2   :  { %4461 = vmatprep.subr.bf16.mxu0 %v7019_v51  ;;  %v7031_v28 = vpack.c.bf16 %v312_v48, %v306_v61  ;;  %8697 = vst [vmem:[#allocation120_spill] sm:$0xff] %v7033_v18  ;;  %v7038_v51 = vpack.c.bf16 %v609_v46, %v606_v62  ;;  %4501 = vmatprep.subr.bf16.mxu1 %v7033_v18  ;;  %v324_v61 = vld [vmem:[#allocation5 + $0x5f8] sm:$0xff]  ;;  %v539_v44 = vld [vmem:[#allocation3 + $0x8] sm:$0xff] }
  0xc3   :  { %8701 = vst [vmem:[#allocation124_spill] sm:$0xff] %v7046_v36 }
  0xc4   :  { %8696 = vst [vmem:[#allocation119_spill] sm:$0xff] %v7031_v28  ;;  %8699 = vst [vmem:[#allocation122_spill] sm:$0xff] %v7038_v51  ;;  %4503 = vmatpush1.bf16.msra.mxu1 %v7038_v51 }
  0xc5   :  { %4463 = vmatpush1.bf16.msra.mxu0 %v7023_v26  ;;  %v318_v26 = vld [vmem:[#allocation5 + $0x5c8] sm:$0xff]  ;;  %4504 = vmatprep.subr.bf16.mxu1 %v8444_v2 }
  0xc6   :  { %4465 = vmatprep.subr.bf16.mxu0 %v7031_v28  ;;  %v7043_v48 = vpack.c.bf16 %v324_v61, %v318_v26  ;;  %v538_v26 = vld [vmem:[#allocation3] sm:$0xff] }
  0xc8   :  { %8700 = vst [vmem:[#allocation123_spill] sm:$0xff] %v7043_v48 }
  0xc9   :  { %4467 = vmatpush1.bf16.msra.mxu0 %v7035_v23 }
  0xca   :  { %4469 = vmatprep.subr.bf16.mxu0 %v7043_v48 }
  0xcd   :  { %4471 = vmatpush1.bf16.msra.mxu0 %v7046_v36 }
  0xce   :  { %4529 = vmatprep.subr.bf16.mxu0 %v6699_v6 }
  0xd0   :  { %532 = vmatmul.mubr.f32.vlgmr.msra.gmra.mrb[2].mxu0 %v8655_v3 }
  0xd1   :  { %4531 = vmatpush1.bf16.msra.mxu0 %v6701_v10 }
  0xd2   :  { %4533 = vmatprep.subr.bf16.mxu0 %v6703_v11 }
  0xd5   :  { %4535 = vmatpush1.bf16.msra.mxu0 %v6707_v16 }
  0xd6   :  { %4537 = vmatprep.subr.bf16.mxu0 %v6710_v17 }
  0xd9   :  { %4539 = vmatpush1.bf16.msra.mxu0 %v6713_v22 }
  0xda   :  { %4541 = vmatprep.subr.bf16.mxu0 %v6716_v25 }
  0xdd   :  { %4543 = vmatpush1.bf16.msra.mxu0 %v6723_v34 }
  0xde   :  { %4545 = vmatprep.subr.bf16.mxu0 %v6727_v38 }
  0xe1   :  { %4547 = vmatpush1.bf16.msra.mxu0 %v6736_v50 }
  0xe2   :  { %4549 = vmatprep.subr.bf16.mxu0 %v6741_v54 }
  0xe5   :  { %4551 = vmatpush1.bf16.msra.mxu0 %v6750_v63 }
  0xe6   :  { %4553 = vmatprep.subr.bf16.mxu0 %v6753_v4 }
  0xe9   :  { %4555 = vmatpush1.bf16.msra.mxu0 %v6762_v20 }
  0xea   :  { %4557 = vmatprep.subr.bf16.mxu0 %v6765_v21 }
  0xed   :  { %4559 = vmatpush1.bf16.msra.mxu0 %v6774_v37 }
  0xee   :  { %4561 = vmatprep.subr.bf16.mxu0 %v6777_v39 }
  0xf1   :  { %4563 = vmatpush1.bf16.msra.mxu0 %v6786_v55 }
  0xf2   :  { %4565 = vmatprep.subr.bf16.mxu0 %v6789_v57 }
  0xf5   :  { %4567 = vmatpush1.bf16.msra.mxu0 %v6798_v14 }
  0xf6   :  { %4569 = vmatprep.subr.bf16.mxu0 %v6801_v15 }
  0xf9   :  { %4571 = vmatpush1.bf16.msra.mxu0 %v6810_v40 }
  0xfa   :  { %4573 = vmatprep.subr.bf16.mxu0 %v6813_v43  ;;  %v7092_v43 = vpop.permute.xlu0 %130 }
  0xfb   :  { %vm132_vm4 = vcmp.eq.s32.totalorder %v7092_v43, 1  ;;  %v8812_v43 = vld [vmem:[#allocation98_spill] sm:$0xff] }
  0xfd   :  { %4575 = vmatpush1.bf16.msra.mxu0 %v6825_v7 }
  0xfe   :  { %4577 = vmatprep.subr.bf16.mxu0 %v6829_v12 }
 0x101   :  { %4579 = vmatpush1.bf16.msra.mxu0 %v6840_v49 }
 0x102   :  { %4581 = vmatprep.subr.bf16.mxu0 %v6843_v58 }
 0x105   :  { %4583 = vmatpush1.bf16.msra.mxu0 %v6854_v31 }
 0x106   :  { %4585 = vmatprep.subr.bf16.mxu0 %v6857_v35 }
 0x109   :  { %4587 = vmatpush1.bf16.msra.mxu0 %v6868_v5 }
 0x10a   :  { %4589 = vmatprep.subr.bf16.mxu0 %v6871_v52 }
 0x10d   :  { %4591 = vmatpush1.bf16.msra.mxu0 %v6880_v32  ;;  %v566_v32 = vld [vmem:[#allocation7 + $0x10] sm:$0xff] }
 0x10e   :  { %4657 = vmatprep.subr.bf16.mxu0 %v6886_v59  ;;  %v7089_v59 = vld [vmem:[%s8318_s3] ss:$0 sm:$0xff] }
 0x10f   :  { %8702 = vst [vmem:[#allocation125_spill] sm:$0xff] %v7089_v59 }
 0x163   :  { %v391_v62 = vpop.f32.mrb[0].mxu0 }
 0x164   :  { %v541_v46 = vadd.f32 %v538_v26, %v391_v62  ;;  %v393_v61 = vpop.f32.mrb[1].mxu0 }
 0x165   :  { %v548_v2 = vadd.f32 %v539_v44, %v393_v61  ;;  %v540_v61 = vld [vmem:[#allocation3 + $0x10] sm:$0xff] }
 0x166   :  { %v3769_v47 = vmul.f32 -1.442695, %v541_v46 }
 0x167   :  { %v3770_v58 = vmul.f32 -1.442695, %v548_v2 }
 0x168   :  { %6304 = vpow2.f32 %v3769_v47 }
 0x169   :  { %6306 = vpow2.f32 %v3770_v58 }
 0x16a   :  { %v462_v31 = vpop.f32.mrb[0].mxu1 }
 0x16b   :  { %v7084_v49 = vpop.f32.mrb[1].mxu1  ;;  %v555_v62 = vadd.f32 %v7089_v59, %v462_v31  ;;  %v572_v59 = vld [vmem:[#allocation7 + $0x40] sm:$0xff] }
 0x172   :  { %v6305_v5 = vpop.eup %6304 }
 0x173   :  { %v545_v35 = vadd.f32 1.0, %v6305_v5  ;;  %v6307_v52 = vpop.eup %6306  ;;  %v569_v5 = vld [vmem:[#allocation7 + $0x28] sm:$0xff] }
 0x174   :  { %v552_v26 = vadd.f32 1.0, %v6307_v52  ;;  %v7095_v52 = vpack.c.bf16 %v569_v5, %v566_v32  ;;  %v578_v32 = vld [vmem:[#allocation7 + $0x70] sm:$0xff]  ;;  %v596_v5 = vld [vmem:[#allocation7 + $0x100] sm:$0xff] }
 0x175   :  { %6308 = vrcp.f32 %v545_v35 }
 0x176   :  { %6310 = vrcp.f32 %v552_v26  ;;  %v575_v26 = vld [vmem:[#allocation7 + $0x58] sm:$0xff] }
 0x17f   :  { %v6309_v46 = vpop.eup %6308 }
 0x180   :  { %v556_v2 = vmul.f32 %v6309_v46, %v555_v62  ;;  %v6311_v47 = vpop.eup %6310  ;;  %v7103_v62 = vpack.c.bf16 %v575_v26, %v572_v59  ;;  %v8703_v46 = vmov 0.0|0.0  }
 0x181   :  { %v559_v58 = vsub.f32 1.0, %v6311_v47  ;;  %v561_v12 = vmul.f32 0.0, %v6311_v47  ;;  %v593_v47 = vld [vmem:[#allocation7 + $0xe8] sm:$0xff] }
 0x182   :  { %v557_v44 = vadd.f32 %v556_v2, %v540_v61  ;;  %v581_v61 = vld [vmem:[#allocation7 + $0x88] sm:$0xff]  ;;  %v587_v2 = vld [vmem:[#allocation7 + $0xb8] sm:$0xff] }
 0x184   :  { %6312 = vtanh.f32 %v557_v44  ;;  %v590_v44 = vld [vmem:[#allocation7 + $0xd0] sm:$0xff] }
 0x18e   :  { %v6313_v35 = vpop.eup %6312 }
 0x18f   :  { %v560_v7 = vmul.f32 %v6313_v35, %v559_v58  ;;  %v7117_v58 = vpack.c.bf16 %v593_v47, %v590_v44  ;;  %v599_v35 = vld [vmem:[#allocation7 + $0x118] sm:$0xff] }
 0x190   :  { %v7121_v26 = vpack.c.bf16 %v599_v35, %v596_v5  ;;  %v611_v44 = vld [vmem:[#allocation7 + $0x178] sm:$0xff]  ;;  %v8708_v5 = vld [vmem:[#allocation41_spill] sm:$0xff]  ;;  %v8709_v35 = vld [vmem:[#allocation42_spill] sm:$0xff] }
 0x191   :  { %v7097_v31 = vadd.f32 %v561_v12, %v560_v7  ;;  %v7109_v7 = vpack.c.bf16 %v581_v61, %v578_v32  ;;  %v584_v12 = vld [vmem:[#allocation7 + $0xa0] sm:$0xff]  ;;  %8704 = vst [vmem:[#allocation126_spill] sm:$0xff] %v7117_v58  ;;  %v602_v32 = vld [vmem:[#allocation7 + $0x130] sm:$0xff]  ;;  %v605_v61 = vld [vmem:[#allocation7 + $0x148] sm:$0xff] }
 0x192   :  { %v7113_v59 = vpack.c.bf16 %v587_v2, %v584_v12  ;;  %8705 = vst [vmem:[#allocation127_spill] sm:$0xff] %v7121_v26  ;;  %v7125_v12 = vpack.c.bf16 %v605_v61, %v602_v32  ;;  %v608_v2 = vld [vmem:[#allocation7 + $0x160] sm:$0xff]  ;;  %v8711_v61 = vld [vmem:[#allocation46_spill] sm:$0xff] }
 0x193   :  { %3771 = vmatmul.mubr.msk.f32.vlgmr.msra.gmra.mrb[2].mxu1 %vm132_vm4, %v7097_v31  ;;  %v7129_v47 = vpack.c.bf16 %v611_v44, %v608_v2  ;;  %v8710_v32 = vld [vmem:[#allocation45_spill] sm:$0xff]  ;;  %v8713_v44 = vld [vmem:[#allocation50_spill] sm:$0xff] }
 0x194   :  { %4506 = vmatpush3.bf16.msra.mxu1 %v7095_v52  ;;  %3997 = vmatprep.mubr.msk.f32.mxu1 %vm6576_vm5, %v8655_v3  ;;  %8706 = vst [vmem:[#allocation128_spill] sm:$0xff] %v7125_v12  ;;  %v8712_v2 = vld [vmem:[#allocation49_spill] sm:$0xff] }
 0x195   :  { %4507 = vmatprep.subr.bf16.mxu1 %v8703_v46  ;;  %8707 = vst [vmem:[#allocation129_spill] sm:$0xff] %v7129_v47 }
 0x198   :  { %4509 = vmatpush3.bf16.msra.mxu1 %v7103_v62 }
 0x199   :  { %4510 = vmatprep.subr.bf16.mxu1 %v8703_v46 }
 0x19c   :  { %4512 = vmatpush3.bf16.msra.mxu1 %v7109_v7 }
 0x19d   :  { %4513 = vmatprep.subr.bf16.mxu1 %v8703_v46 }
 0x1a0   :  { %4515 = vmatpush3.bf16.msra.mxu1 %v7113_v59 }
 0x1a1   :  { %4516 = vmatprep.subr.bf16.mxu1 %v8703_v46 }
 0x1a4   :  { %4518 = vmatpush3.bf16.msra.mxu1 %v7117_v58 }
 0x1a5   :  { %4519 = vmatprep.subr.bf16.mxu1 %v8703_v46 }
 0x1a8   :  { %4521 = vmatpush3.bf16.msra.mxu1 %v7121_v26 }
 0x1a9   :  { %4522 = vmatprep.subr.bf16.mxu1 %v8703_v46 }
 0x1ac   :  { %4524 = vmatpush3.bf16.msra.mxu1 %v7125_v12 }
 0x1ad   :  { %4525 = vmatprep.subr.bf16.mxu1 %v8703_v46 }
 0x1b0   :  { %4527 = vmatpush3.bf16.msra.mxu1 %v7129_v47 }
 0x1b1   :  { %4593 = vmatprep.subr.bf16.mxu1 %v6718_v30 }
 0x1b3   :  { %3998 = vmatmul.mubr.msk.f32.vlgmr.msra.gmra.mrb[4].mxu1 %vm132_vm4, %v7097_v31 }
 0x1b4   :  { %4595 = vmatpush1.bf16.msra.mxu1 %v6720_v33 }
 0x1b5   :  { %4597 = vmatprep.subr.bf16.mxu1 %v6730_v41 }
 0x1b8   :  { %4599 = vmatpush1.bf16.msra.mxu1 %v6732_v45 }
 0x1b9   :  { %4601 = vmatprep.subr.bf16.mxu1 %v6738_v53 }
 0x1bc   :  { %4603 = vmatpush1.bf16.msra.mxu1 %v6744_v56 }
 0x1bd   :  { %4605 = vmatprep.subr.bf16.mxu1 %v6747_v60  ;;  %v8714_v60 = vld [vmem:[#allocation53_spill] sm:$0xff] }
 0x1c0   :  { %4607 = vmatpush1.bf16.msra.mxu1 %v6756_v9  ;;  %v8715_v9 = vld [vmem:[#allocation54_spill] sm:$0xff] }
 0x1c1   :  { %4609 = vmatprep.subr.bf16.mxu1 %v6759_v13  ;;  %v8716_v13 = vld [vmem:[#allocation57_spill] sm:$0xff] }
 0x1c4   :  { %4611 = vmatpush1.bf16.msra.mxu1 %v6768_v27  ;;  %v8717_v27 = vld [vmem:[#allocation58_spill] sm:$0xff] }
 0x1c5   :  { %4613 = vmatprep.subr.bf16.mxu1 %v6771_v29  ;;  %v8718_v29 = vld [vmem:[#allocation61_spill] sm:$0xff] }
 0x1c8   :  { %4615 = vmatpush1.bf16.msra.mxu1 %v8708_v5  ;;  %v8719_v5 = vld [vmem:[#allocation62_spill] sm:$0xff] }
 0x1c9   :  { %4617 = vmatprep.subr.bf16.mxu1 %v8709_v35  ;;  %v8720_v35 = vld [vmem:[#allocation65_spill] sm:$0xff] }
 0x1cc   :  { %4619 = vmatpush1.bf16.msra.mxu1 %v8710_v32  ;;  %v8721_v32 = vld [vmem:[#allocation66_spill] sm:$0xff] }
 0x1cd   :  { %4621 = vmatprep.subr.bf16.mxu1 %v8711_v61  ;;  %v8722_v61 = vld [vmem:[#allocation69_spill] sm:$0xff] }
 0x1d0   :  { %4623 = vmatpush1.bf16.msra.mxu1 %v8712_v2  ;;  %v8723_v2 = vld [vmem:[#allocation70_spill] sm:$0xff] }
 0x1d1   :  { %4625 = vmatprep.subr.bf16.mxu1 %v8713_v44 }
 0x1d4   :  { %4627 = vmatpush1.bf16.msra.mxu1 %v8714_v60 }
 0x1d5   :  { %4629 = vmatprep.subr.bf16.mxu1 %v8715_v9  ;;  %v533_v9 = vpop.f32.mrb[2].mxu0 }
 0x1d8   :  { %4631 = vmatpush1.bf16.msra.mxu1 %v8716_v13 }
 0x1d9   :  { %4633 = vmatprep.subr.bf16.mxu1 %v8717_v27  ;;  %v112_v27 = vlaneseq }
 0x1dc   :  { %4635 = vmatpush1.bf16.msra.mxu1 %v8718_v29  ;;  %v8724_v29 = vld [vmem:[#allocation80_spill] sm:$0xff] }
 0x1dd   :  { %4637 = vmatprep.subr.bf16.mxu1 %v8719_v5  ;;  %v8725_v5 = vld [vmem:[#allocation92_spill] sm:$0xff] }
 0x1e0   :  { %4639 = vmatpush1.bf16.msra.mxu1 %v8720_v35  ;;  %v535_v35 = vpop.f32.mrb[3].mxu0 }
 0x1e1   :  { %4641 = vmatprep.subr.bf16.mxu1 %v8721_v32  ;;  %v113_v32 = vshrl.u32 %v112_v27, 7 }
 0x1e3   :  { %v114_v13 = vsub.s32 0, %v113_v32 }
 0x1e4   :  { %4643 = vmatpush1.bf16.msra.mxu1 %v8722_v61 }
 0x1e5   :  { %4645 = vmatprep.subr.bf16.mxu1 %v8723_v2  ;;  %v110_v2 = vld [vmem:[%s8320_s5] sm:$0x7] }
 0x1e6   :  { %v7172_v61 = vrot.slane %v110_v2, %v114_v13  ;;  %v122_v13 = vsub.s32 2, %v113_v32 }
 0x1e8   :  { %4647 = vmatpush1.bf16.msra.mxu1 %v6884_v24  ;;  %v118_v24 = vsub.s32 1, %v113_v32  ;;  %8726 = vst [vmem:[#allocation130_spill] sm:$0xff] %v7172_v61 }
 0x1e9   :  { %4649 = vmatprep.subr.bf16.mxu1 %v6889_v1 }
 0x1ea   :  { %v7174_v1 = vrot.slane %v110_v2, %v118_v24  ;;  %v7182_v24 = vld [vmem:[%s8321_s6] ss:$0 sm:$0xff] }
 0x1ec   :  { %4651 = vmatpush1.bf16.msra.mxu1 %v6895_v19  ;;  %8727 = vst [vmem:[#allocation131_spill] sm:$0xff] %v7174_v1 }
 0x1ed   :  { %4653 = vmatprep.subr.bf16.mxu1 %v6901_v42 }
 0x1f0   :  { %4655 = vmatpush1.bf16.msra.mxu1 %v8724_v29 }
 0x1f1   :  { %4721 = vmatprep.subr.bf16.mxu1 %v8725_v5 }
 0x266   :  { %v678_v19 = vpop.f32.mrb[2].mxu1 }
 0x267   :  { %v679_v42 = vadd.f32 %v678_v19, %v7172_v61  ;;  %v680_v60 = vpop.f32.mrb[3].mxu1 }
 0x268   :  { %v681_v29 = vadd.f32 %v680_v60, %v7174_v1  ;;  %v767_v60 = vadd.f32 %v7182_v24, %v535_v35  ;;  %v7185_v1 = vrot.slane %v110_v2, %v122_v13  ;;  %v8729_v35 = vld [vmem:[#allocation77_spill] sm:$0xff]  ;;  %v8730_v2 = vld [vmem:[#allocation94_spill] sm:$0xff]  ;;  %v8731_v13 = vld [vmem:[#allocation96_spill] sm:$0xff] }
 0x269   :  { %v753_v5 = vadd.f32 %v679_v42, %v7084_v49 }
 0x26a   :  { %v760_v44 = vadd.f32 %v681_v29, %v533_v9 }
 0x26b   :  { %v3773_v27 = vmul.f32 -1.442695, %v753_v5 }
 0x26c   :  { %v3774_v56 = vmul.f32 -1.442695, %v760_v44 }
 0x26d   :  { %6314 = vpow2.f32 %v3773_v27 }
 0x26e   :  { %6316 = vpow2.f32 %v3774_v56 }
 0x277   :  { %v6315_v53 = vpop.eup %6314 }
 0x278   :  { %v757_v45 = vadd.f32 1.0, %v6315_v53  ;;  %v6317_v41 = vpop.eup %6316 }
 0x279   :  { %v764_v19 = vadd.f32 1.0, %v6317_v41  ;;  %v8728_v41 = vld [vmem:[#allocation75_spill] sm:$0xff] }
 0x27a   :  { %6318 = vrcp.f32 %v757_v45 }
 0x27b   :  { %6320 = vrcp.f32 %v764_v19  ;;  %v8732_v19 = vld [vmem:[#allocation79_spill] sm:$0xff] }
 0x284   :  { %v6319_v9 = vpop.eup %6318 }
 0x285   :  { %v768_v29 = vmul.f32 %v6319_v9, %v767_v60  ;;  %v6321_v42 = vpop.eup %6320  ;;  %v8733_v60 = vld [vmem:[#allocation81_spill] sm:$0xff]  ;;  %v8734_v9 = vld [vmem:[#allocation98_spill] sm:$0xff] }
 0x286   :  { %v749_v49 = vpop.f32.mrb[4].mxu1  ;;  %v771_v5 = vsub.f32 1.0, %v6321_v42  ;;  %v773_v27 = vmul.f32 0.0, %v6321_v42  ;;  %v8740_v42 = vld [vmem:[#allocation84_spill] sm:$0xff] }
 0x287   :  { %v750_v56 = vadd.f32 %v749_v49, %v7185_v1  ;;  %v3999_v53 = vpop.f32.mrb[5].mxu1  ;;  %v8736_v49 = vld [vmem:[#allocation82_spill] sm:$0xff] }
 0x288   :  { %v8738_v53 = vld [vmem:[#allocation102_spill] sm:$0xff] }
 0x289   :  { %v769_v45 = vadd.f32 %v768_v29, %v750_v56  ;;  %v8735_v29 = vld [vmem:[#allocation100_spill] sm:$0xff]  ;;  %v8737_v56 = vld [vmem:[#allocation83_spill] sm:$0xff] }
 0x28b   :  { %6322 = vtanh.f32 %v769_v45  ;;  %v8739_v45 = vld [vmem:[#allocation104_spill] sm:$0xff] }
 0x295   :  { %v6323_v32 = vpop.eup %6322 }
 0x296   :  { %v772_v44 = vmul.f32 %v6323_v32, %v771_v5  ;;  %v8741_v5 = vld [vmem:[#allocation85_spill] sm:$0xff]  ;;  %v8742_v32 = vld [vmem:[#allocation106_spill] sm:$0xff] }
 0x298   :  { %v7188_v61 = vadd.f32 %v773_v27, %v772_v44  ;;  %v8743_v44 = vld [vmem:[#allocation108_spill] sm:$0xff]  ;;  %v8744_v27 = vld [vmem:[#allocation86_spill] sm:$0xff] }
 0x29a   :  { %3775 = vmatprep.mubr.msk.f32.mxu0 %vm132_vm4, %v7188_v61  ;;  %3777 = vmatprep.mubr.msk.f32.mxu1 %vm132_vm4, %v7188_v61 }
 0x29b   :  { %3776 = vmatmul.mubr.msk.f32.vlgmr.msra.gmra.mrb[4].mxu0 %vm132_vm4, %v7097_v31  ;;  %3778 = vmatmul.mubr.msk.f32.vlgmr.msra.gmra.mrb[6].mxu1 %vm132_vm4, %v7097_v31 }
 0x29c   :  { %4659 = vmatpush1.bf16.msra.mxu0 %v8728_v41  ;;  %3779 = vmatprep.mubr.msk.f32.mxu0 %vm132_vm4, %v7188_v61 }
 0x29d   :  { %4661 = vmatprep.subr.bf16.mxu0 %v8729_v35  ;;  %4723 = vmatpush1.bf16.msra.mxu1 %v8730_v2 }
 0x29e   :  { %4725 = vmatprep.subr.bf16.mxu1 %v8731_v13  ;;  %1086 = vmatprep.mubr.f32.mxu1 %v8655_v3 }
 0x2a0   :  { %4663 = vmatpush1.bf16.msra.mxu0 %v8732_v19 }
 0x2a1   :  { %4665 = vmatprep.subr.bf16.mxu0 %v8733_v60  ;;  %4727 = vmatpush1.bf16.msra.mxu1 %v8734_v9  ;;  %v8745_v9 = vld [vmem:[#allocation87_spill] sm:$0xff] }
 0x2a2   :  { %4729 = vmatprep.subr.bf16.mxu1 %v8735_v29  ;;  %v8746_v29 = vld [vmem:[#allocation110_spill] sm:$0xff] }
 0x2a4   :  { %4667 = vmatpush1.bf16.msra.mxu0 %v8736_v49  ;;  %v8747_v49 = vld [vmem:[#allocation112_spill] sm:$0xff] }
 0x2a5   :  { %4669 = vmatprep.subr.bf16.mxu0 %v8737_v56  ;;  %4731 = vmatpush1.bf16.msra.mxu1 %v8738_v53  ;;  %v8748_v56 = vld [vmem:[#allocation88_spill] sm:$0xff]  ;;  %v8749_v53 = vld [vmem:[#allocation89_spill] sm:$0xff] }
 0x2a6   :  { %4733 = vmatprep.subr.bf16.mxu1 %v8739_v45  ;;  %v8750_v45 = vld [vmem:[#allocation114_spill] sm:$0xff] }
 0x2a8   :  { %4671 = vmatpush1.bf16.msra.mxu0 %v8740_v42 }
 0x2a9   :  { %4673 = vmatprep.subr.bf16.mxu0 %v8741_v5  ;;  %4735 = vmatpush1.bf16.msra.mxu1 %v8742_v32  ;;  %v8751_v5 = vld [vmem:[#allocation90_spill] sm:$0xff]  ;;  %v8752_v32 = vld [vmem:[#allocation91_spill] sm:$0xff] }
 0x2aa   :  { %4737 = vmatprep.subr.bf16.mxu1 %v8743_v44 }
 0x2ac   :  { %4675 = vmatpush1.bf16.msra.mxu0 %v8744_v27 }
 0x2ad   :  { %4677 = vmatprep.subr.bf16.mxu0 %v8745_v9  ;;  %4739 = vmatpush1.bf16.msra.mxu1 %v8746_v29  ;;  %v8753_v9 = vld [vmem:[#allocation93_spill] sm:$0xff]  ;;  %v8754_v29 = vld [vmem:[#allocation95_spill] sm:$0xff] }
 0x2ae   :  { %4741 = vmatprep.subr.bf16.mxu1 %v8747_v49 }
 0x2b0   :  { %4679 = vmatpush1.bf16.msra.mxu0 %v8748_v56  ;;  %v8765_v56 = vld [vmem:[#allocation117_spill] sm:$0xff] }
 0x2b1   :  { %4681 = vmatprep.subr.bf16.mxu0 %v8749_v53  ;;  %4743 = vmatpush1.bf16.msra.mxu1 %v8750_v45  ;;  %v8755_v53 = vld [vmem:[#allocation97_spill] sm:$0xff]  ;;  %v8756_v45 = vld [vmem:[#allocation99_spill] sm:$0xff] }
 0x2b2   :  { %4745 = vmatprep.subr.bf16.mxu1 %v7021_v8  ;;  %v8757_v8 = vld [vmem:[#allocation101_spill] sm:$0xff] }
 0x2b4   :  { %4683 = vmatpush1.bf16.msra.mxu0 %v8751_v5  ;;  %v8758_v5 = vld [vmem:[#allocation103_spill] sm:$0xff] }
 0x2b5   :  { %4685 = vmatprep.subr.bf16.mxu0 %v8752_v32  ;;  %4747 = vmatpush1.bf16.msra.mxu1 %v7026_v0  ;;  %v8759_v32 = vld [vmem:[#allocation105_spill] sm:$0xff]  ;;  %v8760_v0 = vld [vmem:[#allocation107_spill] sm:$0xff] }
 0x2b6   :  { %4749 = vmatprep.subr.bf16.mxu1 %v7033_v18  ;;  %v8761_v18 = vld [vmem:[#allocation109_spill] sm:$0xff] }
 0x2b8   :  { %4687 = vmatpush1.bf16.msra.mxu0 %v8753_v9  ;;  %v8762_v9 = vld [vmem:[#allocation111_spill] sm:$0xff] }
 0x2b9   :  { %4689 = vmatprep.subr.bf16.mxu0 %v8754_v29  ;;  %4751 = vmatpush1.bf16.msra.mxu1 %v7038_v51  ;;  %v8763_v29 = vld [vmem:[#allocation113_spill] sm:$0xff]  ;;  %v8764_v51 = vld [vmem:[#allocation115_spill] sm:$0xff] }
 0x2ba   :  { %4752 = vmatprep.subr.bf16.mxu1 %v8703_v46 }
 0x2bc   :  { %4691 = vmatpush1.bf16.msra.mxu0 %v8755_v53 }
 0x2bd   :  { %4693 = vmatprep.subr.bf16.mxu0 %v8756_v45 }
 0x2c0   :  { %4695 = vmatpush1.bf16.msra.mxu0 %v8757_v8 }
 0x2c1   :  { %4697 = vmatprep.subr.bf16.mxu0 %v8758_v5 }
 0x2c4   :  { %4699 = vmatpush1.bf16.msra.mxu0 %v8759_v32 }
 0x2c5   :  { %4701 = vmatprep.subr.bf16.mxu0 %v8760_v0 }
 0x2c8   :  { %4703 = vmatpush1.bf16.msra.mxu0 %v8761_v18 }
 0x2c9   :  { %4705 = vmatprep.subr.bf16.mxu0 %v8762_v9 }
 0x2cc   :  { %4707 = vmatpush1.bf16.msra.mxu0 %v8763_v29 }
 0x2cd   :  { %4709 = vmatprep.subr.bf16.mxu0 %v8764_v51 }
 0x2d0   :  { %4711 = vmatpush1.bf16.msra.mxu0 %v8765_v56 }
 0x2d1   :  { %4713 = vmatprep.subr.bf16.mxu0 %v7031_v28 }
 0x2d4   :  { %4715 = vmatpush1.bf16.msra.mxu0 %v7035_v23 }
 0x2d5   :  { %4717 = vmatprep.subr.bf16.mxu0 %v7043_v48 }
 0x2d8   :  { %4719 = vmatpush1.bf16.msra.mxu0 %v7046_v36 }
 0x2d9   :  { %4777 = vmatprep.subr.bf16.mxu0 %v6699_v6 }
 0x2db   :  { %3780 = vmatmul.mubr.msk.f32.vlgmr.msra.gmra.mrb[6].mxu0 %vm132_vm4, %v7097_v31 }
 0x2dc   :  { %4779 = vmatpush1.bf16.msra.mxu0 %v6701_v10 }
 0x2dd   :  { %4781 = vmatprep.subr.bf16.mxu0 %v6703_v11 }
 0x2e0   :  { %4783 = vmatpush1.bf16.msra.mxu0 %v6707_v16 }
 0x2e1   :  { %4785 = vmatprep.subr.bf16.mxu0 %v6710_v17  ;;  %v998_v17 = vld [vmem:[#allocation3 + $0x28] sm:$0xff] }
 0x2e4   :  { %4787 = vmatpush1.bf16.msra.mxu0 %v6713_v22 }
 0x2e5   :  { %4789 = vmatprep.subr.bf16.mxu0 %v6716_v25  ;;  %v8777_v25 = vld [vmem:[#allocation125_spill] sm:$0xff] }
 0x2e8   :  { %4791 = vmatpush1.bf16.msra.mxu0 %v6723_v34 }
 0x2e9   :  { %4793 = vmatprep.subr.bf16.mxu0 %v6727_v38 }
 0x2ec   :  { %4795 = vmatpush1.bf16.msra.mxu0 %v6736_v50 }
 0x2ed   :  { %4797 = vmatprep.subr.bf16.mxu0 %v6741_v54 }
 0x2f0   :  { %4799 = vmatpush1.bf16.msra.mxu0 %v6750_v63  ;;  %v8766_v63 = vld [vmem:[#allocation52_spill] sm:$0xff] }
 0x2f1   :  { %4801 = vmatprep.subr.bf16.mxu0 %v6753_v4  ;;  %v8767_v4 = vld [vmem:[#allocation55_spill] sm:$0xff] }
 0x2f4   :  { %4803 = vmatpush1.bf16.msra.mxu0 %v6762_v20  ;;  %v8768_v20 = vld [vmem:[#allocation56_spill] sm:$0xff] }
 0x2f5   :  { %4805 = vmatprep.subr.bf16.mxu0 %v6765_v21  ;;  %v8769_v21 = vld [vmem:[#allocation59_spill] sm:$0xff] }
 0x2f8   :  { %4807 = vmatpush1.bf16.msra.mxu0 %v6774_v37  ;;  %v8770_v37 = vld [vmem:[#allocation60_spill] sm:$0xff] }
 0x2f9   :  { %4809 = vmatprep.subr.bf16.mxu0 %v6777_v39  ;;  %v8771_v39 = vld [vmem:[#allocation63_spill] sm:$0xff] }
 0x2fc   :  { %4811 = vmatpush1.bf16.msra.mxu0 %v6786_v55  ;;  %v8772_v55 = vld [vmem:[#allocation64_spill] sm:$0xff] }
 0x2fd   :  { %4813 = vmatprep.subr.bf16.mxu0 %v6789_v57  ;;  %v8773_v57 = vld [vmem:[#allocation67_spill] sm:$0xff] }
 0x300   :  { %4815 = vmatpush1.bf16.msra.mxu0 %v6798_v14  ;;  %v8774_v14 = vld [vmem:[#allocation68_spill] sm:$0xff] }
 0x301   :  { %4817 = vmatprep.subr.bf16.mxu0 %v6801_v15  ;;  %v8775_v15 = vld [vmem:[#allocation71_spill] sm:$0xff] }
 0x304   :  { %4819 = vmatpush1.bf16.msra.mxu0 %v6810_v40  ;;  %v8776_v40 = vld [vmem:[#allocation73_spill] sm:$0xff] }
 0x305   :  { %4821 = vmatprep.subr.bf16.mxu0 %v8766_v63  ;;  %v996_v63 = vld [vmem:[#allocation3 + $0x18] sm:$0xff] }
 0x308   :  { %4823 = vmatpush1.bf16.msra.mxu0 %v8767_v4 }
 0x309   :  { %4825 = vmatprep.subr.bf16.mxu0 %v8768_v20 }
 0x30c   :  { %4827 = vmatpush1.bf16.msra.mxu0 %v8769_v21  ;;  %v997_v21 = vld [vmem:[#allocation3 + $0x20] sm:$0xff] }
 0x30d   :  { %4829 = vmatprep.subr.bf16.mxu0 %v8770_v37 }
 0x310   :  { %4831 = vmatpush1.bf16.msra.mxu0 %v8771_v39 }
 0x311   :  { %4833 = vmatprep.subr.bf16.mxu0 %v8772_v55 }
 0x314   :  { %4835 = vmatpush1.bf16.msra.mxu0 %v8773_v57 }
 0x315   :  { %4837 = vmatprep.subr.bf16.mxu0 %v8774_v14 }
 0x318   :  { %4839 = vmatpush1.bf16.msra.mxu0 %v8775_v15 }
 0x319   :  { %4905 = vmatprep.subr.bf16.mxu0 %v8776_v40 }
 0x36e   :  { %v848_v4 = vpop.f32.mrb[4].mxu0  ;;  %v919_v54 = vpop.f32.mrb[6].mxu1 }
 0x36f   :  { %v999_v20 = vadd.f32 %v996_v63, %v848_v4  ;;  %v850_v50 = vpop.f32.mrb[5].mxu0  ;;  %v7289_v38 = vpop.f32.mrb[7].mxu1  ;;  %v1013_v40 = vadd.f32 %v8777_v25, %v919_v54  ;;  %v8779_v54 = vld [vmem:[#allocation25_spill] sm:$0xff] }
 0x370   :  { %v1006_v39 = vadd.f32 %v997_v21, %v850_v50  ;;  %v563_v50 = vsel %vm132_vm4, %v7097_v31, 0.0  ;;  %v8785_v31 = vld [vmem:[#allocation37_spill] sm:$0xff] }
 0x371   :  { %v3781_v37 = vmul.f32 -1.442695, %v999_v20 }
 0x372   :  { %v3782_v55 = vmul.f32 -1.442695, %v1006_v39 }
 0x373   :  { %6324 = vpow2.f32 %v3781_v37 }
 0x374   :  { %6326 = vpow2.f32 %v3782_v55  ;;  %v8780_v55 = vld [vmem:[#allocation27_spill] sm:$0xff] }
 0x37d   :  { %v6325_v57 = vpop.eup %6324 }
 0x37e   :  { %v1003_v34 = vadd.f32 1.0, %v6325_v57  ;;  %v6327_v14 = vpop.eup %6326  ;;  %v8781_v57 = vld [vmem:[#allocation29_spill] sm:$0xff] }
 0x37f   :  { %v1010_v15 = vadd.f32 1.0, %v6327_v14  ;;  %v8782_v14 = vld [vmem:[#allocation30_spill] sm:$0xff] }
 0x380   :  { %6328 = vrcp.f32 %v1003_v34  ;;  %v7295_v34 = vpop.permute.xlu0 %779 }
 0x381   :  { %6330 = vrcp.f32 %v1010_v15  ;;  %vm781_vm6 = vcmp.eq.s32.totalorder %v7295_v34, 1  ;;  %v8783_v15 = vld [vmem:[#allocation33_spill] sm:$0xff]  ;;  %v8814_v34 = vld [vmem:[#allocation82_spill] sm:$0xff] }
 0x38a   :  { %v6329_v22 = vpop.eup %6328 }
 0x38b   :  { %v1014_v16 = vmul.f32 %v6329_v22, %v1013_v40  ;;  %v6331_v4 = vpop.eup %6330  ;;  %v8784_v40 = vld [vmem:[#allocation34_spill] sm:$0xff] }
 0x38c   :  { %v1017_v11 = vsub.f32 1.0, %v6331_v4  ;;  %v1019_v37 = vmul.f32 %v6331_v4, %v563_v50  ;;  %v8787_v4 = vld [vmem:[#allocation41_spill] sm:$0xff] }
 0x38d   :  { %v1015_v63 = vadd.f32 %v1014_v16, %v998_v17  ;;  %v8778_v17 = vld [vmem:[#allocation24_spill] sm:$0xff] }
 0x38f   :  { %6332 = vtanh.f32 %v1015_v63  ;;  %v8786_v63 = vld [vmem:[#allocation38_spill] sm:$0xff] }
 0x399   :  { %v6333_v20 = vpop.eup %6332 }
 0x39a   :  { %v1018_v21 = vmul.f32 %v6333_v20, %v1017_v11  ;;  %v8788_v20 = vld [vmem:[#allocation42_spill] sm:$0xff] }
 0x39c   :  { %v1020_v39 = vadd.f32 %v1019_v37, %v1018_v21  ;;  %v8790_v21 = vld [vmem:[#allocation46_spill] sm:$0xff]  ;;  %v8791_v37 = vld [vmem:[#allocation49_spill] sm:$0xff] }
 0x39e   :  { %v7300_v22 = vsel %vm781_vm6, %v1020_v39, %v563_v50  ;;  %v8789_v50 = vld [vmem:[#allocation45_spill] sm:$0xff]  ;;  %v8792_v39 = vld [vmem:[#allocation50_spill] sm:$0xff] }
 0x39f   :  { %1087 = vmatmul.mubr.f32.vlgmr.msra.gmra.mrb[8].mxu1 %v7300_v22 }
 0x3a0   :  { %4754 = vmatpush3.bf16.msra.mxu1 %v7095_v52  ;;  %4032 = vmatprep.mubr.msk.f32.mxu1 %vm6576_vm5, %v8655_v3 }
 0x3a1   :  { %4755 = vmatprep.subr.bf16.mxu1 %v8703_v46 }
 0x3a4   :  { %4757 = vmatpush3.bf16.msra.mxu1 %v7103_v62 }
 0x3a5   :  { %4758 = vmatprep.subr.bf16.mxu1 %v8703_v46 }
 0x3a8   :  { %4760 = vmatpush3.bf16.msra.mxu1 %v7109_v7 }
 0x3a9   :  { %4761 = vmatprep.subr.bf16.mxu1 %v8703_v46 }
 0x3ac   :  { %4763 = vmatpush3.bf16.msra.mxu1 %v7113_v59 }
 0x3ad   :  { %4764 = vmatprep.subr.bf16.mxu1 %v8703_v46 }
 0x3ae   :  { %v990_v11 = vpop.f32.mrb[6].mxu0 }
 0x3af   :  { %v7313_v16 = vpop.f32.mrb[7].mxu0 }
 0x3b0   :  { %4766 = vmatpush3.bf16.msra.mxu1 %v7117_v58 }
 0x3b1   :  { %4767 = vmatprep.subr.bf16.mxu1 %v8703_v46 }
 0x3b4   :  { %4769 = vmatpush3.bf16.msra.mxu1 %v7121_v26 }
 0x3b5   :  { %4770 = vmatprep.subr.bf16.mxu1 %v8703_v46 }
 0x3b8   :  { %4772 = vmatpush3.bf16.msra.mxu1 %v7125_v12 }
 0x3b9   :  { %4773 = vmatprep.subr.bf16.mxu1 %v8703_v46 }
 0x3bc   :  { %4775 = vmatpush3.bf16.msra.mxu1 %v7129_v47 }
 0x3bd   :  { %4841 = vmatprep.subr.bf16.mxu1 %v6718_v30 }
 0x3bf   :  { %4033 = vmatmul.mubr.f32.vlgmr.msra.gmra.mrb[10].mxu1 %v7300_v22 }
 0x3c0   :  { %4843 = vmatpush1.bf16.msra.mxu1 %v6720_v33 }
 0x3c1   :  { %4845 = vmatprep.subr.bf16.mxu1 %v8778_v17 }
 0x3c4   :  { %4847 = vmatpush1.bf16.msra.mxu1 %v8779_v54 }
 0x3c5   :  { %4849 = vmatprep.subr.bf16.mxu1 %v8780_v55 }
 0x3c8   :  { %4851 = vmatpush1.bf16.msra.mxu1 %v8781_v57 }
 0x3c9   :  { %4853 = vmatprep.subr.bf16.mxu1 %v8782_v14  ;;  %v8793_v14 = vld [vmem:[#allocation53_spill] sm:$0xff] }
 0x3cc   :  { %4855 = vmatpush1.bf16.msra.mxu1 %v8783_v15  ;;  %v8794_v15 = vld [vmem:[#allocation54_spill] sm:$0xff] }
 0x3cd   :  { %4857 = vmatprep.subr.bf16.mxu1 %v8784_v40  ;;  %v8795_v40 = vld [vmem:[#allocation57_spill] sm:$0xff] }
 0x3d0   :  { %4859 = vmatpush1.bf16.msra.mxu1 %v8785_v31  ;;  %v8796_v31 = vld [vmem:[#allocation58_spill] sm:$0xff] }
 0x3d1   :  { %4861 = vmatprep.subr.bf16.mxu1 %v8786_v63  ;;  %v8797_v63 = vld [vmem:[#allocation61_spill] sm:$0xff] }
 0x3d4   :  { %4863 = vmatpush1.bf16.msra.mxu1 %v8787_v4  ;;  %v8798_v4 = vld [vmem:[#allocation62_spill] sm:$0xff] }
 0x3d5   :  { %4865 = vmatprep.subr.bf16.mxu1 %v8788_v20  ;;  %v8799_v20 = vld [vmem:[#allocation65_spill] sm:$0xff] }
 0x3d8   :  { %4867 = vmatpush1.bf16.msra.mxu1 %v8789_v50  ;;  %v8800_v50 = vld [vmem:[#allocation66_spill] sm:$0xff] }
 0x3d9   :  { %4869 = vmatprep.subr.bf16.mxu1 %v8790_v21  ;;  %v8801_v21 = vld [vmem:[#allocation69_spill] sm:$0xff] }
 0x3dc   :  { %4871 = vmatpush1.bf16.msra.mxu1 %v8791_v37  ;;  %v8802_v37 = vld [vmem:[#allocation70_spill] sm:$0xff] }
 0x3dd   :  { %4873 = vmatprep.subr.bf16.mxu1 %v8792_v39  ;;  %v8803_v39 = vld [vmem:[#allocation72_spill] sm:$0xff] }
 0x3e0   :  { %4875 = vmatpush1.bf16.msra.mxu1 %v8793_v14  ;;  %v8804_v14 = vld [vmem:[#allocation74_spill] sm:$0xff] }
 0x3e1   :  { %4877 = vmatprep.subr.bf16.mxu1 %v8794_v15  ;;  %v8805_v15 = vld [vmem:[#allocation76_spill] sm:$0xff] }
 0x3e4   :  { %4879 = vmatpush1.bf16.msra.mxu1 %v8795_v40  ;;  %v8806_v40 = vld [vmem:[#allocation78_spill] sm:$0xff] }
 0x3e5   :  { %4881 = vmatprep.subr.bf16.mxu1 %v8796_v31  ;;  %v8807_v31 = vld [vmem:[#allocation80_spill] sm:$0xff] }
 0x3e8   :  { %4883 = vmatpush1.bf16.msra.mxu1 %v8797_v63  ;;  %v8808_v63 = vld [vmem:[#allocation92_spill] sm:$0xff] }
 0x3e9   :  { %4885 = vmatprep.subr.bf16.mxu1 %v8798_v4  ;;  %v8811_v4 = vld [vmem:[#allocation131_spill] sm:$0xff] }
 0x3ec   :  { %4887 = vmatpush1.bf16.msra.mxu1 %v8799_v20 }
 0x3ed   :  { %4889 = vmatprep.subr.bf16.mxu1 %v8800_v50  ;;  %v6464_v50 = vld [vmem:[%s8316_s1] sm:$0xff] }
 0x3ee   :  { %vm1186_vm7 = vcmp.gt.s32.totalorder %v6464_v50, 2  ;;  %vm1596_vm8 = vcmp.gt.s32.totalorder %v6464_v50, 3  ;;  %vm2416_vm9 = vcmp.gt.s32.totalorder %v6464_v50, 5  ;;  %vm3236_vm10 = vcmp.gt.s32.totalorder %v6464_v50, 7 }
 0x3f0   :  { %4891 = vmatpush1.bf16.msra.mxu1 %v8801_v21  ;;  %v8809_v21 = vmov 0  }
 0x3f1   :  { %4893 = vmatprep.subr.bf16.mxu1 %v8802_v37  ;;  %v1187_v37 = vsel %vm1186_vm7, 1, %v8809_v21  ;;  %v3237_v20 = vsel %vm3236_vm10, 1, %v8809_v21 }
 0x3f2   :  { %1189 = vperm.xlu1 %6303, %v1187_v37  }
 0x3f4   :  { %4895 = vmatpush1.bf16.msra.mxu1 %v8803_v39  ;;  %v1597_v39 = vsel %vm1596_vm8, 1, %v8809_v21 }
 0x3f5   :  { %4897 = vmatprep.subr.bf16.mxu1 %v8804_v14 }
 0x3f6   :  { %1599 = vperm.xlu1 %6303, %v1597_v39  }
 0x3f8   :  { %4899 = vmatpush1.bf16.msra.mxu1 %v8805_v15  ;;  %v2417_v15 = vsel %vm2416_vm9, 1, %v8809_v21 }
 0x3f9   :  { %4901 = vmatprep.subr.bf16.mxu1 %v8806_v40 }
 0x3fa   :  { %2419 = vperm.xlu1 %6303, %v2417_v15   ;;  %v1177_v15 = vadd.f32 %v7182_v24, %v7313_v16 }
 0x3fc   :  { %4903 = vmatpush1.bf16.msra.mxu1 %v8807_v31  ;;  %v8810_v31 = vld [vmem:[#allocation130_spill] sm:$0xff] }
 0x3fd   :  { %4969 = vmatprep.subr.bf16.mxu1 %v8808_v63 }
 0x3fe   :  { %3239 = vperm.xlu1 %6303, %v3237_v20  }
 0x472   :  { %v1088_v40 = vpop.f32.mrb[8].mxu1 }
 0x473   :  { %v1089_v63 = vadd.f32 %v1088_v40, %v8810_v31  ;;  %v1090_v14 = vpop.f32.mrb[9].mxu1 }
 0x474   :  { %v1091_v57 = vadd.f32 %v1090_v14, %v8811_v4 }
 0x475   :  { %v1163_v55 = vadd.f32 %v1089_v63, %v7289_v38  ;;  %v775_v38 = vsel %vm132_vm4, %v7188_v61, 0.0  ;;  %v8813_v61 = vld [vmem:[#allocation100_spill] sm:$0xff] }
 0x476   :  { %v1170_v54 = vadd.f32 %v1091_v57, %v990_v11 }
 0x477   :  { %v3783_v37 = vmul.f32 -1.442695, %v1163_v55 }
 0x478   :  { %v3784_v17 = vmul.f32 -1.442695, %v1170_v54 }
 0x479   :  { %6334 = vpow2.f32 %v3783_v37  ;;  %v8815_v37 = vld [vmem:[#allocation83_spill] sm:$0xff] }
 0x47a   :  { %6336 = vpow2.f32 %v3784_v17 }
 0x483   :  { %v6335_v39 = vpop.eup %6334 }
 0x484   :  { %v6337_v33 = vpop.eup %6336  ;;  %v1167_v50 = vadd.f32 1.0, %v6335_v39  ;;  %v8816_v39 = vld [vmem:[#allocation102_spill] sm:$0xff] }
 0x485   :  { %v1174_v30 = vadd.f32 1.0, %v6337_v33 }
 0x486   :  { %6338 = vrcp.f32 %v1167_v50  ;;  %v8817_v50 = vld [vmem:[#allocation104_spill] sm:$0xff] }
 0x487   :  { %6340 = vrcp.f32 %v1174_v30 }
 0x490   :  { %v6339_v40 = vpop.eup %6338 }
 0x491   :  { %v6341_v21 = vpop.eup %6340  ;;  %v1178_v14 = vmul.f32 %v6339_v40, %v1177_v15  ;;  %v8818_v15 = vld [vmem:[#allocation85_spill] sm:$0xff]  ;;  %v8819_v40 = vld [vmem:[#allocation106_spill] sm:$0xff] }
 0x492   :  { %v1159_v11 = vpop.f32.mrb[10].mxu1  ;;  %v1183_v54 = vmul.f32 %v6341_v21, %v775_v38  ;;  %v1181_v33 = vsub.f32 1.0, %v6341_v21  ;;  %v8820_v21 = vld [vmem:[#allocation87_spill] sm:$0xff] }
 0x493   :  { %v1160_v17 = vadd.f32 %v1159_v11, %v7185_v1  ;;  %v4034_v55 = vpop.f32.mrb[11].mxu1  ;;  %v8823_v11 = vld [vmem:[#allocation89_spill] sm:$0xff] }
 0x494   :  { %v8826_v55 = vld [vmem:[#allocation90_spill] sm:$0xff] }
 0x495   :  { %v1179_v57 = vadd.f32 %v1178_v14, %v1160_v17  ;;  %v8821_v14 = vld [vmem:[#allocation110_spill] sm:$0xff]  ;;  %v8825_v17 = vld [vmem:[#allocation116_spill] sm:$0xff] }
 0x497   :  { %6342 = vtanh.f32 %v1179_v57  ;;  %v8827_v57 = vld [vmem:[#allocation91_spill] sm:$0xff] }
 0x4a1   :  { %v6343_v63 = vpop.eup %6342 }
 0x4a2   :  { %v1182_v30 = vmul.f32 %v6343_v63, %v1181_v33  ;;  %v8828_v33 = vld [vmem:[#allocation118_spill] sm:$0xff]  ;;  %v8829_v63 = vld [vmem:[#allocation120_spill] sm:$0xff] }
 0x4a4   :  { %v1184_v20 = vadd.f32 %v1183_v54, %v1182_v30  ;;  %v8824_v54 = vld [vmem:[#allocation114_spill] sm:$0xff]  ;;  %v8830_v30 = vld [vmem:[#allocation93_spill] sm:$0xff] }
 0x4a6   :  { %v7374_v16 = vsel %vm781_vm6, %v1184_v20, %v775_v38  ;;  %v8822_v38 = vld [vmem:[#allocation88_spill] sm:$0xff]  ;;  %v8831_v20 = vld [vmem:[#allocation95_spill] sm:$0xff] }
 0x4a7   :  { %1256 = vmatprep.mubr.f32.mxu0 %v7374_v16  ;;  %1327 = vmatprep.mubr.f32.mxu1 %v7374_v16 }
 0x4a8   :  { %1257 = vmatmul.mubr.f32.vlgmr.msra.gmra.mrb[8].mxu0 %v7300_v22  ;;  %1328 = vmatmul.mubr.f32.vlgmr.msra.gmra.mrb[12].mxu1 %v7300_v22 }
 0x4a9   :  { %4907 = vmatpush1.bf16.msra.mxu0 %v8728_v41  ;;  %1398 = vmatprep.mubr.f32.mxu0 %v7374_v16 }
 0x4aa   :  { %4909 = vmatprep.subr.bf16.mxu0 %v8729_v35  ;;  %4971 = vmatpush1.bf16.msra.mxu1 %v8730_v2 }
 0x4ab   :  { %4973 = vmatprep.subr.bf16.mxu1 %v8731_v13  ;;  %1496 = vmatprep.mubr.f32.mxu1 %v8655_v3 }
 0x4ad   :  { %4911 = vmatpush1.bf16.msra.mxu0 %v8732_v19 }
 0x4ae   :  { %4913 = vmatprep.subr.bf16.mxu0 %v8733_v60  ;;  %4975 = vmatpush1.bf16.msra.mxu1 %v8812_v43 }
 0x4af   :  { %4977 = vmatprep.subr.bf16.mxu1 %v8813_v61 }
 0x4b1   :  { %4915 = vmatpush1.bf16.msra.mxu0 %v8814_v34 }
 0x4b2   :  { %4917 = vmatprep.subr.bf16.mxu0 %v8815_v37  ;;  %4979 = vmatpush1.bf16.msra.mxu1 %v8816_v39 }
 0x4b3   :  { %4981 = vmatprep.subr.bf16.mxu1 %v8817_v50 }
 0x4b5   :  { %4919 = vmatpush1.bf16.msra.mxu0 %v8740_v42 }
 0x4b6   :  { %4921 = vmatprep.subr.bf16.mxu0 %v8818_v15  ;;  %4983 = vmatpush1.bf16.msra.mxu1 %v8819_v40 }
 0x4b7   :  { %4985 = vmatprep.subr.bf16.mxu1 %v8743_v44 }
 0x4b9   :  { %4923 = vmatpush1.bf16.msra.mxu0 %v8744_v27 }
 0x4ba   :  { %4925 = vmatprep.subr.bf16.mxu0 %v8820_v21  ;;  %4987 = vmatpush1.bf16.msra.mxu1 %v8821_v14 }
 0x4bb   :  { %4989 = vmatprep.subr.bf16.mxu1 %v8747_v49  ;;  %v8832_v49 = vld [vmem:[#allocation122_spill] sm:$0xff] }
 0x4bd   :  { %4927 = vmatpush1.bf16.msra.mxu0 %v8822_v38 }
 0x4be   :  { %4929 = vmatprep.subr.bf16.mxu0 %v8823_v11  ;;  %4991 = vmatpush1.bf16.msra.mxu1 %v8824_v54 }
 0x4bf   :  { %4993 = vmatprep.subr.bf16.mxu1 %v8825_v17 }
 0x4c1   :  { %4931 = vmatpush1.bf16.msra.mxu0 %v8826_v55 }
 0x4c2   :  { %4933 = vmatprep.subr.bf16.mxu0 %v8827_v57  ;;  %4995 = vmatpush1.bf16.msra.mxu1 %v8828_v33 }
 0x4c3   :  { %4997 = vmatprep.subr.bf16.mxu1 %v8829_v63 }
 0x4c5   :  { %4935 = vmatpush1.bf16.msra.mxu0 %v8830_v30 }
 0x4c6   :  { %4937 = vmatprep.subr.bf16.mxu0 %v8831_v20  ;;  %4999 = vmatpush1.bf16.msra.mxu1 %v8832_v49 }
 0x4c7   :  { %5000 = vmatprep.subr.bf16.mxu1 %v8703_v46 }
 0x4c9   :  { %4939 = vmatpush1.bf16.msra.mxu0 %v8755_v53  ;;  %v1408_v53 = vld [vmem:[#allocation3 + $0x40] sm:$0xff] }
 0x4ca   :  { %4941 = vmatprep.subr.bf16.mxu0 %v8756_v45 }
 0x4cd   :  { %4943 = vmatpush1.bf16.msra.mxu0 %v8757_v8 }
 0x4ce   :  { %4945 = vmatprep.subr.bf16.mxu0 %v8758_v5 }
 0x4d1   :  { %4947 = vmatpush1.bf16.msra.mxu0 %v8759_v32 }
 0x4d2   :  { %4949 = vmatprep.subr.bf16.mxu0 %v8760_v0 }
 0x4d5   :  { %4951 = vmatpush1.bf16.msra.mxu0 %v8761_v18  ;;  %v8842_v18 = vld [vmem:[#allocation31_spill] sm:$0xff] }
 0x4d6   :  { %4953 = vmatprep.subr.bf16.mxu0 %v8762_v9  ;;  %v8833_v9 = vld [vmem:[#allocation15_spill] sm:$0xff] }
 0x4d9   :  { %4955 = vmatpush1.bf16.msra.mxu0 %v8763_v29  ;;  %v8834_v29 = vld [vmem:[#allocation16_spill] sm:$0xff] }
 0x4da   :  { %4957 = vmatprep.subr.bf16.mxu0 %v8764_v51  ;;  %v8835_v51 = vld [vmem:[#allocation17_spill] sm:$0xff] }
 0x4dd   :  { %4959 = vmatpush1.bf16.msra.mxu0 %v8765_v56  ;;  %v8836_v56 = vld [vmem:[#allocation18_spill] sm:$0xff] }
 0x4de   :  { %4961 = vmatprep.subr.bf16.mxu0 %v7031_v28  ;;  %v8837_v28 = vld [vmem:[#allocation19_spill] sm:$0xff] }
 0x4e1   :  { %4963 = vmatpush1.bf16.msra.mxu0 %v7035_v23  ;;  %v8838_v23 = vld [vmem:[#allocation22_spill] sm:$0xff] }
 0x4e2   :  { %4965 = vmatprep.subr.bf16.mxu0 %v7043_v48  ;;  %v8839_v48 = vld [vmem:[#allocation23_spill] sm:$0xff] }
 0x4e5   :  { %4967 = vmatpush1.bf16.msra.mxu0 %v7046_v36  ;;  %v8840_v36 = vld [vmem:[#allocation26_spill] sm:$0xff] }
 0x4e6   :  { %5025 = vmatprep.subr.bf16.mxu0 %v6699_v6  ;;  %v8841_v6 = vld [vmem:[#allocation28_spill] sm:$0xff] }
 0x4e8   :  { %1399 = vmatmul.mubr.f32.vlgmr.msra.gmra.mrb[10].mxu0 %v7300_v22 }
 0x4e9   :  { %5027 = vmatpush1.bf16.msra.mxu0 %v6701_v10  ;;  %v8843_v10 = vld [vmem:[#allocation32_spill] sm:$0xff] }
 0x4ea   :  { %5029 = vmatprep.subr.bf16.mxu0 %v8833_v9  ;;  %v8844_v9 = vld [vmem:[#allocation35_spill] sm:$0xff] }
 0x4ed   :  { %5031 = vmatpush1.bf16.msra.mxu0 %v8834_v29  ;;  %v8845_v29 = vld [vmem:[#allocation36_spill] sm:$0xff] }
 0x4ee   :  { %5033 = vmatprep.subr.bf16.mxu0 %v8835_v51  ;;  %v8846_v51 = vld [vmem:[#allocation39_spill] sm:$0xff] }
 0x4f1   :  { %5035 = vmatpush1.bf16.msra.mxu0 %v8836_v56  ;;  %v8847_v56 = vld [vmem:[#allocation40_spill] sm:$0xff] }
 0x4f2   :  { %5037 = vmatprep.subr.bf16.mxu0 %v8837_v28  ;;  %v8848_v28 = vld [vmem:[#allocation43_spill] sm:$0xff] }
 0x4f5   :  { %5039 = vmatpush1.bf16.msra.mxu0 %v8838_v23  ;;  %v8849_v23 = vld [vmem:[#allocation44_spill] sm:$0xff] }
 0x4f6   :  { %5041 = vmatprep.subr.bf16.mxu0 %v8839_v48  ;;  %v8850_v48 = vld [vmem:[#allocation47_spill] sm:$0xff] }
 0x4f9   :  { %5043 = vmatpush1.bf16.msra.mxu0 %v8840_v36  ;;  %v8851_v36 = vld [vmem:[#allocation48_spill] sm:$0xff] }
 0x4fa   :  { %5045 = vmatprep.subr.bf16.mxu0 %v8841_v6  ;;  %v8852_v6 = vld [vmem:[#allocation51_spill] sm:$0xff] }
 0x4fd   :  { %5047 = vmatpush1.bf16.msra.mxu0 %v8842_v18  ;;  %v8853_v18 = vld [vmem:[#allocation52_spill] sm:$0xff] }
 0x4fe   :  { %5049 = vmatprep.subr.bf16.mxu0 %v8843_v10  ;;  %v8854_v10 = vld [vmem:[#allocation55_spill] sm:$0xff] }
 0x501   :  { %5051 = vmatpush1.bf16.msra.mxu0 %v8844_v9  ;;  %v8855_v9 = vld [vmem:[#allocation56_spill] sm:$0xff] }
 0x502   :  { %5053 = vmatprep.subr.bf16.mxu0 %v8845_v29  ;;  %v8856_v29 = vld [vmem:[#allocation59_spill] sm:$0xff] }
 0x505   :  { %5055 = vmatpush1.bf16.msra.mxu0 %v8846_v51  ;;  %v8857_v51 = vld [vmem:[#allocation60_spill] sm:$0xff] }
 0x506   :  { %5057 = vmatprep.subr.bf16.mxu0 %v8847_v56  ;;  %v8858_v56 = vld [vmem:[#allocation63_spill] sm:$0xff] }
 0x509   :  { %5059 = vmatpush1.bf16.msra.mxu0 %v8848_v28  ;;  %v8859_v28 = vld [vmem:[#allocation64_spill] sm:$0xff] }
 0x50a   :  { %5061 = vmatprep.subr.bf16.mxu0 %v8849_v23  ;;  %v8860_v23 = vld [vmem:[#allocation67_spill] sm:$0xff] }
 0x50d   :  { %5063 = vmatpush1.bf16.msra.mxu0 %v8850_v48  ;;  %v8861_v48 = vld [vmem:[#allocation68_spill] sm:$0xff] }
 0x50e   :  { %5065 = vmatprep.subr.bf16.mxu0 %v8851_v36  ;;  %v8862_v36 = vld [vmem:[#allocation71_spill] sm:$0xff] }
 0x511   :  { %5067 = vmatpush1.bf16.msra.mxu0 %v8852_v6  ;;  %v8863_v6 = vld [vmem:[#allocation73_spill] sm:$0xff] }
 0x512   :  { %5069 = vmatprep.subr.bf16.mxu0 %v8853_v18  ;;  %v1406_v18 = vld [vmem:[#allocation3 + $0x30] sm:$0xff] }
 0x515   :  { %5071 = vmatpush1.bf16.msra.mxu0 %v8854_v10 }
 0x516   :  { %5073 = vmatprep.subr.bf16.mxu0 %v8855_v9 }
 0x519   :  { %5075 = vmatpush1.bf16.msra.mxu0 %v8856_v29  ;;  %v1407_v29 = vld [vmem:[#allocation3 + $0x38] sm:$0xff] }
 0x51a   :  { %5077 = vmatprep.subr.bf16.mxu0 %v8857_v51 }
 0x51d   :  { %5079 = vmatpush1.bf16.msra.mxu0 %v8858_v56 }
 0x51e   :  { %5081 = vmatprep.subr.bf16.mxu0 %v8859_v28 }
 0x521   :  { %5083 = vmatpush1.bf16.msra.mxu0 %v8860_v23 }
 0x522   :  { %5085 = vmatprep.subr.bf16.mxu0 %v8861_v48 }
 0x525   :  { %5087 = vmatpush1.bf16.msra.mxu0 %v8862_v36 }
 0x526   :  { %5153 = vmatprep.subr.bf16.mxu0 %v8863_v6 }
 0x57b   :  { %v1258_v10 = vpop.f32.mrb[8].mxu0  ;;  %v1329_v0 = vpop.f32.mrb[12].mxu1 }
 0x57c   :  { %v1409_v9 = vadd.f32 %v1406_v18, %v1258_v10  ;;  %v1260_v32 = vpop.f32.mrb[9].mxu0  ;;  %v7463_v5 = vpop.f32.mrb[13].mxu1  ;;  %v1423_v6 = vadd.f32 %v8777_v25, %v1329_v0 }
 0x57d   :  { %v1416_v56 = vadd.f32 %v1407_v29, %v1260_v32  ;;  %v7466_v29 = vpop.permute.xlu1 %1189  ;;  %v8871_v32 = vld [vmem:[#allocation33_spill] sm:$0xff] }
 0x57e   :  { %v3785_v51 = vmul.f32 -1.442695, %v1409_v9  ;;  %vm1191_vm11 = vcmp.eq.s32.totalorder %v7466_v29, 1  ;;  %v8899_v29 = vld [vmem:[#allocation122_spill] sm:$0xff] }
 0x57f   :  { %v3786_v28 = vmul.f32 -1.442695, %v1416_v56  ;;  %v8868_v56 = vld [vmem:[#allocation27_spill] sm:$0xff] }
 0x580   :  { %6344 = vpow2.f32 %v3785_v51 }
 0x581   :  { %6346 = vpow2.f32 %v3786_v28 }
 0x58a   :  { %v6345_v23 = vpop.eup %6344 }
 0x58b   :  { %v1413_v8 = vadd.f32 1.0, %v6345_v23  ;;  %v6347_v48 = vpop.eup %6346 }
 0x58c   :  { %v1420_v36 = vadd.f32 1.0, %v6347_v48  ;;  %v8865_v48 = vld [vmem:[#allocation21_spill] sm:$0xff] }
 0x58d   :  { %6348 = vrcp.f32 %v1413_v8  ;;  %v8864_v8 = vld [vmem:[#allocation20_spill] sm:$0xff] }
 0x58e   :  { %6350 = vrcp.f32 %v1420_v36  ;;  %v8866_v36 = vld [vmem:[#allocation24_spill] sm:$0xff] }
 0x597   :  { %v6349_v45 = vpop.eup %6348 }
 0x598   :  { %v1424_v49 = vmul.f32 %v6349_v45, %v1423_v6  ;;  %v6351_v18 = vpop.eup %6350  ;;  %v8870_v45 = vld [vmem:[#allocation30_spill] sm:$0xff] }
 0x599   :  { %v1427_v20 = vsub.f32 1.0, %v6351_v18  ;;  %v1429_v28 = vmul.f32 %v6351_v18, %v7300_v22  ;;  %v8875_v18 = vld [vmem:[#allocation41_spill] sm:$0xff] }
 0x59a   :  { %v1425_v10 = vadd.f32 %v1424_v49, %v1408_v53  ;;  %v8867_v49 = vld [vmem:[#allocation25_spill] sm:$0xff] }
 0x59b   :  { %v8869_v53 = vld [vmem:[#allocation29_spill] sm:$0xff] }
 0x59c   :  { %6352 = vtanh.f32 %v1425_v10  ;;  %v8874_v10 = vld [vmem:[#allocation38_spill] sm:$0xff] }
 0x5a6   :  { %v6353_v9 = vpop.eup %6352 }
 0x5a7   :  { %v1428_v51 = vmul.f32 %v6353_v9, %v1427_v20  ;;  %v8873_v20 = vld [vmem:[#allocation37_spill] sm:$0xff]  ;;  %v8876_v9 = vld [vmem:[#allocation42_spill] sm:$0xff] }
 0x5a9   :  { %v1430_v23 = vadd.f32 %v1429_v28, %v1428_v51  ;;  %v8877_v51 = vld [vmem:[#allocation45_spill] sm:$0xff]  ;;  %v8878_v28 = vld [vmem:[#allocation46_spill] sm:$0xff] }
 0x5ab   :  { %v7473_v25 = vsel %vm1191_vm11, %v1430_v23, %v7300_v22  ;;  %v8872_v22 = vld [vmem:[#allocation34_spill] sm:$0xff]  ;;  %v8879_v23 = vld [vmem:[#allocation49_spill] sm:$0xff] }
 0x5ac   :  { %1497 = vmatmul.mubr.f32.vlgmr.msra.gmra.mrb[14].mxu1 %v7473_v25 }
 0x5ad   :  { %5002 = vmatpush3.bf16.msra.mxu1 %v7095_v52  ;;  %4067 = vmatprep.mubr.msk.f32.mxu1 %vm6576_vm5, %v8655_v3 }
 0x5ae   :  { %5003 = vmatprep.subr.bf16.mxu1 %v8703_v46 }
 0x5b1   :  { %5005 = vmatpush3.bf16.msra.mxu1 %v7103_v62 }
 0x5b2   :  { %5006 = vmatprep.subr.bf16.mxu1 %v8703_v46 }
 0x5b5   :  { %5008 = vmatpush3.bf16.msra.mxu1 %v7109_v7 }
 0x5b6   :  { %5009 = vmatprep.subr.bf16.mxu1 %v8703_v46 }
 0x5b9   :  { %5011 = vmatpush3.bf16.msra.mxu1 %v7113_v59 }
 0x5ba   :  { %5012 = vmatprep.subr.bf16.mxu1 %v8703_v46 }
 0x5bb   :  { %v1400_v6 = vpop.f32.mrb[10].mxu0 }
 0x5bc   :  { %v1402_v0 = vpop.f32.mrb[11].mxu0 }
 0x5bd   :  { %5014 = vmatpush3.bf16.msra.mxu1 %v7117_v58 }
 0x5be   :  { %5015 = vmatprep.subr.bf16.mxu1 %v8703_v46 }
 0x5c1   :  { %5017 = vmatpush3.bf16.msra.mxu1 %v7121_v26 }
 0x5c2   :  { %5018 = vmatprep.subr.bf16.mxu1 %v8703_v46 }
 0x5c5   :  { %5020 = vmatpush3.bf16.msra.mxu1 %v7125_v12 }
 0x5c6   :  { %5021 = vmatprep.subr.bf16.mxu1 %v8703_v46 }
 0x5c9   :  { %5023 = vmatpush3.bf16.msra.mxu1 %v7129_v47 }
 0x5ca   :  { %5089 = vmatprep.subr.bf16.mxu1 %v8864_v8 }
 0x5cc   :  { %4068 = vmatmul.mubr.f32.vlgmr.msra.gmra.mrb[16].mxu1 %v7473_v25 }
 0x5cd   :  { %5091 = vmatpush1.bf16.msra.mxu1 %v8865_v48 }
 0x5ce   :  { %5093 = vmatprep.subr.bf16.mxu1 %v8866_v36 }
 0x5d1   :  { %5095 = vmatpush1.bf16.msra.mxu1 %v8867_v49 }
 0x5d2   :  { %5097 = vmatprep.subr.bf16.mxu1 %v8868_v56 }
 0x5d5   :  { %5099 = vmatpush1.bf16.msra.mxu1 %v8869_v53  ;;  %v8880_v53 = vld [vmem:[#allocation50_spill] sm:$0xff] }
 0x5d6   :  { %5101 = vmatprep.subr.bf16.mxu1 %v8870_v45  ;;  %v8881_v45 = vld [vmem:[#allocation53_spill] sm:$0xff] }
 0x5d9   :  { %5103 = vmatpush1.bf16.msra.mxu1 %v8871_v32  ;;  %v8882_v32 = vld [vmem:[#allocation54_spill] sm:$0xff] }
 0x5da   :  { %5105 = vmatprep.subr.bf16.mxu1 %v8872_v22  ;;  %v8883_v22 = vld [vmem:[#allocation57_spill] sm:$0xff] }
 0x5dd   :  { %5107 = vmatpush1.bf16.msra.mxu1 %v8873_v20  ;;  %v8884_v20 = vld [vmem:[#allocation58_spill] sm:$0xff] }
 0x5de   :  { %5109 = vmatprep.subr.bf16.mxu1 %v8874_v10  ;;  %v8885_v10 = vld [vmem:[#allocation61_spill] sm:$0xff] }
 0x5e1   :  { %5111 = vmatpush1.bf16.msra.mxu1 %v8875_v18  ;;  %v8886_v18 = vld [vmem:[#allocation62_spill] sm:$0xff] }
 0x5e2   :  { %5113 = vmatprep.subr.bf16.mxu1 %v8876_v9  ;;  %v8887_v9 = vld [vmem:[#allocation65_spill] sm:$0xff] }
 0x5e5   :  { %5115 = vmatpush1.bf16.msra.mxu1 %v8877_v51  ;;  %v8888_v51 = vld [vmem:[#allocation66_spill] sm:$0xff] }
 0x5e6   :  { %5117 = vmatprep.subr.bf16.mxu1 %v8878_v28  ;;  %v8889_v28 = vld [vmem:[#allocation69_spill] sm:$0xff] }
 0x5e9   :  { %5119 = vmatpush1.bf16.msra.mxu1 %v8879_v23  ;;  %v8890_v23 = vld [vmem:[#allocation70_spill] sm:$0xff] }
 0x5ea   :  { %5121 = vmatprep.subr.bf16.mxu1 %v8880_v53  ;;  %v8891_v53 = vld [vmem:[#allocation72_spill] sm:$0xff] }
 0x5ed   :  { %5123 = vmatpush1.bf16.msra.mxu1 %v8881_v45  ;;  %v8892_v45 = vld [vmem:[#allocation74_spill] sm:$0xff] }
 0x5ee   :  { %5125 = vmatprep.subr.bf16.mxu1 %v8882_v32  ;;  %v8893_v32 = vld [vmem:[#allocation76_spill] sm:$0xff] }
 0x5f1   :  { %5127 = vmatpush1.bf16.msra.mxu1 %v8883_v22  ;;  %v8894_v22 = vld [vmem:[#allocation78_spill] sm:$0xff] }
 0x5f2   :  { %5129 = vmatprep.subr.bf16.mxu1 %v8884_v20  ;;  %v8895_v20 = vld [vmem:[#allocation80_spill] sm:$0xff] }
 0x5f5   :  { %5131 = vmatpush1.bf16.msra.mxu1 %v8885_v10  ;;  %v8896_v10 = vld [vmem:[#allocation92_spill] sm:$0xff] }
 0x5f6   :  { %5133 = vmatprep.subr.bf16.mxu1 %v8886_v18 }
 0x5f9   :  { %5135 = vmatpush1.bf16.msra.mxu1 %v8887_v9 }
 0x5fa   :  { %5137 = vmatprep.subr.bf16.mxu1 %v8888_v51 }
 0x5fd   :  { %5139 = vmatpush1.bf16.msra.mxu1 %v8889_v28 }
 0x5fe   :  { %5141 = vmatprep.subr.bf16.mxu1 %v8890_v23 }
 0x601   :  { %5143 = vmatpush1.bf16.msra.mxu1 %v8891_v53 }
 0x602   :  { %5145 = vmatprep.subr.bf16.mxu1 %v8892_v45 }
 0x605   :  { %5147 = vmatpush1.bf16.msra.mxu1 %v8893_v32 }
 0x606   :  { %5149 = vmatprep.subr.bf16.mxu1 %v8894_v22 }
 0x609   :  { %5151 = vmatpush1.bf16.msra.mxu1 %v8895_v20  ;;  %v1587_v20 = vadd.f32 %v7182_v24, %v1402_v0  ;;  %v8900_v0 = vld [vmem:[#allocation97_spill] sm:$0xff] }
 0x60a   :  { %5217 = vmatprep.subr.bf16.mxu1 %v8896_v10 }
 0x67f   :  { %v1498_v18 = vpop.f32.mrb[14].mxu1 }
 0x680   :  { %v1499_v9 = vadd.f32 %v1498_v18, %v8810_v31  ;;  %v1500_v51 = vpop.f32.mrb[15].mxu1 }
 0x681   :  { %v1501_v28 = vadd.f32 %v1500_v51, %v8811_v4 }
 0x682   :  { %v1573_v23 = vadd.f32 %v1499_v9, %v7463_v5  ;;  %v8906_v9 = vld [vmem:[#allocation109_spill] sm:$0xff] }
 0x683   :  { %v1580_v56 = vadd.f32 %v1501_v28, %v1400_v6  ;;  %v8907_v28 = vld [vmem:[#allocation111_spill] sm:$0xff] }
 0x684   :  { %v3787_v53 = vmul.f32 -1.442695, %v1573_v23  ;;  %v8908_v23 = vld [vmem:[#allocation113_spill] sm:$0xff] }
 0x685   :  { %v3788_v45 = vmul.f32 -1.442695, %v1580_v56 }
 0x686   :  { %6354 = vpow2.f32 %v3787_v53 }
 0x687   :  { %6356 = vpow2.f32 %v3788_v45 }
 0x690   :  { %v6355_v32 = vpop.eup %6354 }
 0x691   :  { %v1577_v49 = vadd.f32 1.0, %v6355_v32  ;;  %v6357_v22 = vpop.eup %6356 }
 0x692   :  { %v1584_v10 = vadd.f32 1.0, %v6357_v22  ;;  %v8903_v22 = vld [vmem:[#allocation103_spill] sm:$0xff] }
 0x693   :  { %6358 = vrcp.f32 %v1577_v49 }
 0x694   :  { %6360 = vrcp.f32 %v1584_v10  ;;  %v8905_v10 = vld [vmem:[#allocation107_spill] sm:$0xff] }
 0x69d   :  { %v6359_v36 = vpop.eup %6358 }
 0x69e   :  { %v1588_v48 = vmul.f32 %v6359_v36, %v1587_v20  ;;  %v6361_v6 = vpop.eup %6360  ;;  %v8902_v36 = vld [vmem:[#allocation101_spill] sm:$0xff] }
 0x69f   :  { %v1569_v18 = vpop.f32.mrb[16].mxu1  ;;  %v1591_v53 = vsub.f32 1.0, %v6361_v6  ;;  %v1593_v32 = vmul.f32 %v6361_v6, %v7374_v16  ;;  %v8904_v20 = vld [vmem:[#allocation105_spill] sm:$0xff] }
 0x6a0   :  { %v1570_v51 = vadd.f32 %v1569_v18, %v7185_v1  ;;  %v4069_v4 = vpop.f32.mrb[17].mxu1  ;;  %v8909_v18 = vld [vmem:[#allocation115_spill] sm:$0xff]  ;;  %v8912_v6 = vld [vmem:[#allocation121_spill] sm:$0xff] }
 0x6a1   :  { %v8897_v4 = vld [vmem:[#allocation112_spill] sm:$0xff] }
 0x6a2   :  { %v1589_v5 = vadd.f32 %v1588_v48, %v1570_v51  ;;  %v8901_v48 = vld [vmem:[#allocation99_spill] sm:$0xff]  ;;  %v8910_v51 = vld [vmem:[#allocation117_spill] sm:$0xff] }
 0x6a4   :  { %6362 = vtanh.f32 %v1589_v5  ;;  %v8911_v5 = vld [vmem:[#allocation119_spill] sm:$0xff] }
 0x6ae   :  { %v6363_v56 = vpop.eup %6362 }
 0x6af   :  { %v1592_v45 = vmul.f32 %v6363_v56, %v1591_v53  ;;  %v8913_v53 = vld [vmem:[#allocation123_spill] sm:$0xff]  ;;  %v8914_v56 = vld [vmem:[#allocation124_spill] sm:$0xff] }
 0x6b1   :  { %v1594_v49 = vadd.f32 %v1593_v32, %v1592_v45  ;;  %v8915_v45 = vld [vmem:[#allocation13_spill] sm:$0xff]  ;;  %v8916_v32 = vld [vmem:[#allocation14_spill] sm:$0xff] }
 0x6b3   :  { %v7536_v24 = vsel %vm1191_vm11, %v1594_v49, %v7374_v16  ;;  %v8898_v16 = vld [vmem:[#allocation95_spill] sm:$0xff] }
 0x6b4   :  { %1666 = vmatprep.mubr.f32.mxu0 %v7536_v24  ;;  %1737 = vmatprep.mubr.f32.mxu1 %v7536_v24  ;;  %v8917_v49 = vld [vmem:[#allocation15_spill] sm:$0xff] }
 0x6b5   :  { %1667 = vmatmul.mubr.f32.vlgmr.msra.gmra.mrb[12].mxu0 %v7473_v25  ;;  %1738 = vmatmul.mubr.f32.vlgmr.msra.gmra.mrb[18].mxu1 %v7473_v25 }
 0x6b6   :  { %5155 = vmatpush1.bf16.msra.mxu0 %v8728_v41  ;;  %1808 = vmatprep.mubr.f32.mxu0 %v7536_v24 }
 0x6b7   :  { %5157 = vmatprep.subr.bf16.mxu0 %v8729_v35  ;;  %5219 = vmatpush1.bf16.msra.mxu1 %v8730_v2 }
 0x6b8   :  { %5221 = vmatprep.subr.bf16.mxu1 %v8731_v13  ;;  %1906 = vmatprep.mubr.f32.mxu1 %v8655_v3 }
 0x6ba   :  { %5159 = vmatpush1.bf16.msra.mxu0 %v8732_v19 }
 0x6bb   :  { %5161 = vmatprep.subr.bf16.mxu0 %v8733_v60  ;;  %5223 = vmatpush1.bf16.msra.mxu1 %v8812_v43 }
 0x6bc   :  { %5225 = vmatprep.subr.bf16.mxu1 %v8813_v61 }
 0x6be   :  { %5163 = vmatpush1.bf16.msra.mxu0 %v8814_v34 }
 0x6bf   :  { %5165 = vmatprep.subr.bf16.mxu0 %v8815_v37  ;;  %5227 = vmatpush1.bf16.msra.mxu1 %v8816_v39 }
 0x6c0   :  { %5229 = vmatprep.subr.bf16.mxu1 %v8817_v50 }
 0x6c2   :  { %5167 = vmatpush1.bf16.msra.mxu0 %v8740_v42 }
 0x6c3   :  { %5169 = vmatprep.subr.bf16.mxu0 %v8818_v15  ;;  %5231 = vmatpush1.bf16.msra.mxu1 %v8819_v40 }
 0x6c4   :  { %5233 = vmatprep.subr.bf16.mxu1 %v8743_v44 }
 0x6c6   :  { %5171 = vmatpush1.bf16.msra.mxu0 %v8744_v27 }
 0x6c7   :  { %5173 = vmatprep.subr.bf16.mxu0 %v8820_v21  ;;  %5235 = vmatpush1.bf16.msra.mxu1 %v8821_v14 }
 0x6c8   :  { %5237 = vmatprep.subr.bf16.mxu1 %v8897_v4 }
 0x6ca   :  { %5175 = vmatpush1.bf16.msra.mxu0 %v8822_v38 }
 0x6cb   :  { %5177 = vmatprep.subr.bf16.mxu0 %v8823_v11  ;;  %5239 = vmatpush1.bf16.msra.mxu1 %v8824_v54 }
 0x6cc   :  { %5241 = vmatprep.subr.bf16.mxu1 %v8825_v17 }
 0x6ce   :  { %5179 = vmatpush1.bf16.msra.mxu0 %v8826_v55 }
 0x6cf   :  { %5181 = vmatprep.subr.bf16.mxu0 %v8827_v57  ;;  %5243 = vmatpush1.bf16.msra.mxu1 %v8828_v33 }
 0x6d0   :  { %5245 = vmatprep.subr.bf16.mxu1 %v8829_v63 }
 0x6d2   :  { %5183 = vmatpush1.bf16.msra.mxu0 %v8830_v30 }
 0x6d3   :  { %5185 = vmatprep.subr.bf16.mxu0 %v8898_v16  ;;  %5247 = vmatpush1.bf16.msra.mxu1 %v8899_v29 }
 0x6d4   :  { %5248 = vmatprep.subr.bf16.mxu1 %v8703_v46 }
 0x6d6   :  { %5187 = vmatpush1.bf16.msra.mxu0 %v8900_v0 }
 0x6d7   :  { %5189 = vmatprep.subr.bf16.mxu0 %v8901_v48 }
 0x6da   :  { %5191 = vmatpush1.bf16.msra.mxu0 %v8902_v36  ;;  %v1818_v36 = vld [vmem:[#allocation3 + $0x58] sm:$0xff] }
 0x6db   :  { %5193 = vmatprep.subr.bf16.mxu0 %v8903_v22 }
 0x6de   :  { %5195 = vmatpush1.bf16.msra.mxu0 %v8904_v20 }
 0x6df   :  { %5197 = vmatprep.subr.bf16.mxu0 %v8905_v10 }
 0x6e2   :  { %5199 = vmatpush1.bf16.msra.mxu0 %v8906_v9 }
 0x6e3   :  { %5201 = vmatprep.subr.bf16.mxu0 %v8907_v28  ;;  %v8926_v28 = vld [vmem:[#allocation31_spill] sm:$0xff] }
 0x6e6   :  { %5203 = vmatpush1.bf16.msra.mxu0 %v8908_v23  ;;  %v8918_v23 = vld [vmem:[#allocation16_spill] sm:$0xff] }
 0x6e7   :  { %5205 = vmatprep.subr.bf16.mxu0 %v8909_v18  ;;  %v8919_v18 = vld [vmem:[#allocation17_spill] sm:$0xff] }
 0x6ea   :  { %5207 = vmatpush1.bf16.msra.mxu0 %v8910_v51  ;;  %v8920_v51 = vld [vmem:[#allocation18_spill] sm:$0xff] }
 0x6eb   :  { %5209 = vmatprep.subr.bf16.mxu0 %v8911_v5  ;;  %v8921_v5 = vld [vmem:[#allocation19_spill] sm:$0xff] }
 0x6ee   :  { %5211 = vmatpush1.bf16.msra.mxu0 %v8912_v6  ;;  %v8922_v6 = vld [vmem:[#allocation22_spill] sm:$0xff] }
 0x6ef   :  { %5213 = vmatprep.subr.bf16.mxu0 %v8913_v53  ;;  %v8923_v53 = vld [vmem:[#allocation23_spill] sm:$0xff] }
 0x6f2   :  { %5215 = vmatpush1.bf16.msra.mxu0 %v8914_v56  ;;  %v8924_v56 = vld [vmem:[#allocation26_spill] sm:$0xff] }
 0x6f3   :  { %5273 = vmatprep.subr.bf16.mxu0 %v8915_v45  ;;  %v8925_v45 = vld [vmem:[#allocation28_spill] sm:$0xff] }
 0x6f5   :  { %1809 = vmatmul.mubr.f32.vlgmr.msra.gmra.mrb[14].mxu0 %v7473_v25 }
 0x6f6   :  { %5275 = vmatpush1.bf16.msra.mxu0 %v8916_v32  ;;  %v8927_v32 = vld [vmem:[#allocation32_spill] sm:$0xff] }
 0x6f7   :  { %5277 = vmatprep.subr.bf16.mxu0 %v8917_v49  ;;  %v8928_v49 = vld [vmem:[#allocation35_spill] sm:$0xff] }
 0x6fa   :  { %5279 = vmatpush1.bf16.msra.mxu0 %v8918_v23  ;;  %v8929_v23 = vld [vmem:[#allocation36_spill] sm:$0xff] }
 0x6fb   :  { %5281 = vmatprep.subr.bf16.mxu0 %v8919_v18  ;;  %v8930_v18 = vld [vmem:[#allocation39_spill] sm:$0xff] }
 0x6fe   :  { %5283 = vmatpush1.bf16.msra.mxu0 %v8920_v51  ;;  %v8931_v51 = vld [vmem:[#allocation40_spill] sm:$0xff] }
 0x6ff   :  { %5285 = vmatprep.subr.bf16.mxu0 %v8921_v5  ;;  %v8932_v5 = vld [vmem:[#allocation43_spill] sm:$0xff] }
 0x702   :  { %5287 = vmatpush1.bf16.msra.mxu0 %v8922_v6  ;;  %v8933_v6 = vld [vmem:[#allocation44_spill] sm:$0xff] }
 0x703   :  { %5289 = vmatprep.subr.bf16.mxu0 %v8923_v53  ;;  %v8934_v53 = vld [vmem:[#allocation47_spill] sm:$0xff] }
 0x706   :  { %5291 = vmatpush1.bf16.msra.mxu0 %v8924_v56  ;;  %v8935_v56 = vld [vmem:[#allocation48_spill] sm:$0xff] }
 0x707   :  { %5293 = vmatprep.subr.bf16.mxu0 %v8925_v45  ;;  %v8936_v45 = vld [vmem:[#allocation51_spill] sm:$0xff] }
 0x70a   :  { %5295 = vmatpush1.bf16.msra.mxu0 %v8926_v28  ;;  %v8937_v28 = vld [vmem:[#allocation52_spill] sm:$0xff] }
 0x70b   :  { %5297 = vmatprep.subr.bf16.mxu0 %v8927_v32  ;;  %v8938_v32 = vld [vmem:[#allocation55_spill] sm:$0xff] }
 0x70e   :  { %5299 = vmatpush1.bf16.msra.mxu0 %v8928_v49  ;;  %v8939_v49 = vld [vmem:[#allocation56_spill] sm:$0xff] }
 0x70f   :  { %5301 = vmatprep.subr.bf16.mxu0 %v8929_v23  ;;  %v8940_v23 = vld [vmem:[#allocation59_spill] sm:$0xff] }
 0x712   :  { %5303 = vmatpush1.bf16.msra.mxu0 %v8930_v18  ;;  %v8941_v18 = vld [vmem:[#allocation60_spill] sm:$0xff] }
 0x713   :  { %5305 = vmatprep.subr.bf16.mxu0 %v8931_v51  ;;  %v8942_v51 = vld [vmem:[#allocation63_spill] sm:$0xff] }
 0x716   :  { %5307 = vmatpush1.bf16.msra.mxu0 %v8932_v5  ;;  %v8943_v5 = vld [vmem:[#allocation64_spill] sm:$0xff] }
 0x717   :  { %5309 = vmatprep.subr.bf16.mxu0 %v8933_v6  ;;  %v8944_v6 = vld [vmem:[#allocation67_spill] sm:$0xff] }
 0x71a   :  { %5311 = vmatpush1.bf16.msra.mxu0 %v8934_v53  ;;  %v8945_v53 = vld [vmem:[#allocation68_spill] sm:$0xff] }
 0x71b   :  { %5313 = vmatprep.subr.bf16.mxu0 %v8935_v56  ;;  %v8946_v56 = vld [vmem:[#allocation71_spill] sm:$0xff] }
 0x71e   :  { %5315 = vmatpush1.bf16.msra.mxu0 %v8936_v45  ;;  %v8947_v45 = vld [vmem:[#allocation73_spill] sm:$0xff] }
 0x71f   :  { %5317 = vmatprep.subr.bf16.mxu0 %v8937_v28  ;;  %v1816_v28 = vld [vmem:[#allocation3 + $0x48] sm:$0xff] }
 0x722   :  { %5319 = vmatpush1.bf16.msra.mxu0 %v8938_v32 }
 0x723   :  { %5321 = vmatprep.subr.bf16.mxu0 %v8939_v49 }
 0x726   :  { %5323 = vmatpush1.bf16.msra.mxu0 %v8940_v23  ;;  %v1817_v23 = vld [vmem:[#allocation3 + $0x50] sm:$0xff] }
 0x727   :  { %5325 = vmatprep.subr.bf16.mxu0 %v8941_v18 }
 0x72a   :  { %5327 = vmatpush1.bf16.msra.mxu0 %v8942_v51 }
 0x72b   :  { %5329 = vmatprep.subr.bf16.mxu0 %v8943_v5 }
 0x72e   :  { %5331 = vmatpush1.bf16.msra.mxu0 %v8944_v6 }
 0x72f   :  { %5333 = vmatprep.subr.bf16.mxu0 %v8945_v53 }
 0x732   :  { %5335 = vmatpush1.bf16.msra.mxu0 %v8946_v56 }
 0x733   :  { %5401 = vmatprep.subr.bf16.mxu0 %v8947_v45  ;;  %v7630_v45 = vld [vmem:[%s8318_s3] ss:$0 sm:$0xff] }
 0x788   :  { %v1668_v32 = vpop.f32.mrb[12].mxu0  ;;  %v1739_v9 = vpop.f32.mrb[18].mxu1 }
 0x789   :  { %v1819_v49 = vadd.f32 %v1816_v28, %v1668_v32  ;;  %v1670_v10 = vpop.f32.mrb[13].mxu0  ;;  %v7625_v20 = vpop.f32.mrb[19].mxu1  ;;  %v1833_v28 = vadd.f32 %v7630_v45, %v1739_v9 }
 0x78a   :  { %v1826_v51 = vadd.f32 %v1817_v23, %v1670_v10 }
 0x78b   :  { %v3789_v18 = vmul.f32 -1.442695, %v1819_v49  ;;  %v8950_v49 = vld [vmem:[#allocation25_spill] sm:$0xff] }
 0x78c   :  { %v3790_v5 = vmul.f32 -1.442695, %v1826_v51 }
 0x78d   :  { %6364 = vpow2.f32 %v3789_v18 }
 0x78e   :  { %6366 = vpow2.f32 %v3790_v5 }
 0x797   :  { %v6365_v6 = vpop.eup %6364 }
 0x798   :  { %v1823_v22 = vadd.f32 1.0, %v6365_v6  ;;  %v6367_v53 = vpop.eup %6366  ;;  %v7634_v6 = vpop.permute.xlu1 %1599 }
 0x799   :  { %v1830_v56 = vadd.f32 1.0, %v6367_v53  ;;  %vm1601_vm12 = vcmp.eq.s32.totalorder %v7634_v6, 1  ;;  %v8983_v6 = vld [vmem:[#allocation103_spill] sm:$0xff] }
 0x79a   :  { %6368 = vrcp.f32 %v1823_v22 }
 0x79b   :  { %6370 = vrcp.f32 %v1830_v56  ;;  %v8949_v56 = vld [vmem:[#allocation24_spill] sm:$0xff] }
 0x7a4   :  { %v6369_v32 = vpop.eup %6368 }
 0x7a5   :  { %v1834_v48 = vmul.f32 %v6369_v32, %v1833_v28  ;;  %v6371_v23 = vpop.eup %6370  ;;  %v8951_v28 = vld [vmem:[#allocation27_spill] sm:$0xff]  ;;  %v8952_v32 = vld [vmem:[#allocation29_spill] sm:$0xff] }
 0x7a6   :  { %v1837_v18 = vsub.f32 1.0, %v6371_v23  ;;  %v1839_v22 = vmul.f32 %v6371_v23, %v7473_v25  ;;  %v8954_v23 = vld [vmem:[#allocation33_spill] sm:$0xff] }
 0x7a7   :  { %v1835_v10 = vadd.f32 %v1834_v48, %v1818_v36  ;;  %v8948_v36 = vld [vmem:[#allocation21_spill] sm:$0xff] }
 0x7a9   :  { %6372 = vtanh.f32 %v1835_v10  ;;  %v8953_v10 = vld [vmem:[#allocation30_spill] sm:$0xff] }
 0x7b3   :  { %v6373_v51 = vpop.eup %6372 }
 0x7b4   :  { %v1838_v5 = vmul.f32 %v6373_v51, %v1837_v18  ;;  %v8955_v18 = vld [vmem:[#allocation34_spill] sm:$0xff]  ;;  %v8956_v51 = vld [vmem:[#allocation37_spill] sm:$0xff] }
 0x7b6   :  { %v1840_v53 = vadd.f32 %v1839_v22, %v1838_v5  ;;  %v8957_v5 = vld [vmem:[#allocation38_spill] sm:$0xff]  ;;  %v8958_v22 = vld [vmem:[#allocation41_spill] sm:$0xff] }
 0x7b8   :  { %v7640_v9 = vsel %vm1601_vm12, %v1840_v53, %v7473_v25  ;;  %v8959_v53 = vld [vmem:[#allocation42_spill] sm:$0xff] }
 0x7b9   :  { %1907 = vmatmul.mubr.f32.vlgmr.msra.gmra.mrb[20].mxu1 %v7640_v9 }
 0x7ba   :  { %5250 = vmatpush3.bf16.msra.mxu1 %v7095_v52  ;;  %4102 = vmatprep.mubr.msk.f32.mxu1 %vm6576_vm5, %v8655_v3 }
 0x7bb   :  { %5251 = vmatprep.subr.bf16.mxu1 %v8703_v46 }
 0x7be   :  { %5253 = vmatpush3.bf16.msra.mxu1 %v7103_v62 }
 0x7bf   :  { %5254 = vmatprep.subr.bf16.mxu1 %v8703_v46 }
 0x7c2   :  { %5256 = vmatpush3.bf16.msra.mxu1 %v7109_v7 }
 0x7c3   :  { %5257 = vmatprep.subr.bf16.mxu1 %v8703_v46 }
 0x7c6   :  { %5259 = vmatpush3.bf16.msra.mxu1 %v7113_v59 }
 0x7c7   :  { %5260 = vmatprep.subr.bf16.mxu1 %v8703_v46 }
 0x7c8   :  { %v1810_v25 = vpop.f32.mrb[14].mxu0 }
 0x7c9   :  { %v1812_v48 = vpop.f32.mrb[15].mxu0 }
 0x7ca   :  { %5262 = vmatpush3.bf16.msra.mxu1 %v7117_v58 }
 0x7cb   :  { %5263 = vmatprep.subr.bf16.mxu1 %v8703_v46 }
 0x7ce   :  { %5265 = vmatpush3.bf16.msra.mxu1 %v7121_v26 }
 0x7cf   :  { %5266 = vmatprep.subr.bf16.mxu1 %v8703_v46 }
 0x7d2   :  { %5268 = vmatpush3.bf16.msra.mxu1 %v7125_v12 }
 0x7d3   :  { %5269 = vmatprep.subr.bf16.mxu1 %v8703_v46 }
 0x7d6   :  { %5271 = vmatpush3.bf16.msra.mxu1 %v7129_v47 }
 0x7d7   :  { %5337 = vmatprep.subr.bf16.mxu1 %v8864_v8 }
 0x7d9   :  { %4103 = vmatmul.mubr.f32.vlgmr.msra.gmra.mrb[22].mxu1 %v7640_v9 }
 0x7da   :  { %5339 = vmatpush1.bf16.msra.mxu1 %v8948_v36  ;;  %v8980_v36 = vld [vmem:[#allocation131_spill] sm:$0xff] }
 0x7db   :  { %5341 = vmatprep.subr.bf16.mxu1 %v8949_v56  ;;  %v8960_v56 = vld [vmem:[#allocation45_spill] sm:$0xff] }
 0x7de   :  { %5343 = vmatpush1.bf16.msra.mxu1 %v8950_v49  ;;  %v8961_v49 = vld [vmem:[#allocation46_spill] sm:$0xff] }
 0x7df   :  { %5345 = vmatprep.subr.bf16.mxu1 %v8951_v28  ;;  %v8962_v28 = vld [vmem:[#allocation49_spill] sm:$0xff] }
 0x7e2   :  { %5347 = vmatpush1.bf16.msra.mxu1 %v8952_v32  ;;  %v8963_v32 = vld [vmem:[#allocation50_spill] sm:$0xff] }
 0x7e3   :  { %5349 = vmatprep.subr.bf16.mxu1 %v8953_v10  ;;  %v8964_v10 = vld [vmem:[#allocation53_spill] sm:$0xff] }
 0x7e6   :  { %5351 = vmatpush1.bf16.msra.mxu1 %v8954_v23  ;;  %v8965_v23 = vld [vmem:[#allocation54_spill] sm:$0xff] }
 0x7e7   :  { %5353 = vmatprep.subr.bf16.mxu1 %v8955_v18  ;;  %v8966_v18 = vld [vmem:[#allocation57_spill] sm:$0xff] }
 0x7ea   :  { %5355 = vmatpush1.bf16.msra.mxu1 %v8956_v51  ;;  %v8967_v51 = vld [vmem:[#allocation58_spill] sm:$0xff] }
 0x7eb   :  { %5357 = vmatprep.subr.bf16.mxu1 %v8957_v5  ;;  %v8968_v5 = vld [vmem:[#allocation61_spill] sm:$0xff] }
 0x7ee   :  { %5359 = vmatpush1.bf16.msra.mxu1 %v8958_v22  ;;  %v8969_v22 = vld [vmem:[#allocation62_spill] sm:$0xff] }
 0x7ef   :  { %5361 = vmatprep.subr.bf16.mxu1 %v8959_v53  ;;  %v8970_v53 = vld [vmem:[#allocation65_spill] sm:$0xff] }
 0x7f2   :  { %5363 = vmatpush1.bf16.msra.mxu1 %v8960_v56  ;;  %v8971_v56 = vld [vmem:[#allocation66_spill] sm:$0xff] }
 0x7f3   :  { %5365 = vmatprep.subr.bf16.mxu1 %v8961_v49  ;;  %v8972_v49 = vld [vmem:[#allocation69_spill] sm:$0xff] }
 0x7f6   :  { %5367 = vmatpush1.bf16.msra.mxu1 %v8962_v28  ;;  %v8973_v28 = vld [vmem:[#allocation70_spill] sm:$0xff] }
 0x7f7   :  { %5369 = vmatprep.subr.bf16.mxu1 %v8963_v32  ;;  %v8974_v32 = vld [vmem:[#allocation72_spill] sm:$0xff] }
 0x7fa   :  { %5371 = vmatpush1.bf16.msra.mxu1 %v8964_v10  ;;  %v8975_v10 = vld [vmem:[#allocation74_spill] sm:$0xff] }
 0x7fb   :  { %5373 = vmatprep.subr.bf16.mxu1 %v8965_v23  ;;  %v8976_v23 = vld [vmem:[#allocation76_spill] sm:$0xff] }
 0x7fe   :  { %5375 = vmatpush1.bf16.msra.mxu1 %v8966_v18  ;;  %v8977_v18 = vld [vmem:[#allocation78_spill] sm:$0xff] }
 0x7ff   :  { %5377 = vmatprep.subr.bf16.mxu1 %v8967_v51  ;;  %v8978_v51 = vld [vmem:[#allocation80_spill] sm:$0xff] }
 0x802   :  { %5379 = vmatpush1.bf16.msra.mxu1 %v8968_v5  ;;  %v8979_v5 = vld [vmem:[#allocation92_spill] sm:$0xff] }
 0x803   :  { %5381 = vmatprep.subr.bf16.mxu1 %v8969_v22 }
 0x806   :  { %5383 = vmatpush1.bf16.msra.mxu1 %v8970_v53 }
 0x807   :  { %5385 = vmatprep.subr.bf16.mxu1 %v8971_v56 }
 0x80a   :  { %5387 = vmatpush1.bf16.msra.mxu1 %v8972_v49 }
 0x80b   :  { %5389 = vmatprep.subr.bf16.mxu1 %v8973_v28 }
 0x80e   :  { %5391 = vmatpush1.bf16.msra.mxu1 %v8974_v32 }
 0x80f   :  { %5393 = vmatprep.subr.bf16.mxu1 %v8975_v10 }
 0x812   :  { %5395 = vmatpush1.bf16.msra.mxu1 %v8976_v23 }
 0x813   :  { %5397 = vmatprep.subr.bf16.mxu1 %v8977_v18 }
 0x816   :  { %5399 = vmatpush1.bf16.msra.mxu1 %v8978_v51 }
 0x817   :  { %5465 = vmatprep.subr.bf16.mxu1 %v8979_v5  ;;  %v7700_v5 = vld [vmem:[%s8321_s6] ss:$0 sm:$0xff] }
 0x88c   :  { %v1908_v22 = vpop.f32.mrb[20].mxu1 }
 0x88d   :  { %v1909_v53 = vadd.f32 %v1908_v22, %v8810_v31  ;;  %v1910_v56 = vpop.f32.mrb[21].mxu1  ;;  %v1997_v22 = vadd.f32 %v7700_v5, %v1812_v48 }
 0x88e   :  { %v1911_v49 = vadd.f32 %v1910_v56, %v8980_v36 }
 0x88f   :  { %v1983_v28 = vadd.f32 %v1909_v53, %v7625_v20 }
 0x890   :  { %v1990_v8 = vadd.f32 %v1911_v49, %v1810_v25 }
 0x891   :  { %v3791_v32 = vmul.f32 -1.442695, %v1983_v28 }
 0x892   :  { %v3792_v10 = vmul.f32 -1.442695, %v1990_v8 }
 0x893   :  { %6374 = vpow2.f32 %v3791_v32 }
 0x894   :  { %6376 = vpow2.f32 %v3792_v10 }
 0x89d   :  { %v6375_v23 = vpop.eup %6374 }
 0x89e   :  { %v1987_v47 = vadd.f32 1.0, %v6375_v23  ;;  %v6377_v18 = vpop.eup %6376 }
 0x89f   :  { %v1994_v31 = vadd.f32 1.0, %v6377_v18  ;;  %v8985_v18 = vld [vmem:[#allocation107_spill] sm:$0xff] }
 0x8a0   :  { %6378 = vrcp.f32 %v1987_v47 }
 0x8a1   :  { %6380 = vrcp.f32 %v1994_v31  ;;  %v8981_v31 = vld [vmem:[#allocation99_spill] sm:$0xff] }
 0x8aa   :  { %v6379_v56 = vpop.eup %6378 }
 0x8ab   :  { %v1998_v36 = vmul.f32 %v6379_v56, %v1997_v22  ;;  %v6381_v28 = vpop.eup %6380  ;;  %v8986_v22 = vld [vmem:[#allocation109_spill] sm:$0xff]  ;;  %v8987_v56 = vld [vmem:[#allocation111_spill] sm:$0xff] }
 0x8ac   :  { %v1979_v20 = vpop.f32.mrb[22].mxu1  ;;  %v2001_v47 = vsub.f32 1.0, %v6381_v28  ;;  %v2003_v23 = vmul.f32 %v6381_v28, %v7536_v24  ;;  %v8992_v28 = vld [vmem:[#allocation121_spill] sm:$0xff] }
 0x8ad   :  { %v1980_v25 = vadd.f32 %v1979_v20, %v7185_v1  ;;  %v4104_v8 = vpop.f32.mrb[23].mxu1  ;;  %v8988_v20 = vld [vmem:[#allocation113_spill] sm:$0xff] }
 0x8ae   :  { %v8990_v8 = vld [vmem:[#allocation117_spill] sm:$0xff] }
 0x8af   :  { %v1999_v49 = vadd.f32 %v1998_v36, %v1980_v25  ;;  %v8984_v36 = vld [vmem:[#allocation105_spill] sm:$0xff]  ;;  %v8989_v25 = vld [vmem:[#allocation115_spill] sm:$0xff] }
 0x8b1   :  { %6382 = vtanh.f32 %v1999_v49  ;;  %v8991_v49 = vld [vmem:[#allocation119_spill] sm:$0xff] }
 0x8bb   :  { %v6383_v32 = vpop.eup %6382 }
 0x8bc   :  { %v2002_v10 = vmul.f32 %v6383_v32, %v2001_v47  ;;  %v8993_v47 = vld [vmem:[#allocation123_spill] sm:$0xff]  ;;  %v8994_v32 = vld [vmem:[#allocation124_spill] sm:$0xff] }
 0x8be   :  { %v2004_v53 = vadd.f32 %v2003_v23, %v2002_v10  ;;  %v8995_v10 = vld [vmem:[#allocation13_spill] sm:$0xff]  ;;  %v8996_v23 = vld [vmem:[#allocation14_spill] sm:$0xff] }
 0x8c0   :  { %v7708_v48 = vsel %vm1601_vm12, %v2004_v53, %v7536_v24  ;;  %v8982_v24 = vld [vmem:[#allocation101_spill] sm:$0xff]  ;;  %v8997_v53 = vld [vmem:[#allocation15_spill] sm:$0xff] }
 0x8c1   :  { %2076 = vmatprep.mubr.f32.mxu0 %v7708_v48  ;;  %2147 = vmatprep.mubr.f32.mxu1 %v7708_v48 }
 0x8c2   :  { %2077 = vmatmul.mubr.f32.vlgmr.msra.gmra.mrb[16].mxu0 %v7640_v9  ;;  %2148 = vmatmul.mubr.f32.vlgmr.msra.gmra.mrb[24].mxu1 %v7640_v9 }
 0x8c3   :  { %5403 = vmatpush1.bf16.msra.mxu0 %v8728_v41  ;;  %2218 = vmatprep.mubr.f32.mxu0 %v7708_v48 }
 0x8c4   :  { %5405 = vmatprep.subr.bf16.mxu0 %v8729_v35  ;;  %5467 = vmatpush1.bf16.msra.mxu1 %v8730_v2 }
 0x8c5   :  { %5469 = vmatprep.subr.bf16.mxu1 %v8731_v13  ;;  %2316 = vmatprep.mubr.f32.mxu1 %v8655_v3 }
 0x8c7   :  { %5407 = vmatpush1.bf16.msra.mxu0 %v8732_v19 }
 0x8c8   :  { %5409 = vmatprep.subr.bf16.mxu0 %v8733_v60  ;;  %5471 = vmatpush1.bf16.msra.mxu1 %v8812_v43 }
 0x8c9   :  { %5473 = vmatprep.subr.bf16.mxu1 %v8813_v61 }
 0x8cb   :  { %5411 = vmatpush1.bf16.msra.mxu0 %v8814_v34 }
 0x8cc   :  { %5413 = vmatprep.subr.bf16.mxu0 %v8815_v37  ;;  %5475 = vmatpush1.bf16.msra.mxu1 %v8816_v39 }
 0x8cd   :  { %5477 = vmatprep.subr.bf16.mxu1 %v8817_v50 }
 0x8cf   :  { %5415 = vmatpush1.bf16.msra.mxu0 %v8740_v42 }
 0x8d0   :  { %5417 = vmatprep.subr.bf16.mxu0 %v8818_v15  ;;  %5479 = vmatpush1.bf16.msra.mxu1 %v8819_v40 }
 0x8d1   :  { %5481 = vmatprep.subr.bf16.mxu1 %v8743_v44 }
 0x8d3   :  { %5419 = vmatpush1.bf16.msra.mxu0 %v8744_v27 }
 0x8d4   :  { %5421 = vmatprep.subr.bf16.mxu0 %v8820_v21  ;;  %5483 = vmatpush1.bf16.msra.mxu1 %v8821_v14 }
 0x8d5   :  { %5485 = vmatprep.subr.bf16.mxu1 %v8897_v4 }
 0x8d7   :  { %5423 = vmatpush1.bf16.msra.mxu0 %v8822_v38 }
 0x8d8   :  { %5425 = vmatprep.subr.bf16.mxu0 %v8823_v11  ;;  %5487 = vmatpush1.bf16.msra.mxu1 %v8824_v54 }
 0x8d9   :  { %5489 = vmatprep.subr.bf16.mxu1 %v8825_v17 }
 0x8db   :  { %5427 = vmatpush1.bf16.msra.mxu0 %v8826_v55 }
 0x8dc   :  { %5429 = vmatprep.subr.bf16.mxu0 %v8827_v57  ;;  %5491 = vmatpush1.bf16.msra.mxu1 %v8828_v33 }
 0x8dd   :  { %5493 = vmatprep.subr.bf16.mxu1 %v8829_v63 }
 0x8df   :  { %5431 = vmatpush1.bf16.msra.mxu0 %v8830_v30 }
 0x8e0   :  { %5433 = vmatprep.subr.bf16.mxu0 %v8898_v16  ;;  %5495 = vmatpush1.bf16.msra.mxu1 %v8899_v29 }
 0x8e1   :  { %5496 = vmatprep.subr.bf16.mxu1 %v8703_v46 }
 0x8e3   :  { %5435 = vmatpush1.bf16.msra.mxu0 %v8900_v0 }
 0x8e4   :  { %5437 = vmatprep.subr.bf16.mxu0 %v8981_v31  ;;  %v2228_v31 = vld [vmem:[#allocation3 + $0x70] sm:$0xff] }
 0x8e7   :  { %5439 = vmatpush1.bf16.msra.mxu0 %v8982_v24 }
 0x8e8   :  { %5441 = vmatprep.subr.bf16.mxu0 %v8983_v6 }
 0x8eb   :  { %5443 = vmatpush1.bf16.msra.mxu0 %v8984_v36 }
 0x8ec   :  { %5445 = vmatprep.subr.bf16.mxu0 %v8985_v18 }
 0x8ef   :  { %5447 = vmatpush1.bf16.msra.mxu0 %v8986_v22 }
 0x8f0   :  { %5449 = vmatprep.subr.bf16.mxu0 %v8987_v56  ;;  %v9006_v56 = vld [vmem:[#allocation31_spill] sm:$0xff] }
 0x8f3   :  { %5451 = vmatpush1.bf16.msra.mxu0 %v8988_v20  ;;  %v8998_v20 = vld [vmem:[#allocation16_spill] sm:$0xff] }
 0x8f4   :  { %5453 = vmatprep.subr.bf16.mxu0 %v8989_v25  ;;  %v8999_v25 = vld [vmem:[#allocation17_spill] sm:$0xff] }
 0x8f7   :  { %5455 = vmatpush1.bf16.msra.mxu0 %v8990_v8  ;;  %v9000_v8 = vld [vmem:[#allocation18_spill] sm:$0xff] }
 0x8f8   :  { %5457 = vmatprep.subr.bf16.mxu0 %v8991_v49  ;;  %v9001_v49 = vld [vmem:[#allocation19_spill] sm:$0xff] }
 0x8fb   :  { %5459 = vmatpush1.bf16.msra.mxu0 %v8992_v28  ;;  %v9002_v28 = vld [vmem:[#allocation22_spill] sm:$0xff] }
 0x8fc   :  { %5461 = vmatprep.subr.bf16.mxu0 %v8993_v47  ;;  %v9003_v47 = vld [vmem:[#allocation23_spill] sm:$0xff] }
 0x8ff   :  { %5463 = vmatpush1.bf16.msra.mxu0 %v8994_v32  ;;  %v9004_v32 = vld [vmem:[#allocation26_spill] sm:$0xff] }
 0x900   :  { %5521 = vmatprep.subr.bf16.mxu0 %v8995_v10  ;;  %v9005_v10 = vld [vmem:[#allocation28_spill] sm:$0xff] }
 0x902   :  { %2219 = vmatmul.mubr.f32.vlgmr.msra.gmra.mrb[18].mxu0 %v7640_v9 }
 0x903   :  { %5523 = vmatpush1.bf16.msra.mxu0 %v8996_v23  ;;  %v9007_v23 = vld [vmem:[#allocation32_spill] sm:$0xff] }
 0x904   :  { %5525 = vmatprep.subr.bf16.mxu0 %v8997_v53  ;;  %v9008_v53 = vld [vmem:[#allocation35_spill] sm:$0xff] }
 0x907   :  { %5527 = vmatpush1.bf16.msra.mxu0 %v8998_v20  ;;  %v9009_v20 = vld [vmem:[#allocation36_spill] sm:$0xff] }
 0x908   :  { %5529 = vmatprep.subr.bf16.mxu0 %v8999_v25  ;;  %v9010_v25 = vld [vmem:[#allocation39_spill] sm:$0xff] }
 0x90b   :  { %5531 = vmatpush1.bf16.msra.mxu0 %v9000_v8  ;;  %v9011_v8 = vld [vmem:[#allocation40_spill] sm:$0xff] }
 0x90c   :  { %5533 = vmatprep.subr.bf16.mxu0 %v9001_v49  ;;  %v9012_v49 = vld [vmem:[#allocation43_spill] sm:$0xff] }
 0x90f   :  { %5535 = vmatpush1.bf16.msra.mxu0 %v9002_v28  ;;  %v9013_v28 = vld [vmem:[#allocation44_spill] sm:$0xff] }
 0x910   :  { %5537 = vmatprep.subr.bf16.mxu0 %v9003_v47  ;;  %v9014_v47 = vld [vmem:[#allocation47_spill] sm:$0xff] }
 0x913   :  { %5539 = vmatpush1.bf16.msra.mxu0 %v9004_v32  ;;  %v9015_v32 = vld [vmem:[#allocation48_spill] sm:$0xff] }
 0x914   :  { %5541 = vmatprep.subr.bf16.mxu0 %v9005_v10  ;;  %v9016_v10 = vld [vmem:[#allocation51_spill] sm:$0xff] }
 0x917   :  { %5543 = vmatpush1.bf16.msra.mxu0 %v9006_v56  ;;  %v9017_v56 = vld [vmem:[#allocation52_spill] sm:$0xff] }
 0x918   :  { %5545 = vmatprep.subr.bf16.mxu0 %v9007_v23  ;;  %v9018_v23 = vld [vmem:[#allocation55_spill] sm:$0xff] }
 0x91b   :  { %5547 = vmatpush1.bf16.msra.mxu0 %v9008_v53  ;;  %v9019_v53 = vld [vmem:[#allocation56_spill] sm:$0xff] }
 0x91c   :  { %5549 = vmatprep.subr.bf16.mxu0 %v9009_v20  ;;  %v9020_v20 = vld [vmem:[#allocation59_spill] sm:$0xff] }
 0x91f   :  { %5551 = vmatpush1.bf16.msra.mxu0 %v9010_v25  ;;  %v9021_v25 = vld [vmem:[#allocation60_spill] sm:$0xff] }
 0x920   :  { %5553 = vmatprep.subr.bf16.mxu0 %v9011_v8  ;;  %v9022_v8 = vld [vmem:[#allocation63_spill] sm:$0xff] }
 0x923   :  { %5555 = vmatpush1.bf16.msra.mxu0 %v9012_v49  ;;  %v9023_v49 = vld [vmem:[#allocation64_spill] sm:$0xff] }
 0x924   :  { %5557 = vmatprep.subr.bf16.mxu0 %v9013_v28  ;;  %v9024_v28 = vld [vmem:[#allocation67_spill] sm:$0xff] }
 0x927   :  { %5559 = vmatpush1.bf16.msra.mxu0 %v9014_v47  ;;  %v9025_v47 = vld [vmem:[#allocation68_spill] sm:$0xff] }
 0x928   :  { %5561 = vmatprep.subr.bf16.mxu0 %v9015_v32  ;;  %v9026_v32 = vld [vmem:[#allocation71_spill] sm:$0xff] }
 0x92b   :  { %5563 = vmatpush1.bf16.msra.mxu0 %v9016_v10  ;;  %v9027_v10 = vld [vmem:[#allocation73_spill] sm:$0xff] }
 0x92c   :  { %5565 = vmatprep.subr.bf16.mxu0 %v9017_v56  ;;  %v2226_v56 = vld [vmem:[#allocation3 + $0x60] sm:$0xff] }
 0x92f   :  { %5567 = vmatpush1.bf16.msra.mxu0 %v9018_v23 }
 0x930   :  { %5569 = vmatprep.subr.bf16.mxu0 %v9019_v53 }
 0x933   :  { %5571 = vmatpush1.bf16.msra.mxu0 %v9020_v20  ;;  %v2227_v20 = vld [vmem:[#allocation3 + $0x68] sm:$0xff] }
 0x934   :  { %5573 = vmatprep.subr.bf16.mxu0 %v9021_v25 }
 0x937   :  { %5575 = vmatpush1.bf16.msra.mxu0 %v9022_v8 }
 0x938   :  { %5577 = vmatprep.subr.bf16.mxu0 %v9023_v49 }
 0x93b   :  { %5579 = vmatpush1.bf16.msra.mxu0 %v9024_v28 }
 0x93c   :  { %5581 = vmatprep.subr.bf16.mxu0 %v9025_v47 }
 0x93f   :  { %5583 = vmatpush1.bf16.msra.mxu0 %v9026_v32 }
 0x940   :  { %5649 = vmatprep.subr.bf16.mxu0 %v9027_v10 }
 0x995   :  { %v2078_v23 = vpop.f32.mrb[16].mxu0  ;;  %v2149_v22 = vpop.f32.mrb[24].mxu1 }
 0x996   :  { %v2229_v53 = vadd.f32 %v2226_v56, %v2078_v23  ;;  %v2080_v18 = vpop.f32.mrb[17].mxu0  ;;  %v7797_v36 = vpop.f32.mrb[25].mxu1  ;;  %v2243_v10 = vadd.f32 %v7630_v45, %v2149_v22  ;;  %v9031_v22 = vld [vmem:[#allocation24_spill] sm:$0xff] }
 0x997   :  { %v2236_v8 = vadd.f32 %v2227_v20, %v2080_v18 }
 0x998   :  { %v3793_v25 = vmul.f32 -1.442695, %v2229_v53 }
 0x999   :  { %v3794_v49 = vmul.f32 -1.442695, %v2236_v8 }
 0x99a   :  { %6384 = vpow2.f32 %v3793_v25  ;;  %v7801_v25 = vpop.permute.xlu0 %2009 }
 0x99b   :  { %6386 = vpow2.f32 %v3794_v49  ;;  %vm2011_vm13 = vcmp.eq.s32.totalorder %v7801_v25, 1  ;;  %v9032_v49 = vld [vmem:[#allocation25_spill] sm:$0xff] }
 0x99c   :  { %v9066_v25 = vld [vmem:[#allocation101_spill] sm:$0xff] }
 0x9a4   :  { %v6385_v28 = vpop.eup %6384 }
 0x9a5   :  { %v2233_v6 = vadd.f32 1.0, %v6385_v28  ;;  %v6387_v47 = vpop.eup %6386  ;;  %v9033_v28 = vld [vmem:[#allocation27_spill] sm:$0xff] }
 0x9a6   :  { %v2240_v32 = vadd.f32 1.0, %v6387_v47  ;;  %v9034_v47 = vld [vmem:[#allocation29_spill] sm:$0xff] }
 0x9a7   :  { %6388 = vrcp.f32 %v2233_v6 }
 0x9a8   :  { %6390 = vrcp.f32 %v2240_v32  ;;  %v9035_v32 = vld [vmem:[#allocation30_spill] sm:$0xff] }
 0x9b1   :  { %v6389_v24 = vpop.eup %6388 }
 0x9b2   :  { %v2244_v0 = vmul.f32 %v6389_v24, %v2243_v10  ;;  %v6391_v23 = vpop.eup %6390  ;;  %v9030_v24 = vld [vmem:[#allocation21_spill] sm:$0xff] }
 0x9b3   :  { %v2247_v29 = vsub.f32 1.0, %v6391_v23  ;;  %v2249_v20 = vmul.f32 %v6391_v23, %v7640_v9  ;;  %v9036_v10 = vld [vmem:[#allocation33_spill] sm:$0xff] }
 0x9b4   :  { %v2245_v56 = vadd.f32 %v2244_v0, %v2228_v31  ;;  %v9029_v31 = vld [vmem:[#allocation20_spill] sm:$0xff]  ;;  %v9038_v23 = vld [vmem:[#allocation37_spill] sm:$0xff] }
 0x9b6   :  { %6392 = vtanh.f32 %v2245_v56  ;;  %v9037_v56 = vld [vmem:[#allocation34_spill] sm:$0xff] }
 0x9c0   :  { %v6393_v53 = vpop.eup %6392 }
 0x9c1   :  { %v2248_v18 = vmul.f32 %v6393_v53, %v2247_v29  ;;  %v9039_v53 = vld [vmem:[#allocation38_spill] sm:$0xff] }
 0x9c3   :  { %v2250_v8 = vadd.f32 %v2249_v20, %v2248_v18  ;;  %v9040_v18 = vld [vmem:[#allocation41_spill] sm:$0xff]  ;;  %v9041_v20 = vld [vmem:[#allocation42_spill] sm:$0xff] }
 0x9c5   :  { %v7807_v6 = vsel %vm2011_vm13, %v2250_v8, %v7640_v9  ;;  %v9028_v9 = vld [vmem:[#allocation129_spill] sm:$0xff] }
 0x9c6   :  { %2317 = vmatmul.mubr.f32.vlgmr.msra.gmra.mrb[26].mxu1 %v7807_v6  ;;  %v9042_v8 = vld [vmem:[#allocation45_spill] sm:$0xff] }
 0x9c7   :  { %5498 = vmatpush3.bf16.msra.mxu1 %v7095_v52  ;;  %4137 = vmatprep.mubr.msk.f32.mxu1 %vm6576_vm5, %v8655_v3 }
 0x9c8   :  { %5499 = vmatprep.subr.bf16.mxu1 %v8703_v46 }
 0x9cb   :  { %5501 = vmatpush3.bf16.msra.mxu1 %v7103_v62 }
 0x9cc   :  { %5502 = vmatprep.subr.bf16.mxu1 %v8703_v46 }
 0x9cf   :  { %5504 = vmatpush3.bf16.msra.mxu1 %v7109_v7 }
 0x9d0   :  { %5505 = vmatprep.subr.bf16.mxu1 %v8703_v46 }
 0x9d3   :  { %5507 = vmatpush3.bf16.msra.mxu1 %v7113_v59 }
 0x9d4   :  { %5508 = vmatprep.subr.bf16.mxu1 %v8703_v46 }
 0x9d5   :  { %v2220_v29 = vpop.f32.mrb[18].mxu0 }
 0x9d6   :  { %v2222_v0 = vpop.f32.mrb[19].mxu0 }
 0x9d7   :  { %5510 = vmatpush3.bf16.msra.mxu1 %v7117_v58 }
 0x9d8   :  { %5511 = vmatprep.subr.bf16.mxu1 %v8703_v46 }
 0x9db   :  { %5513 = vmatpush3.bf16.msra.mxu1 %v7121_v26 }
 0x9dc   :  { %5514 = vmatprep.subr.bf16.mxu1 %v8703_v46 }
 0x9df   :  { %5516 = vmatpush3.bf16.msra.mxu1 %v7125_v12 }
 0x9e0   :  { %5517 = vmatprep.subr.bf16.mxu1 %v8703_v46 }
 0x9e3   :  { %5519 = vmatpush3.bf16.msra.mxu1 %v9028_v9 }
 0x9e4   :  { %5585 = vmatprep.subr.bf16.mxu1 %v9029_v31 }
 0x9e6   :  { %4138 = vmatmul.mubr.f32.vlgmr.msra.gmra.mrb[28].mxu1 %v7807_v6 }
 0x9e7   :  { %5587 = vmatpush1.bf16.msra.mxu1 %v9030_v24 }
 0x9e8   :  { %5589 = vmatprep.subr.bf16.mxu1 %v9031_v22  ;;  %v9062_v22 = vld [vmem:[#allocation131_spill] sm:$0xff] }
 0x9eb   :  { %5591 = vmatpush1.bf16.msra.mxu1 %v9032_v49  ;;  %v9043_v49 = vld [vmem:[#allocation46_spill] sm:$0xff] }
 0x9ec   :  { %5593 = vmatprep.subr.bf16.mxu1 %v9033_v28  ;;  %v9044_v28 = vld [vmem:[#allocation49_spill] sm:$0xff] }
 0x9ef   :  { %5595 = vmatpush1.bf16.msra.mxu1 %v9034_v47  ;;  %v9045_v47 = vld [vmem:[#allocation50_spill] sm:$0xff] }
 0x9f0   :  { %5597 = vmatprep.subr.bf16.mxu1 %v9035_v32  ;;  %v9046_v32 = vld [vmem:[#allocation53_spill] sm:$0xff] }
 0x9f3   :  { %5599 = vmatpush1.bf16.msra.mxu1 %v9036_v10  ;;  %v9047_v10 = vld [vmem:[#allocation54_spill] sm:$0xff] }
 0x9f4   :  { %5601 = vmatprep.subr.bf16.mxu1 %v9037_v56  ;;  %v9048_v56 = vld [vmem:[#allocation57_spill] sm:$0xff] }
 0x9f7   :  { %5603 = vmatpush1.bf16.msra.mxu1 %v9038_v23  ;;  %v9049_v23 = vld [vmem:[#allocation58_spill] sm:$0xff] }
 0x9f8   :  { %5605 = vmatprep.subr.bf16.mxu1 %v9039_v53  ;;  %v9050_v53 = vld [vmem:[#allocation61_spill] sm:$0xff] }
 0x9fb   :  { %5607 = vmatpush1.bf16.msra.mxu1 %v9040_v18  ;;  %v9051_v18 = vld [vmem:[#allocation62_spill] sm:$0xff] }
 0x9fc   :  { %5609 = vmatprep.subr.bf16.mxu1 %v9041_v20  ;;  %v9052_v20 = vld [vmem:[#allocation65_spill] sm:$0xff] }
 0x9ff   :  { %5611 = vmatpush1.bf16.msra.mxu1 %v9042_v8  ;;  %v9053_v8 = vld [vmem:[#allocation66_spill] sm:$0xff] }
 0xa00   :  { %5613 = vmatprep.subr.bf16.mxu1 %v9043_v49  ;;  %v9054_v49 = vld [vmem:[#allocation69_spill] sm:$0xff] }
 0xa03   :  { %5615 = vmatpush1.bf16.msra.mxu1 %v9044_v28  ;;  %v9055_v28 = vld [vmem:[#allocation70_spill] sm:$0xff] }
 0xa04   :  { %5617 = vmatprep.subr.bf16.mxu1 %v9045_v47  ;;  %v9056_v47 = vld [vmem:[#allocation72_spill] sm:$0xff] }
 0xa07   :  { %5619 = vmatpush1.bf16.msra.mxu1 %v9046_v32  ;;  %v9057_v32 = vld [vmem:[#allocation74_spill] sm:$0xff] }
 0xa08   :  { %5621 = vmatprep.subr.bf16.mxu1 %v9047_v10  ;;  %v9058_v10 = vld [vmem:[#allocation76_spill] sm:$0xff] }
 0xa0b   :  { %5623 = vmatpush1.bf16.msra.mxu1 %v9048_v56  ;;  %v9059_v56 = vld [vmem:[#allocation78_spill] sm:$0xff] }
 0xa0c   :  { %5625 = vmatprep.subr.bf16.mxu1 %v9049_v23 }
 0xa0f   :  { %5627 = vmatpush1.bf16.msra.mxu1 %v9050_v53  ;;  %v9060_v53 = vld [vmem:[#allocation92_spill] sm:$0xff] }
 0xa10   :  { %5629 = vmatprep.subr.bf16.mxu1 %v9051_v18 }
 0xa13   :  { %5631 = vmatpush1.bf16.msra.mxu1 %v9052_v20  ;;  %v9061_v20 = vld [vmem:[#allocation130_spill] sm:$0xff] }
 0xa14   :  { %5633 = vmatprep.subr.bf16.mxu1 %v9053_v8 }
 0xa17   :  { %5635 = vmatpush1.bf16.msra.mxu1 %v9054_v49 }
 0xa18   :  { %5637 = vmatprep.subr.bf16.mxu1 %v9055_v28 }
 0xa1b   :  { %5639 = vmatpush1.bf16.msra.mxu1 %v9056_v47 }
 0xa1c   :  { %5641 = vmatprep.subr.bf16.mxu1 %v9057_v32 }
 0xa1f   :  { %5643 = vmatpush1.bf16.msra.mxu1 %v9058_v10 }
 0xa20   :  { %5645 = vmatprep.subr.bf16.mxu1 %v9059_v56 }
 0xa23   :  { %5647 = vmatpush1.bf16.msra.mxu1 %v8978_v51  ;;  %v2407_v51 = vadd.f32 %v7700_v5, %v2222_v0 }
 0xa24   :  { %5713 = vmatprep.subr.bf16.mxu1 %v9060_v53 }
 0xa99   :  { %v2318_v18 = vpop.f32.mrb[26].mxu1 }
 0xa9a   :  { %v2319_v23 = vadd.f32 %v2318_v18, %v9061_v20  ;;  %v2320_v8 = vpop.f32.mrb[27].mxu1 }
 0xa9b   :  { %v2321_v49 = vadd.f32 %v2320_v8, %v9062_v22 }
 0xa9c   :  { %v2393_v28 = vadd.f32 %v2319_v23, %v7797_v36  ;;  %v9072_v23 = vld [vmem:[#allocation113_spill] sm:$0xff] }
 0xa9d   :  { %v2400_v24 = vadd.f32 %v2321_v49, %v2220_v29 }
 0xa9e   :  { %v3795_v47 = vmul.f32 -1.442695, %v2393_v28 }
 0xa9f   :  { %v3796_v32 = vmul.f32 -1.442695, %v2400_v24 }
 0xaa0   :  { %6394 = vpow2.f32 %v3795_v47 }
 0xaa1   :  { %6396 = vpow2.f32 %v3796_v32  ;;  %v9069_v32 = vld [vmem:[#allocation107_spill] sm:$0xff] }
 0xaaa   :  { %v6395_v10 = vpop.eup %6394 }
 0xaab   :  { %v2397_v31 = vadd.f32 1.0, %v6395_v10  ;;  %v6397_v56 = vpop.eup %6396  ;;  %v9070_v10 = vld [vmem:[#allocation109_spill] sm:$0xff] }
 0xaac   :  { %v2404_v53 = vadd.f32 1.0, %v6397_v56  ;;  %v9071_v56 = vld [vmem:[#allocation111_spill] sm:$0xff] }
 0xaad   :  { %6398 = vrcp.f32 %v2397_v31 }
 0xaae   :  { %6400 = vrcp.f32 %v2404_v53  ;;  %v9073_v53 = vld [vmem:[#allocation115_spill] sm:$0xff] }
 0xab7   :  { %v6399_v9 = vpop.eup %6398 }
 0xab8   :  { %v2408_v12 = vmul.f32 %v6399_v9, %v2407_v51  ;;  %v6401_v29 = vpop.eup %6400  ;;  %v9064_v51 = vld [vmem:[#allocation97_spill] sm:$0xff]  ;;  %v9067_v9 = vld [vmem:[#allocation103_spill] sm:$0xff] }
 0xab9   :  { %v2389_v18 = vpop.f32.mrb[28].mxu1  ;;  %v2411_v49 = vsub.f32 1.0, %v6401_v29  ;;  %v2413_v47 = vmul.f32 %v6401_v29, %v7708_v48  ;;  %v9077_v29 = vld [vmem:[#allocation123_spill] sm:$0xff] }
 0xaba   :  { %v2390_v8 = vadd.f32 %v2389_v18, %v7185_v1  ;;  %v4139_v22 = vpop.f32.mrb[29].mxu1  ;;  %v9074_v18 = vld [vmem:[#allocation117_spill] sm:$0xff] }
 0xabb   :  { %v9068_v22 = vld [vmem:[#allocation105_spill] sm:$0xff] }
 0xabc   :  { %v2409_v36 = vadd.f32 %v2408_v12, %v2390_v8  ;;  %v9063_v12 = vld [vmem:[#allocation122_spill] sm:$0xff]  ;;  %v9075_v8 = vld [vmem:[#allocation119_spill] sm:$0xff] }
 0xabe   :  { %6402 = vtanh.f32 %v2409_v36  ;;  %v9076_v36 = vld [vmem:[#allocation121_spill] sm:$0xff] }
 0xac8   :  { %v6403_v24 = vpop.eup %6402 }
 0xac9   :  { %v2412_v28 = vmul.f32 %v6403_v24, %v2411_v49  ;;  %v9078_v49 = vld [vmem:[#allocation124_spill] sm:$0xff]  ;;  %v9079_v24 = vld [vmem:[#allocation13_spill] sm:$0xff] }
 0xacb   :  { %v2414_v31 = vadd.f32 %v2413_v47, %v2412_v28  ;;  %v9080_v28 = vld [vmem:[#allocation14_spill] sm:$0xff]  ;;  %v9081_v47 = vld [vmem:[#allocation15_spill] sm:$0xff] }
 0xacd   :  { %v7870_v0 = vsel %vm2011_vm13, %v2414_v31, %v7708_v48  ;;  %v9065_v48 = vld [vmem:[#allocation99_spill] sm:$0xff]  ;;  %v9082_v31 = vld [vmem:[#allocation16_spill] sm:$0xff] }
 0xace   :  { %2486 = vmatprep.mubr.f32.mxu0 %v7870_v0  ;;  %2557 = vmatprep.mubr.f32.mxu1 %v7870_v0 }
 0xacf   :  { %2487 = vmatmul.mubr.f32.vlgmr.msra.gmra.mrb[20].mxu0 %v7807_v6  ;;  %2558 = vmatmul.mubr.f32.vlgmr.msra.gmra.mrb[30].mxu1 %v7807_v6 }
 0xad0   :  { %5651 = vmatpush1.bf16.msra.mxu0 %v8728_v41  ;;  %2628 = vmatprep.mubr.f32.mxu0 %v7870_v0 }
 0xad1   :  { %5653 = vmatprep.subr.bf16.mxu0 %v8729_v35  ;;  %5715 = vmatpush1.bf16.msra.mxu1 %v8730_v2 }
 0xad2   :  { %5717 = vmatprep.subr.bf16.mxu1 %v8731_v13  ;;  %2726 = vmatprep.mubr.f32.mxu1 %v8655_v3 }
 0xad4   :  { %5655 = vmatpush1.bf16.msra.mxu0 %v8732_v19 }
 0xad5   :  { %5657 = vmatprep.subr.bf16.mxu0 %v8733_v60  ;;  %5719 = vmatpush1.bf16.msra.mxu1 %v8812_v43 }
 0xad6   :  { %5721 = vmatprep.subr.bf16.mxu1 %v8813_v61 }
 0xad8   :  { %5659 = vmatpush1.bf16.msra.mxu0 %v8814_v34 }
 0xad9   :  { %5661 = vmatprep.subr.bf16.mxu0 %v8815_v37  ;;  %5723 = vmatpush1.bf16.msra.mxu1 %v8816_v39 }
 0xada   :  { %5725 = vmatprep.subr.bf16.mxu1 %v8817_v50 }
 0xadc   :  { %5663 = vmatpush1.bf16.msra.mxu0 %v8740_v42 }
 0xadd   :  { %5665 = vmatprep.subr.bf16.mxu0 %v8818_v15  ;;  %5727 = vmatpush1.bf16.msra.mxu1 %v8819_v40 }
 0xade   :  { %5729 = vmatprep.subr.bf16.mxu1 %v8743_v44 }
 0xae0   :  { %5667 = vmatpush1.bf16.msra.mxu0 %v8744_v27 }
 0xae1   :  { %5669 = vmatprep.subr.bf16.mxu0 %v8820_v21  ;;  %5731 = vmatpush1.bf16.msra.mxu1 %v8821_v14 }
 0xae2   :  { %5733 = vmatprep.subr.bf16.mxu1 %v8897_v4 }
 0xae4   :  { %5671 = vmatpush1.bf16.msra.mxu0 %v8822_v38 }
 0xae5   :  { %5673 = vmatprep.subr.bf16.mxu0 %v8823_v11  ;;  %5735 = vmatpush1.bf16.msra.mxu1 %v8824_v54 }
 0xae6   :  { %5737 = vmatprep.subr.bf16.mxu1 %v8825_v17 }
 0xae8   :  { %5675 = vmatpush1.bf16.msra.mxu0 %v8826_v55 }
 0xae9   :  { %5677 = vmatprep.subr.bf16.mxu0 %v8827_v57  ;;  %5739 = vmatpush1.bf16.msra.mxu1 %v8828_v33 }
 0xaea   :  { %5741 = vmatprep.subr.bf16.mxu1 %v8829_v63 }
 0xaec   :  { %5679 = vmatpush1.bf16.msra.mxu0 %v8830_v30 }
 0xaed   :  { %5681 = vmatprep.subr.bf16.mxu0 %v8898_v16  ;;  %5743 = vmatpush1.bf16.msra.mxu1 %v9063_v12 }
 0xaee   :  { %5744 = vmatprep.subr.bf16.mxu1 %v8703_v46 }
 0xaf0   :  { %5683 = vmatpush1.bf16.msra.mxu0 %v9064_v51 }
 0xaf1   :  { %5685 = vmatprep.subr.bf16.mxu0 %v9065_v48 }
 0xaf4   :  { %5687 = vmatpush1.bf16.msra.mxu0 %v9066_v25  ;;  %v2638_v25 = vld [vmem:[#allocation3 + $0x88] sm:$0xff] }
 0xaf5   :  { %5689 = vmatprep.subr.bf16.mxu0 %v9067_v9 }
 0xaf8   :  { %5691 = vmatpush1.bf16.msra.mxu0 %v9068_v22 }
 0xaf9   :  { %5693 = vmatprep.subr.bf16.mxu0 %v9069_v32 }
 0xafc   :  { %5695 = vmatpush1.bf16.msra.mxu0 %v9070_v10 }
 0xafd   :  { %5697 = vmatprep.subr.bf16.mxu0 %v9071_v56 }
 0xb00   :  { %5699 = vmatpush1.bf16.msra.mxu0 %v9072_v23  ;;  %v9090_v23 = vld [vmem:[#allocation31_spill] sm:$0xff] }
 0xb01   :  { %5701 = vmatprep.subr.bf16.mxu0 %v9073_v53  ;;  %v9083_v53 = vld [vmem:[#allocation17_spill] sm:$0xff] }
 0xb04   :  { %5703 = vmatpush1.bf16.msra.mxu0 %v9074_v18  ;;  %v9084_v18 = vld [vmem:[#allocation18_spill] sm:$0xff] }
 0xb05   :  { %5705 = vmatprep.subr.bf16.mxu0 %v9075_v8  ;;  %v9085_v8 = vld [vmem:[#allocation19_spill] sm:$0xff] }
 0xb08   :  { %5707 = vmatpush1.bf16.msra.mxu0 %v9076_v36  ;;  %v9086_v36 = vld [vmem:[#allocation22_spill] sm:$0xff] }
 0xb09   :  { %5709 = vmatprep.subr.bf16.mxu0 %v9077_v29  ;;  %v9087_v29 = vld [vmem:[#allocation23_spill] sm:$0xff] }
 0xb0c   :  { %5711 = vmatpush1.bf16.msra.mxu0 %v9078_v49  ;;  %v9088_v49 = vld [vmem:[#allocation26_spill] sm:$0xff] }
 0xb0d   :  { %5769 = vmatprep.subr.bf16.mxu0 %v9079_v24  ;;  %v9089_v24 = vld [vmem:[#allocation28_spill] sm:$0xff] }
 0xb0f   :  { %2629 = vmatmul.mubr.f32.vlgmr.msra.gmra.mrb[22].mxu0 %v7807_v6 }
 0xb10   :  { %5771 = vmatpush1.bf16.msra.mxu0 %v9080_v28  ;;  %v9091_v28 = vld [vmem:[#allocation32_spill] sm:$0xff] }
 0xb11   :  { %5773 = vmatprep.subr.bf16.mxu0 %v9081_v47  ;;  %v9092_v47 = vld [vmem:[#allocation35_spill] sm:$0xff] }
 0xb14   :  { %5775 = vmatpush1.bf16.msra.mxu0 %v9082_v31  ;;  %v9093_v31 = vld [vmem:[#allocation36_spill] sm:$0xff] }
 0xb15   :  { %5777 = vmatprep.subr.bf16.mxu0 %v9083_v53  ;;  %v9094_v53 = vld [vmem:[#allocation39_spill] sm:$0xff] }
 0xb18   :  { %5779 = vmatpush1.bf16.msra.mxu0 %v9084_v18  ;;  %v9095_v18 = vld [vmem:[#allocation40_spill] sm:$0xff] }
 0xb19   :  { %5781 = vmatprep.subr.bf16.mxu0 %v9085_v8  ;;  %v9096_v8 = vld [vmem:[#allocation43_spill] sm:$0xff] }
 0xb1c   :  { %5783 = vmatpush1.bf16.msra.mxu0 %v9086_v36  ;;  %v9097_v36 = vld [vmem:[#allocation44_spill] sm:$0xff] }
 0xb1d   :  { %5785 = vmatprep.subr.bf16.mxu0 %v9087_v29  ;;  %v9098_v29 = vld [vmem:[#allocation47_spill] sm:$0xff] }
 0xb20   :  { %5787 = vmatpush1.bf16.msra.mxu0 %v9088_v49  ;;  %v9099_v49 = vld [vmem:[#allocation48_spill] sm:$0xff] }
 0xb21   :  { %5789 = vmatprep.subr.bf16.mxu0 %v9089_v24  ;;  %v9100_v24 = vld [vmem:[#allocation51_spill] sm:$0xff] }
 0xb24   :  { %5791 = vmatpush1.bf16.msra.mxu0 %v9090_v23  ;;  %v9101_v23 = vld [vmem:[#allocation52_spill] sm:$0xff] }
 0xb25   :  { %5793 = vmatprep.subr.bf16.mxu0 %v9091_v28  ;;  %v9102_v28 = vld [vmem:[#allocation55_spill] sm:$0xff] }
 0xb28   :  { %5795 = vmatpush1.bf16.msra.mxu0 %v9092_v47  ;;  %v9103_v47 = vld [vmem:[#allocation56_spill] sm:$0xff] }
 0xb29   :  { %5797 = vmatprep.subr.bf16.mxu0 %v9093_v31  ;;  %v9104_v31 = vld [vmem:[#allocation59_spill] sm:$0xff] }
 0xb2c   :  { %5799 = vmatpush1.bf16.msra.mxu0 %v9094_v53  ;;  %v9105_v53 = vld [vmem:[#allocation60_spill] sm:$0xff] }
 0xb2d   :  { %5801 = vmatprep.subr.bf16.mxu0 %v9095_v18  ;;  %v9106_v18 = vld [vmem:[#allocation63_spill] sm:$0xff] }
 0xb30   :  { %5803 = vmatpush1.bf16.msra.mxu0 %v9096_v8  ;;  %v9107_v8 = vld [vmem:[#allocation64_spill] sm:$0xff] }
 0xb31   :  { %5805 = vmatprep.subr.bf16.mxu0 %v9097_v36  ;;  %v9108_v36 = vld [vmem:[#allocation67_spill] sm:$0xff] }
 0xb34   :  { %5807 = vmatpush1.bf16.msra.mxu0 %v9098_v29  ;;  %v9109_v29 = vld [vmem:[#allocation68_spill] sm:$0xff] }
 0xb35   :  { %5809 = vmatprep.subr.bf16.mxu0 %v9099_v49  ;;  %v9110_v49 = vld [vmem:[#allocation71_spill] sm:$0xff] }
 0xb38   :  { %5811 = vmatpush1.bf16.msra.mxu0 %v9100_v24  ;;  %v9111_v24 = vld [vmem:[#allocation73_spill] sm:$0xff] }
 0xb39   :  { %5813 = vmatprep.subr.bf16.mxu0 %v9101_v23  ;;  %v2636_v23 = vld [vmem:[#allocation3 + $0x78] sm:$0xff] }
 0xb3c   :  { %5815 = vmatpush1.bf16.msra.mxu0 %v9102_v28 }
 0xb3d   :  { %5817 = vmatprep.subr.bf16.mxu0 %v9103_v47 }
 0xb40   :  { %5819 = vmatpush1.bf16.msra.mxu0 %v9104_v31  ;;  %v2637_v31 = vld [vmem:[#allocation3 + $0x80] sm:$0xff] }
 0xb41   :  { %5821 = vmatprep.subr.bf16.mxu0 %v9105_v53 }
 0xb44   :  { %5823 = vmatpush1.bf16.msra.mxu0 %v9106_v18 }
 0xb45   :  { %5825 = vmatprep.subr.bf16.mxu0 %v9107_v8 }
 0xb48   :  { %5827 = vmatpush1.bf16.msra.mxu0 %v9108_v36 }
 0xb49   :  { %5829 = vmatprep.subr.bf16.mxu0 %v9109_v29 }
 0xb4c   :  { %5831 = vmatpush1.bf16.msra.mxu0 %v9110_v49 }
 0xb4d   :  { %5897 = vmatprep.subr.bf16.mxu0 %v9111_v24 }
 0xba2   :  { %v2488_v28 = vpop.f32.mrb[20].mxu0  ;;  %v2559_v56 = vpop.f32.mrb[30].mxu1 }
 0xba3   :  { %v2639_v47 = vadd.f32 %v2636_v23, %v2488_v28  ;;  %v2490_v10 = vpop.f32.mrb[21].mxu0  ;;  %v7959_v32 = vpop.f32.mrb[31].mxu1  ;;  %v2653_v24 = vadd.f32 %v7630_v45, %v2559_v56  ;;  %v9116_v56 = vld [vmem:[#allocation24_spill] sm:$0xff] }
 0xba4   :  { %v2646_v18 = vadd.f32 %v2637_v31, %v2490_v10  ;;  %v9121_v31 = vld [vmem:[#allocation33_spill] sm:$0xff] }
 0xba5   :  { %v3797_v53 = vmul.f32 -1.442695, %v2639_v47 }
 0xba6   :  { %v3798_v8 = vmul.f32 -1.442695, %v2646_v18  ;;  %v7963_v18 = vpop.permute.xlu1 %2419 }
 0xba7   :  { %6404 = vpow2.f32 %v3797_v53  ;;  %vm2421_vm14 = vcmp.eq.s32.totalorder %v7963_v18, 1  ;;  %v9149_v18 = vld [vmem:[#allocation99_spill] sm:$0xff] }
 0xba8   :  { %6406 = vpow2.f32 %v3798_v8 }
 0xbb1   :  { %v6405_v36 = vpop.eup %6404 }
 0xbb2   :  { %v2643_v22 = vadd.f32 1.0, %v6405_v36  ;;  %v6407_v29 = vpop.eup %6406  ;;  %v9117_v36 = vld [vmem:[#allocation25_spill] sm:$0xff] }
 0xbb3   :  { %v2650_v49 = vadd.f32 1.0, %v6407_v29  ;;  %v9118_v29 = vld [vmem:[#allocation27_spill] sm:$0xff] }
 0xbb4   :  { %6408 = vrcp.f32 %v2643_v22  ;;  %v9115_v22 = vld [vmem:[#allocation21_spill] sm:$0xff] }
 0xbb5   :  { %6410 = vrcp.f32 %v2650_v49  ;;  %v9119_v49 = vld [vmem:[#allocation29_spill] sm:$0xff] }
 0xbbe   :  { %v6409_v9 = vpop.eup %6408 }
 0xbbf   :  { %v2654_v48 = vmul.f32 %v6409_v9, %v2653_v24  ;;  %v6411_v28 = vpop.eup %6410  ;;  %v9114_v9 = vld [vmem:[#allocation20_spill] sm:$0xff]  ;;  %v9120_v24 = vld [vmem:[#allocation30_spill] sm:$0xff] }
 0xbc0   :  { %v2657_v51 = vsub.f32 1.0, %v6411_v28  ;;  %v2659_v53 = vmul.f32 %v6411_v28, %v7807_v6  ;;  %v9123_v28 = vld [vmem:[#allocation37_spill] sm:$0xff] }
 0xbc1   :  { %v2655_v23 = vadd.f32 %v2654_v48, %v2638_v25  ;;  %v9112_v48 = vld [vmem:[#allocation128_spill] sm:$0xff]  ;;  %v9113_v25 = vld [vmem:[#allocation129_spill] sm:$0xff] }
 0xbc3   :  { %6412 = vtanh.f32 %v2655_v23  ;;  %v9122_v23 = vld [vmem:[#allocation34_spill] sm:$0xff] }
 0xbcd   :  { %v6413_v47 = vpop.eup %6412 }
 0xbce   :  { %v2658_v10 = vmul.f32 %v6413_v47, %v2657_v51  ;;  %v9124_v47 = vld [vmem:[#allocation38_spill] sm:$0xff] }
 0xbd0   :  { %v2660_v8 = vadd.f32 %v2659_v53, %v2658_v10  ;;  %v9125_v10 = vld [vmem:[#allocation41_spill] sm:$0xff]  ;;  %v9126_v53 = vld [vmem:[#allocation42_spill] sm:$0xff] }
 0xbd2   :  { %v7969_v45 = vsel %vm2421_vm14, %v2660_v8, %v7807_v6  ;;  %v9127_v8 = vld [vmem:[#allocation45_spill] sm:$0xff] }
 0xbd3   :  { %2727 = vmatmul.mubr.f32.vlgmr.msra.gmra.mrb[32].mxu1 %v7969_v45 }
 0xbd4   :  { %5746 = vmatpush3.bf16.msra.mxu1 %v7095_v52  ;;  %4172 = vmatprep.mubr.msk.f32.mxu1 %vm6576_vm5, %v8655_v3 }
 0xbd5   :  { %5747 = vmatprep.subr.bf16.mxu1 %v8703_v46 }
 0xbd8   :  { %5749 = vmatpush3.bf16.msra.mxu1 %v7103_v62 }
 0xbd9   :  { %5750 = vmatprep.subr.bf16.mxu1 %v8703_v46 }
 0xbdc   :  { %5752 = vmatpush3.bf16.msra.mxu1 %v7109_v7 }
 0xbdd   :  { %5753 = vmatprep.subr.bf16.mxu1 %v8703_v46 }
 0xbe0   :  { %5755 = vmatpush3.bf16.msra.mxu1 %v7113_v59 }
 0xbe1   :  { %5756 = vmatprep.subr.bf16.mxu1 %v8703_v46 }
 0xbe2   :  { %v2630_v6 = vpop.f32.mrb[22].mxu0 }
 0xbe3   :  { %v2632_v51 = vpop.f32.mrb[23].mxu0 }
 0xbe4   :  { %5758 = vmatpush3.bf16.msra.mxu1 %v7117_v58 }
 0xbe5   :  { %5759 = vmatprep.subr.bf16.mxu1 %v8703_v46 }
 0xbe8   :  { %5761 = vmatpush3.bf16.msra.mxu1 %v7121_v26 }
 0xbe9   :  { %5762 = vmatprep.subr.bf16.mxu1 %v8703_v46 }
 0xbec   :  { %5764 = vmatpush3.bf16.msra.mxu1 %v9112_v48 }
 0xbed   :  { %5765 = vmatprep.subr.bf16.mxu1 %v8703_v46 }
 0xbf0   :  { %5767 = vmatpush3.bf16.msra.mxu1 %v9113_v25 }
 0xbf1   :  { %5833 = vmatprep.subr.bf16.mxu1 %v9114_v9 }
 0xbf3   :  { %4173 = vmatmul.mubr.f32.vlgmr.msra.gmra.mrb[34].mxu1 %v7969_v45 }
 0xbf4   :  { %5835 = vmatpush1.bf16.msra.mxu1 %v9115_v22 }
 0xbf5   :  { %5837 = vmatprep.subr.bf16.mxu1 %v9116_v56  ;;  %v9147_v56 = vld [vmem:[#allocation131_spill] sm:$0xff] }
 0xbf8   :  { %5839 = vmatpush1.bf16.msra.mxu1 %v9117_v36  ;;  %v9128_v36 = vld [vmem:[#allocation46_spill] sm:$0xff] }
 0xbf9   :  { %5841 = vmatprep.subr.bf16.mxu1 %v9118_v29  ;;  %v9129_v29 = vld [vmem:[#allocation49_spill] sm:$0xff] }
 0xbfc   :  { %5843 = vmatpush1.bf16.msra.mxu1 %v9119_v49  ;;  %v9130_v49 = vld [vmem:[#allocation50_spill] sm:$0xff] }
 0xbfd   :  { %5845 = vmatprep.subr.bf16.mxu1 %v9120_v24  ;;  %v9131_v24 = vld [vmem:[#allocation53_spill] sm:$0xff] }
 0xc00   :  { %5847 = vmatpush1.bf16.msra.mxu1 %v9121_v31  ;;  %v9132_v31 = vld [vmem:[#allocation54_spill] sm:$0xff] }
 0xc01   :  { %5849 = vmatprep.subr.bf16.mxu1 %v9122_v23  ;;  %v9133_v23 = vld [vmem:[#allocation57_spill] sm:$0xff] }
 0xc04   :  { %5851 = vmatpush1.bf16.msra.mxu1 %v9123_v28  ;;  %v9134_v28 = vld [vmem:[#allocation58_spill] sm:$0xff] }
 0xc05   :  { %5853 = vmatprep.subr.bf16.mxu1 %v9124_v47  ;;  %v9135_v47 = vld [vmem:[#allocation61_spill] sm:$0xff] }
 0xc08   :  { %5855 = vmatpush1.bf16.msra.mxu1 %v9125_v10  ;;  %v9136_v10 = vld [vmem:[#allocation62_spill] sm:$0xff] }
 0xc09   :  { %5857 = vmatprep.subr.bf16.mxu1 %v9126_v53  ;;  %v9137_v53 = vld [vmem:[#allocation65_spill] sm:$0xff] }
 0xc0c   :  { %5859 = vmatpush1.bf16.msra.mxu1 %v9127_v8  ;;  %v9138_v8 = vld [vmem:[#allocation66_spill] sm:$0xff] }
 0xc0d   :  { %5861 = vmatprep.subr.bf16.mxu1 %v9128_v36  ;;  %v9139_v36 = vld [vmem:[#allocation69_spill] sm:$0xff] }
 0xc10   :  { %5863 = vmatpush1.bf16.msra.mxu1 %v9129_v29  ;;  %v9140_v29 = vld [vmem:[#allocation70_spill] sm:$0xff] }
 0xc11   :  { %5865 = vmatprep.subr.bf16.mxu1 %v9130_v49  ;;  %v9141_v49 = vld [vmem:[#allocation72_spill] sm:$0xff] }
 0xc14   :  { %5867 = vmatpush1.bf16.msra.mxu1 %v9131_v24  ;;  %v9142_v24 = vld [vmem:[#allocation74_spill] sm:$0xff] }
 0xc15   :  { %5869 = vmatprep.subr.bf16.mxu1 %v9132_v31  ;;  %v9143_v31 = vld [vmem:[#allocation76_spill] sm:$0xff] }
 0xc18   :  { %5871 = vmatpush1.bf16.msra.mxu1 %v9133_v23  ;;  %v9144_v23 = vld [vmem:[#allocation78_spill] sm:$0xff] }
 0xc19   :  { %5873 = vmatprep.subr.bf16.mxu1 %v9134_v28  ;;  %v9145_v28 = vld [vmem:[#allocation80_spill] sm:$0xff] }
 0xc1c   :  { %5875 = vmatpush1.bf16.msra.mxu1 %v9135_v47  ;;  %v9146_v47 = vld [vmem:[#allocation92_spill] sm:$0xff] }
 0xc1d   :  { %5877 = vmatprep.subr.bf16.mxu1 %v9136_v10 }
 0xc20   :  { %5879 = vmatpush1.bf16.msra.mxu1 %v9137_v53 }
 0xc21   :  { %5881 = vmatprep.subr.bf16.mxu1 %v9138_v8 }
 0xc24   :  { %5883 = vmatpush1.bf16.msra.mxu1 %v9139_v36 }
 0xc25   :  { %5885 = vmatprep.subr.bf16.mxu1 %v9140_v29 }
 0xc28   :  { %5887 = vmatpush1.bf16.msra.mxu1 %v9141_v49 }
 0xc29   :  { %5889 = vmatprep.subr.bf16.mxu1 %v9142_v24 }
 0xc2c   :  { %5891 = vmatpush1.bf16.msra.mxu1 %v9143_v31 }
 0xc2d   :  { %5893 = vmatprep.subr.bf16.mxu1 %v9144_v23 }
 0xc30   :  { %5895 = vmatpush1.bf16.msra.mxu1 %v9145_v28  ;;  %v2817_v28 = vadd.f32 %v7700_v5, %v2632_v51  ;;  %v9150_v51 = vld [vmem:[#allocation101_spill] sm:$0xff] }
 0xc31   :  { %5961 = vmatprep.subr.bf16.mxu1 %v9146_v47 }
 0xca6   :  { %v2728_v10 = vpop.f32.mrb[32].mxu1 }
 0xca7   :  { %v2729_v53 = vadd.f32 %v2728_v10, %v9061_v20  ;;  %v2730_v8 = vpop.f32.mrb[33].mxu1 }
 0xca8   :  { %v2731_v36 = vadd.f32 %v2730_v8, %v9147_v56 }
 0xca9   :  { %v2803_v29 = vadd.f32 %v2729_v53, %v7959_v32  ;;  %v9159_v53 = vld [vmem:[#allocation119_spill] sm:$0xff] }
 0xcaa   :  { %v2810_v22 = vadd.f32 %v2731_v36, %v2630_v6 }
 0xcab   :  { %v3799_v49 = vmul.f32 -1.442695, %v2803_v29 }
 0xcac   :  { %v3800_v24 = vmul.f32 -1.442695, %v2810_v22 }
 0xcad   :  { %6414 = vpow2.f32 %v3799_v49 }
 0xcae   :  { %6416 = vpow2.f32 %v3800_v24  ;;  %v9154_v24 = vld [vmem:[#allocation109_spill] sm:$0xff] }
 0xcb7   :  { %v6415_v31 = vpop.eup %6414 }
 0xcb8   :  { %v2807_v9 = vadd.f32 1.0, %v6415_v31  ;;  %v6417_v23 = vpop.eup %6416  ;;  %v9155_v31 = vld [vmem:[#allocation111_spill] sm:$0xff] }
 0xcb9   :  { %v2814_v47 = vadd.f32 1.0, %v6417_v23  ;;  %v9156_v23 = vld [vmem:[#allocation113_spill] sm:$0xff] }
 0xcba   :  { %6418 = vrcp.f32 %v2807_v9 }
 0xcbb   :  { %6420 = vrcp.f32 %v2814_v47  ;;  %v9158_v47 = vld [vmem:[#allocation117_spill] sm:$0xff] }
 0xcc4   :  { %v6419_v25 = vpop.eup %6418 }
 0xcc5   :  { %v2818_v48 = vmul.f32 %v6419_v25, %v2817_v28  ;;  %v6421_v6 = vpop.eup %6420  ;;  %v9152_v25 = vld [vmem:[#allocation105_spill] sm:$0xff]  ;;  %v9157_v28 = vld [vmem:[#allocation115_spill] sm:$0xff] }
 0xcc6   :  { %v2799_v10 = vpop.f32.mrb[34].mxu1  ;;  %v2821_v36 = vsub.f32 1.0, %v6421_v6  ;;  %v2823_v49 = vmul.f32 %v6421_v6, %v7870_v0  ;;  %v9163_v6 = vld [vmem:[#allocation13_spill] sm:$0xff] }
 0xcc7   :  { %v2800_v8 = vadd.f32 %v2799_v10, %v7185_v1  ;;  %v4174_v56 = vpop.f32.mrb[35].mxu1  ;;  %v9160_v10 = vld [vmem:[#allocation121_spill] sm:$0xff] }
 0xcc8   :  { %v9153_v56 = vld [vmem:[#allocation107_spill] sm:$0xff] }
 0xcc9   :  { %v2819_v32 = vadd.f32 %v2818_v48, %v2800_v8  ;;  %v9151_v48 = vld [vmem:[#allocation103_spill] sm:$0xff] }
 0xcca   :  { %v9161_v8 = vld [vmem:[#allocation123_spill] sm:$0xff] }
 0xccb   :  { %6422 = vtanh.f32 %v2819_v32  ;;  %v9162_v32 = vld [vmem:[#allocation124_spill] sm:$0xff] }
 0xcd5   :  { %v6423_v22 = vpop.eup %6422 }
 0xcd6   :  { %v2822_v29 = vmul.f32 %v6423_v22, %v2821_v36  ;;  %v9164_v36 = vld [vmem:[#allocation14_spill] sm:$0xff]  ;;  %v9165_v22 = vld [vmem:[#allocation15_spill] sm:$0xff] }
 0xcd8   :  { %v2824_v9 = vadd.f32 %v2823_v49, %v2822_v29  ;;  %v9166_v29 = vld [vmem:[#allocation16_spill] sm:$0xff]  ;;  %v9167_v49 = vld [vmem:[#allocation17_spill] sm:$0xff] }
 0xcda   :  { %v8032_v5 = vsel %vm2421_vm14, %v2824_v9, %v7870_v0  ;;  %v9148_v0 = vld [vmem:[#allocation97_spill] sm:$0xff]  ;;  %v9168_v9 = vld [vmem:[#allocation18_spill] sm:$0xff] }
 0xcdb   :  { %2896 = vmatprep.mubr.f32.mxu0 %v8032_v5  ;;  %2967 = vmatprep.mubr.f32.mxu1 %v8032_v5 }
 0xcdc   :  { %2897 = vmatmul.mubr.f32.vlgmr.msra.gmra.mrb[24].mxu0 %v7969_v45  ;;  %2968 = vmatmul.mubr.f32.vlgmr.msra.gmra.mrb[36].mxu1 %v7969_v45 }
 0xcdd   :  { %5899 = vmatpush1.bf16.msra.mxu0 %v8728_v41  ;;  %3038 = vmatprep.mubr.f32.mxu0 %v8032_v5 }
 0xcde   :  { %5901 = vmatprep.subr.bf16.mxu0 %v8729_v35  ;;  %5963 = vmatpush1.bf16.msra.mxu1 %v8730_v2 }
 0xcdf   :  { %5965 = vmatprep.subr.bf16.mxu1 %v8731_v13  ;;  %3136 = vmatprep.mubr.f32.mxu1 %v8655_v3 }
 0xce1   :  { %5903 = vmatpush1.bf16.msra.mxu0 %v8732_v19 }
 0xce2   :  { %5905 = vmatprep.subr.bf16.mxu0 %v8733_v60  ;;  %5967 = vmatpush1.bf16.msra.mxu1 %v8812_v43 }
 0xce3   :  { %5969 = vmatprep.subr.bf16.mxu1 %v8813_v61 }
 0xce5   :  { %5907 = vmatpush1.bf16.msra.mxu0 %v8814_v34 }
 0xce6   :  { %5909 = vmatprep.subr.bf16.mxu0 %v8815_v37  ;;  %5971 = vmatpush1.bf16.msra.mxu1 %v8816_v39 }
 0xce7   :  { %5973 = vmatprep.subr.bf16.mxu1 %v8817_v50 }
 0xce9   :  { %5911 = vmatpush1.bf16.msra.mxu0 %v8740_v42 }
 0xcea   :  { %5913 = vmatprep.subr.bf16.mxu0 %v8818_v15  ;;  %5975 = vmatpush1.bf16.msra.mxu1 %v8819_v40 }
 0xceb   :  { %5977 = vmatprep.subr.bf16.mxu1 %v8743_v44 }
 0xced   :  { %5915 = vmatpush1.bf16.msra.mxu0 %v8744_v27 }
 0xcee   :  { %5917 = vmatprep.subr.bf16.mxu0 %v8820_v21  ;;  %5979 = vmatpush1.bf16.msra.mxu1 %v8821_v14 }
 0xcef   :  { %5981 = vmatprep.subr.bf16.mxu1 %v8897_v4 }
 0xcf1   :  { %5919 = vmatpush1.bf16.msra.mxu0 %v8822_v38 }
 0xcf2   :  { %5921 = vmatprep.subr.bf16.mxu0 %v8823_v11  ;;  %5983 = vmatpush1.bf16.msra.mxu1 %v8824_v54 }
 0xcf3   :  { %5985 = vmatprep.subr.bf16.mxu1 %v8825_v17 }
 0xcf5   :  { %5923 = vmatpush1.bf16.msra.mxu0 %v8826_v55 }
 0xcf6   :  { %5925 = vmatprep.subr.bf16.mxu0 %v8827_v57  ;;  %5987 = vmatpush1.bf16.msra.mxu1 %v8828_v33 }
 0xcf7   :  { %5989 = vmatprep.subr.bf16.mxu1 %v8829_v63 }
 0xcf9   :  { %5927 = vmatpush1.bf16.msra.mxu0 %v8830_v30 }
 0xcfa   :  { %5929 = vmatprep.subr.bf16.mxu0 %v8898_v16  ;;  %5991 = vmatpush1.bf16.msra.mxu1 %v9063_v12 }
 0xcfb   :  { %5992 = vmatprep.subr.bf16.mxu1 %v8703_v46 }
 0xcfd   :  { %5931 = vmatpush1.bf16.msra.mxu0 %v9148_v0 }
 0xcfe   :  { %5933 = vmatprep.subr.bf16.mxu0 %v9149_v18 }
 0xd01   :  { %5935 = vmatpush1.bf16.msra.mxu0 %v9150_v51 }
 0xd02   :  { %5937 = vmatprep.subr.bf16.mxu0 %v9151_v48 }
 0xd05   :  { %5939 = vmatpush1.bf16.msra.mxu0 %v9152_v25 }
 0xd06   :  { %5941 = vmatprep.subr.bf16.mxu0 %v9153_v56  ;;  %v3048_v56 = vld [vmem:[#allocation3 + $0xa0] sm:$0xff] }
 0xd09   :  { %5943 = vmatpush1.bf16.msra.mxu0 %v9154_v24 }
 0xd0a   :  { %5945 = vmatprep.subr.bf16.mxu0 %v9155_v31 }
 0xd0d   :  { %5947 = vmatpush1.bf16.msra.mxu0 %v9156_v23 }
 0xd0e   :  { %5949 = vmatprep.subr.bf16.mxu0 %v9157_v28 }
 0xd11   :  { %5951 = vmatpush1.bf16.msra.mxu0 %v9158_v47  ;;  %v9174_v47 = vld [vmem:[#allocation31_spill] sm:$0xff] }
 0xd12   :  { %5953 = vmatprep.subr.bf16.mxu0 %v9159_v53  ;;  %v9169_v53 = vld [vmem:[#allocation19_spill] sm:$0xff] }
 0xd15   :  { %5955 = vmatpush1.bf16.msra.mxu0 %v9160_v10  ;;  %v9170_v10 = vld [vmem:[#allocation22_spill] sm:$0xff] }
 0xd16   :  { %5957 = vmatprep.subr.bf16.mxu0 %v9161_v8  ;;  %v9171_v8 = vld [vmem:[#allocation23_spill] sm:$0xff] }
 0xd19   :  { %5959 = vmatpush1.bf16.msra.mxu0 %v9162_v32  ;;  %v9172_v32 = vld [vmem:[#allocation26_spill] sm:$0xff] }
 0xd1a   :  { %6017 = vmatprep.subr.bf16.mxu0 %v9163_v6  ;;  %v9173_v6 = vld [vmem:[#allocation28_spill] sm:$0xff] }
 0xd1c   :  { %3039 = vmatmul.mubr.f32.vlgmr.msra.gmra.mrb[26].mxu0 %v7969_v45 }
 0xd1d   :  { %6019 = vmatpush1.bf16.msra.mxu0 %v9164_v36  ;;  %v9175_v36 = vld [vmem:[#allocation32_spill] sm:$0xff] }
 0xd1e   :  { %6021 = vmatprep.subr.bf16.mxu0 %v9165_v22  ;;  %v9176_v22 = vld [vmem:[#allocation35_spill] sm:$0xff] }
 0xd21   :  { %6023 = vmatpush1.bf16.msra.mxu0 %v9166_v29  ;;  %v9177_v29 = vld [vmem:[#allocation36_spill] sm:$0xff] }
 0xd22   :  { %6025 = vmatprep.subr.bf16.mxu0 %v9167_v49  ;;  %v9178_v49 = vld [vmem:[#allocation39_spill] sm:$0xff] }
 0xd25   :  { %6027 = vmatpush1.bf16.msra.mxu0 %v9168_v9  ;;  %v9179_v9 = vld [vmem:[#allocation40_spill] sm:$0xff] }
 0xd26   :  { %6029 = vmatprep.subr.bf16.mxu0 %v9169_v53  ;;  %v9180_v53 = vld [vmem:[#allocation43_spill] sm:$0xff] }
 0xd29   :  { %6031 = vmatpush1.bf16.msra.mxu0 %v9170_v10  ;;  %v9181_v10 = vld [vmem:[#allocation44_spill] sm:$0xff] }
 0xd2a   :  { %6033 = vmatprep.subr.bf16.mxu0 %v9171_v8  ;;  %v9182_v8 = vld [vmem:[#allocation47_spill] sm:$0xff] }
 0xd2d   :  { %6035 = vmatpush1.bf16.msra.mxu0 %v9172_v32  ;;  %v9183_v32 = vld [vmem:[#allocation48_spill] sm:$0xff] }
 0xd2e   :  { %6037 = vmatprep.subr.bf16.mxu0 %v9173_v6  ;;  %v9184_v6 = vld [vmem:[#allocation51_spill] sm:$0xff] }
 0xd31   :  { %6039 = vmatpush1.bf16.msra.mxu0 %v9174_v47  ;;  %v9185_v47 = vld [vmem:[#allocation52_spill] sm:$0xff] }
 0xd32   :  { %6041 = vmatprep.subr.bf16.mxu0 %v9175_v36  ;;  %v9186_v36 = vld [vmem:[#allocation55_spill] sm:$0xff] }
 0xd35   :  { %6043 = vmatpush1.bf16.msra.mxu0 %v9176_v22  ;;  %v9187_v22 = vld [vmem:[#allocation56_spill] sm:$0xff] }
 0xd36   :  { %6045 = vmatprep.subr.bf16.mxu0 %v9177_v29  ;;  %v9188_v29 = vld [vmem:[#allocation59_spill] sm:$0xff] }
 0xd39   :  { %6047 = vmatpush1.bf16.msra.mxu0 %v9178_v49  ;;  %v9189_v49 = vld [vmem:[#allocation60_spill] sm:$0xff] }
 0xd3a   :  { %6049 = vmatprep.subr.bf16.mxu0 %v9179_v9  ;;  %v9190_v9 = vld [vmem:[#allocation63_spill] sm:$0xff] }
 0xd3d   :  { %6051 = vmatpush1.bf16.msra.mxu0 %v9180_v53  ;;  %v9191_v53 = vld [vmem:[#allocation64_spill] sm:$0xff] }
 0xd3e   :  { %6053 = vmatprep.subr.bf16.mxu0 %v9181_v10  ;;  %v9192_v10 = vld [vmem:[#allocation67_spill] sm:$0xff] }
 0xd41   :  { %6055 = vmatpush1.bf16.msra.mxu0 %v9182_v8  ;;  %v9193_v8 = vld [vmem:[#allocation68_spill] sm:$0xff] }
 0xd42   :  { %6057 = vmatprep.subr.bf16.mxu0 %v9183_v32  ;;  %v9194_v32 = vld [vmem:[#allocation71_spill] sm:$0xff] }
 0xd45   :  { %6059 = vmatpush1.bf16.msra.mxu0 %v9184_v6  ;;  %v9195_v6 = vld [vmem:[#allocation73_spill] sm:$0xff] }
 0xd46   :  { %6061 = vmatprep.subr.bf16.mxu0 %v9185_v47  ;;  %v3046_v47 = vld [vmem:[#allocation3 + $0x90] sm:$0xff] }
 0xd49   :  { %6063 = vmatpush1.bf16.msra.mxu0 %v9186_v36 }
 0xd4a   :  { %6065 = vmatprep.subr.bf16.mxu0 %v9187_v22 }
 0xd4d   :  { %6067 = vmatpush1.bf16.msra.mxu0 %v9188_v29  ;;  %v3047_v29 = vld [vmem:[#allocation3 + $0x98] sm:$0xff] }
 0xd4e   :  { %6069 = vmatprep.subr.bf16.mxu0 %v9189_v49 }
 0xd51   :  { %6071 = vmatpush1.bf16.msra.mxu0 %v9190_v9 }
 0xd52   :  { %6073 = vmatprep.subr.bf16.mxu0 %v9191_v53 }
 0xd55   :  { %6075 = vmatpush1.bf16.msra.mxu0 %v9192_v10 }
 0xd56   :  { %6077 = vmatprep.subr.bf16.mxu0 %v9193_v8 }
 0xd59   :  { %6079 = vmatpush1.bf16.msra.mxu0 %v9194_v32 }
 0xd5a   :  { %6145 = vmatprep.subr.bf16.mxu0 %v9195_v6  ;;  %v8126_v6 = vld [vmem:[%s8318_s3] ss:$0 sm:$0xff] }
 0xdaf   :  { %v2898_v36 = vpop.f32.mrb[24].mxu0  ;;  %v2969_v28 = vpop.f32.mrb[36].mxu1 }
 0xdb0   :  { %v3049_v22 = vadd.f32 %v3046_v47, %v2898_v36  ;;  %v2900_v23 = vpop.f32.mrb[25].mxu0  ;;  %v8121_v31 = vpop.f32.mrb[37].mxu1  ;;  %v3063_v47 = vadd.f32 %v8126_v6, %v2969_v28 }
 0xdb1   :  { %v3056_v9 = vadd.f32 %v3047_v29, %v2900_v23 }
 0xdb2   :  { %v3801_v49 = vmul.f32 -1.442695, %v3049_v22 }
 0xdb3   :  { %v3802_v53 = vmul.f32 -1.442695, %v3056_v9  ;;  %v8129_v9 = vpop.permute.xlu0 %2829 }
 0xdb4   :  { %6424 = vpow2.f32 %v3801_v49  ;;  %vm2831_vm15 = vcmp.eq.s32.totalorder %v8129_v9, 1 }
 0xdb5   :  { %6426 = vpow2.f32 %v3802_v53 }
 0xdbe   :  { %v6425_v10 = vpop.eup %6424 }
 0xdbf   :  { %v3053_v24 = vadd.f32 1.0, %v6425_v10  ;;  %v6427_v8 = vpop.eup %6426 }
 0xdc0   :  { %v3060_v32 = vadd.f32 1.0, %v6427_v8  ;;  %v9197_v8 = vld [vmem:[#allocation129_spill] sm:$0xff] }
 0xdc1   :  { %6428 = vrcp.f32 %v3053_v24 }
 0xdc2   :  { %6430 = vrcp.f32 %v3060_v32  ;;  %v9198_v32 = vld [vmem:[#allocation20_spill] sm:$0xff] }
 0xdcb   :  { %v6429_v36 = vpop.eup %6428 }
 0xdcc   :  { %v3064_v25 = vmul.f32 %v6429_v36, %v3063_v47  ;;  %v6431_v22 = vpop.eup %6430  ;;  %v9199_v47 = vld [vmem:[#allocation21_spill] sm:$0xff]  ;;  %v9200_v36 = vld [vmem:[#allocation24_spill] sm:$0xff] }
 0xdcd   :  { %v3067_v29 = vsub.f32 1.0, %v6431_v22  ;;  %v3069_v53 = vmul.f32 %v6431_v22, %v7969_v45  ;;  %v9202_v22 = vld [vmem:[#allocation27_spill] sm:$0xff] }
 0xdce   :  { %v3065_v23 = vadd.f32 %v3064_v25, %v3048_v56  ;;  %v9196_v56 = vld [vmem:[#allocation128_spill] sm:$0xff] }
 0xdd0   :  { %6432 = vtanh.f32 %v3065_v23  ;;  %v9201_v23 = vld [vmem:[#allocation25_spill] sm:$0xff] }
 0xdda   :  { %v6433_v49 = vpop.eup %6432 }
 0xddb   :  { %v3068_v24 = vmul.f32 %v6433_v49, %v3067_v29  ;;  %v9203_v29 = vld [vmem:[#allocation29_spill] sm:$0xff]  ;;  %v9204_v49 = vld [vmem:[#allocation30_spill] sm:$0xff] }
 0xddd   :  { %v3070_v10 = vadd.f32 %v3069_v53, %v3068_v24  ;;  %v9205_v24 = vld [vmem:[#allocation33_spill] sm:$0xff]  ;;  %v9206_v53 = vld [vmem:[#allocation34_spill] sm:$0xff] }
 0xddf   :  { %v8136_v28 = vsel %vm2831_vm15, %v3070_v10, %v7969_v45  ;;  %v9207_v10 = vld [vmem:[#allocation37_spill] sm:$0xff] }
 0xde0   :  { %3137 = vmatmul.mubr.f32.vlgmr.msra.gmra.mrb[38].mxu1 %v8136_v28 }
 0xde1   :  { %5994 = vmatpush3.bf16.msra.mxu1 %v7095_v52  ;;  %4207 = vmatprep.mubr.msk.f32.mxu1 %vm6576_vm5, %v8655_v3 }
 0xde2   :  { %5995 = vmatprep.subr.bf16.mxu1 %v8703_v46 }
 0xde5   :  { %5997 = vmatpush3.bf16.msra.mxu1 %v7103_v62 }
 0xde6   :  { %5998 = vmatprep.subr.bf16.mxu1 %v8703_v46 }
 0xde9   :  { %6000 = vmatpush3.bf16.msra.mxu1 %v7109_v7 }
 0xdea   :  { %6001 = vmatprep.subr.bf16.mxu1 %v8703_v46 }
 0xded   :  { %6003 = vmatpush3.bf16.msra.mxu1 %v7113_v59 }
 0xdee   :  { %6004 = vmatprep.subr.bf16.mxu1 %v8703_v46 }
 0xdef   :  { %v3040_v45 = vpop.f32.mrb[26].mxu0 }
 0xdf0   :  { %v3042_v25 = vpop.f32.mrb[27].mxu0 }
 0xdf1   :  { %6006 = vmatpush3.bf16.msra.mxu1 %v7117_v58 }
 0xdf2   :  { %6007 = vmatprep.subr.bf16.mxu1 %v8703_v46 }
 0xdf5   :  { %6009 = vmatpush3.bf16.msra.mxu1 %v7121_v26 }
 0xdf6   :  { %6010 = vmatprep.subr.bf16.mxu1 %v8703_v46 }
 0xdf9   :  { %6012 = vmatpush3.bf16.msra.mxu1 %v9196_v56  ;;  %v9231_v56 = vld [vmem:[#allocation131_spill] sm:$0xff] }
 0xdfa   :  { %6013 = vmatprep.subr.bf16.mxu1 %v8703_v46 }
 0xdfd   :  { %6015 = vmatpush3.bf16.msra.mxu1 %v9197_v8  ;;  %v9209_v8 = vld [vmem:[#allocation41_spill] sm:$0xff] }
 0xdfe   :  { %6081 = vmatprep.subr.bf16.mxu1 %v9198_v32  ;;  %v9208_v32 = vld [vmem:[#allocation38_spill] sm:$0xff] }
 0xe00   :  { %4208 = vmatmul.mubr.f32.vlgmr.msra.gmra.mrb[40].mxu1 %v8136_v28 }
 0xe01   :  { %6083 = vmatpush1.bf16.msra.mxu1 %v9199_v47  ;;  %v9210_v47 = vld [vmem:[#allocation42_spill] sm:$0xff] }
 0xe02   :  { %6085 = vmatprep.subr.bf16.mxu1 %v9200_v36  ;;  %v9211_v36 = vld [vmem:[#allocation45_spill] sm:$0xff] }
 0xe05   :  { %6087 = vmatpush1.bf16.msra.mxu1 %v9201_v23  ;;  %v9212_v23 = vld [vmem:[#allocation46_spill] sm:$0xff] }
 0xe06   :  { %6089 = vmatprep.subr.bf16.mxu1 %v9202_v22  ;;  %v9213_v22 = vld [vmem:[#allocation49_spill] sm:$0xff] }
 0xe09   :  { %6091 = vmatpush1.bf16.msra.mxu1 %v9203_v29  ;;  %v9214_v29 = vld [vmem:[#allocation50_spill] sm:$0xff] }
 0xe0a   :  { %6093 = vmatprep.subr.bf16.mxu1 %v9204_v49  ;;  %v9215_v49 = vld [vmem:[#allocation53_spill] sm:$0xff] }
 0xe0d   :  { %6095 = vmatpush1.bf16.msra.mxu1 %v9205_v24  ;;  %v9216_v24 = vld [vmem:[#allocation54_spill] sm:$0xff] }
 0xe0e   :  { %6097 = vmatprep.subr.bf16.mxu1 %v9206_v53  ;;  %v9217_v53 = vld [vmem:[#allocation57_spill] sm:$0xff] }
 0xe11   :  { %6099 = vmatpush1.bf16.msra.mxu1 %v9207_v10  ;;  %v9218_v10 = vld [vmem:[#allocation58_spill] sm:$0xff] }
 0xe12   :  { %6101 = vmatprep.subr.bf16.mxu1 %v9208_v32  ;;  %v9219_v32 = vld [vmem:[#allocation61_spill] sm:$0xff] }
 0xe15   :  { %6103 = vmatpush1.bf16.msra.mxu1 %v9209_v8  ;;  %v9220_v8 = vld [vmem:[#allocation62_spill] sm:$0xff] }
 0xe16   :  { %6105 = vmatprep.subr.bf16.mxu1 %v9210_v47  ;;  %v9221_v47 = vld [vmem:[#allocation65_spill] sm:$0xff] }
 0xe19   :  { %6107 = vmatpush1.bf16.msra.mxu1 %v9211_v36  ;;  %v9222_v36 = vld [vmem:[#allocation66_spill] sm:$0xff] }
 0xe1a   :  { %6109 = vmatprep.subr.bf16.mxu1 %v9212_v23  ;;  %v9223_v23 = vld [vmem:[#allocation69_spill] sm:$0xff] }
 0xe1d   :  { %6111 = vmatpush1.bf16.msra.mxu1 %v9213_v22  ;;  %v9224_v22 = vld [vmem:[#allocation70_spill] sm:$0xff] }
 0xe1e   :  { %6113 = vmatprep.subr.bf16.mxu1 %v9214_v29  ;;  %v9225_v29 = vld [vmem:[#allocation72_spill] sm:$0xff] }
 0xe21   :  { %6115 = vmatpush1.bf16.msra.mxu1 %v9215_v49  ;;  %v9226_v49 = vld [vmem:[#allocation74_spill] sm:$0xff] }
 0xe22   :  { %6117 = vmatprep.subr.bf16.mxu1 %v9216_v24  ;;  %v9227_v24 = vld [vmem:[#allocation76_spill] sm:$0xff] }
 0xe25   :  { %6119 = vmatpush1.bf16.msra.mxu1 %v9217_v53  ;;  %v9228_v53 = vld [vmem:[#allocation78_spill] sm:$0xff] }
 0xe26   :  { %6121 = vmatprep.subr.bf16.mxu1 %v9218_v10  ;;  %v9229_v10 = vld [vmem:[#allocation80_spill] sm:$0xff] }
 0xe29   :  { %6123 = vmatpush1.bf16.msra.mxu1 %v9219_v32  ;;  %v9230_v32 = vld [vmem:[#allocation92_spill] sm:$0xff] }
 0xe2a   :  { %6125 = vmatprep.subr.bf16.mxu1 %v9220_v8 }
 0xe2d   :  { %6127 = vmatpush1.bf16.msra.mxu1 %v9221_v47 }
 0xe2e   :  { %6129 = vmatprep.subr.bf16.mxu1 %v9222_v36 }
 0xe31   :  { %6131 = vmatpush1.bf16.msra.mxu1 %v9223_v23 }
 0xe32   :  { %6133 = vmatprep.subr.bf16.mxu1 %v9224_v22 }
 0xe35   :  { %6135 = vmatpush1.bf16.msra.mxu1 %v9225_v29 }
 0xe36   :  { %6137 = vmatprep.subr.bf16.mxu1 %v9226_v49 }
 0xe39   :  { %6139 = vmatpush1.bf16.msra.mxu1 %v9227_v24 }
 0xe3a   :  { %6141 = vmatprep.subr.bf16.mxu1 %v9228_v53 }
 0xe3d   :  { %6143 = vmatpush1.bf16.msra.mxu1 %v9229_v10  ;;  %v8196_v10 = vld [vmem:[%s8321_s6] ss:$0 sm:$0xff] }
 0xe3e   :  { %6209 = vmatprep.subr.bf16.mxu1 %v9230_v32  ;;  %v3227_v32 = vadd.f32 %v8196_v10, %v3042_v25 }
 0xeb3   :  { %v3138_v8 = vpop.f32.mrb[38].mxu1 }
 0xeb4   :  { %v3139_v47 = vadd.f32 %v3138_v8, %v9061_v20  ;;  %v3140_v36 = vpop.f32.mrb[39].mxu1 }
 0xeb5   :  { %v3141_v23 = vadd.f32 %v3140_v36, %v9231_v56 }
 0xeb6   :  { %v3213_v22 = vadd.f32 %v3139_v47, %v8121_v31 }
 0xeb7   :  { %v3220_v26 = vadd.f32 %v3141_v23, %v3040_v45 }
 0xeb8   :  { %v3803_v29 = vmul.f32 -1.442695, %v3213_v22 }
 0xeb9   :  { %v3804_v49 = vmul.f32 -1.442695, %v3220_v26 }
 0xeba   :  { %6434 = vpow2.f32 %v3803_v29 }
 0xebb   :  { %6436 = vpow2.f32 %v3804_v49 }
 0xec4   :  { %v6435_v24 = vpop.eup %6434 }
 0xec5   :  { %v3217_v58 = vadd.f32 1.0, %v6435_v24  ;;  %v6437_v53 = vpop.eup %6436 }
 0xec6   :  { %v3224_v8 = vadd.f32 1.0, %v6437_v53  ;;  %v3647_v53 = vld [vmem:[#allocation8 + $0x8] sm:$0xff] }
 0xec7   :  { %6438 = vrcp.f32 %v3217_v58 }
 0xec8   :  { %6440 = vrcp.f32 %v3224_v8  ;;  %v3648_v8 = vld [vmem:[#allocation8 + $0x10] sm:$0xff] }
 0xed1   :  { %v6439_v36 = vpop.eup %6438 }
 0xed2   :  { %v3228_v56 = vmul.f32 %v6439_v36, %v3227_v32  ;;  %v6441_v23 = vpop.eup %6440  ;;  %v3649_v36 = vld [vmem:[#allocation8 + $0x18] sm:$0xff] }
 0xed3   :  { %v3209_v31 = vpop.f32.mrb[40].mxu1  ;;  %v3231_v58 = vsub.f32 1.0, %v6441_v23  ;;  %v3233_v49 = vmul.f32 %v6441_v23, %v8032_v5  ;;  %v3652_v23 = vld [vmem:[#allocation8 + $0x30] sm:$0xff] }
 0xed4   :  { %v3210_v45 = vadd.f32 %v3209_v31, %v7185_v1  ;;  %v4209_v26 = vpop.f32.mrb[41].mxu1  ;;  %v6268_v31 = vpack.c.bf16 %v3649_v36, %v3648_v8 }
 0xed5   :  { %v3651_v26 = vld [vmem:[#allocation8 + $0x28] sm:$0xff] }
 0xed6   :  { %v3229_v47 = vadd.f32 %v3228_v56, %v3210_v45  ;;  %v3650_v45 = vld [vmem:[#allocation8 + $0x20] sm:$0xff] }
 0xed8   :  { %6442 = vtanh.f32 %v3229_v47  ;;  %v6271_v47 = vpack.c.bf16 %v3651_v26, %v3650_v45 }
 0xee2   :  { %v6443_v22 = vpop.eup %6442 }
 0xee3   :  { %v3232_v29 = vmul.f32 %v6443_v22, %v3231_v58  ;;  %v3653_v58 = vld [vmem:[#allocation8 + $0x38] sm:$0xff] }
 0xee4   :  { %v6274_v22 = vpack.c.bf16 %v3653_v58, %v3652_v23 }
 0xee5   :  { %v3234_v24 = vadd.f32 %v3233_v49, %v3232_v29  ;;  %v3654_v29 = vld [vmem:[#allocation8 + $0x40] sm:$0xff]  ;;  %v3655_v49 = vld [vmem:[#allocation8 + $0x48] sm:$0xff] }
 0xee7   :  { %v8204_v25 = vsel %vm2831_vm15, %v3234_v24, %v8032_v5  ;;  %v6277_v24 = vpack.c.bf16 %v3655_v49, %v3654_v29 }
 0xee8   :  { %3306 = vmatprep.mubr.f32.mxu0 %v8204_v25  ;;  %3377 = vmatprep.mubr.f32.mxu1 %v8204_v25 }
 0xee9   :  { %3307 = vmatmul.mubr.f32.vlgmr.msra.gmra.mrb[28].mxu0 %v8136_v28  ;;  %3378 = vmatmul.mubr.f32.vlgmr.msra.gmra.mrb[42].mxu1 %v8136_v28 }
 0xeea   :  { %6147 = vmatpush1.bf16.msra.mxu0 %v8728_v41  ;;  %3448 = vmatprep.mubr.f32.mxu0 %v8204_v25  ;;  %v9232_v41 = vld [vmem:[#allocation105_spill] sm:$0xff] }
 0xeeb   :  { %6149 = vmatprep.subr.bf16.mxu0 %v8729_v35  ;;  %6211 = vmatpush1.bf16.msra.mxu1 %v8730_v2  ;;  %v9233_v35 = vld [vmem:[#allocation107_spill] sm:$0xff]  ;;  %v9234_v2 = vld [vmem:[#allocation109_spill] sm:$0xff] }
 0xeec   :  { %6213 = vmatprep.subr.bf16.mxu1 %v8731_v13  ;;  %3546 = vmatprep.mubr.f32.mxu1 %v8655_v3  ;;  %v9235_v13 = vld [vmem:[#allocation111_spill] sm:$0xff] }
 0xeee   :  { %6151 = vmatpush1.bf16.msra.mxu0 %v8732_v19  ;;  %v9236_v19 = vld [vmem:[#allocation113_spill] sm:$0xff] }
 0xeef   :  { %6153 = vmatprep.subr.bf16.mxu0 %v8733_v60  ;;  %6215 = vmatpush1.bf16.msra.mxu1 %v8812_v43  ;;  %v9237_v60 = vld [vmem:[#allocation115_spill] sm:$0xff] }
 0xef0   :  { %6217 = vmatprep.subr.bf16.mxu1 %v8813_v61  ;;  %v9241_v43 = vld [vmem:[#allocation123_spill] sm:$0xff]  ;;  %v9242_v61 = vld [vmem:[#allocation124_spill] sm:$0xff] }
 0xef2   :  { %6155 = vmatpush1.bf16.msra.mxu0 %v8814_v34  ;;  %v3456_v34 = vld [vmem:[#allocation3 + $0xa8] sm:$0xff] }
 0xef3   :  { %6157 = vmatprep.subr.bf16.mxu0 %v8815_v37  ;;  %6219 = vmatpush1.bf16.msra.mxu1 %v8816_v39 }
 0xef4   :  { %6221 = vmatprep.subr.bf16.mxu1 %v8817_v50 }
 0xef6   :  { %6159 = vmatpush1.bf16.msra.mxu0 %v8740_v42  ;;  %v9238_v42 = vld [vmem:[#allocation117_spill] sm:$0xff] }
 0xef7   :  { %6161 = vmatprep.subr.bf16.mxu0 %v8818_v15  ;;  %6223 = vmatpush1.bf16.msra.mxu1 %v8819_v40  ;;  %v3457_v40 = vld [vmem:[#allocation3 + $0xb0] sm:$0xff] }
 0xef8   :  { %6225 = vmatprep.subr.bf16.mxu1 %v8743_v44  ;;  %v9239_v44 = vld [vmem:[#allocation119_spill] sm:$0xff] }
 0xefa   :  { %6163 = vmatpush1.bf16.msra.mxu0 %v8744_v27  ;;  %v9240_v27 = vld [vmem:[#allocation121_spill] sm:$0xff] }
 0xefb   :  { %6165 = vmatprep.subr.bf16.mxu0 %v8820_v21  ;;  %6227 = vmatpush1.bf16.msra.mxu1 %v8821_v14 }
 0xefc   :  { %6229 = vmatprep.subr.bf16.mxu1 %v8897_v4 }
 0xefe   :  { %6167 = vmatpush1.bf16.msra.mxu0 %v8822_v38 }
 0xeff   :  { %6169 = vmatprep.subr.bf16.mxu0 %v8823_v11  ;;  %6231 = vmatpush1.bf16.msra.mxu1 %v8824_v54 }
 0xf00   :  { %6233 = vmatprep.subr.bf16.mxu1 %v8825_v17 }
 0xf02   :  { %6171 = vmatpush1.bf16.msra.mxu0 %v8826_v55 }
 0xf03   :  { %6173 = vmatprep.subr.bf16.mxu0 %v8827_v57  ;;  %6235 = vmatpush1.bf16.msra.mxu1 %v8828_v33 }
 0xf04   :  { %6237 = vmatprep.subr.bf16.mxu1 %v8829_v63 }
 0xf06   :  { %6175 = vmatpush1.bf16.msra.mxu0 %v8830_v30  ;;  %v3458_v30 = vld [vmem:[#allocation3 + $0xb8] sm:$0xff] }
 0xf07   :  { %6177 = vmatprep.subr.bf16.mxu0 %v8898_v16  ;;  %6239 = vmatpush1.bf16.msra.mxu1 %v9063_v12 }
 0xf08   :  { %6240 = vmatprep.subr.bf16.mxu1 %v8703_v46 }
 0xf0a   :  { %6179 = vmatpush1.bf16.msra.mxu0 %v9148_v0 }
 0xf0b   :  { %6181 = vmatprep.subr.bf16.mxu0 %v9149_v18  ;;  %v8266_v18 = vpop.permute.xlu1 %3239 }
 0xf0c   :  { %vm3241_vm0 = vcmp.eq.s32.totalorder %v8266_v18, 1 }
 0xf0e   :  { %6183 = vmatpush1.bf16.msra.mxu0 %v9150_v51 }
 0xf0f   :  { %6185 = vmatprep.subr.bf16.mxu0 %v9151_v48 }
 0xf12   :  { %6187 = vmatpush1.bf16.msra.mxu0 %v9232_v41  ;;  %v3656_v41 = vld [vmem:[#allocation8 + $0x50] sm:$0xff] }
 0xf13   :  { %6189 = vmatprep.subr.bf16.mxu0 %v9233_v35  ;;  %v3657_v35 = vld [vmem:[#allocation8 + $0x58] sm:$0xff] }
 0xf16   :  { %6191 = vmatpush1.bf16.msra.mxu0 %v9234_v2  ;;  %v6280_v2 = vpack.c.bf16 %v3657_v35, %v3656_v41 }
 0xf17   :  { %6193 = vmatprep.subr.bf16.mxu0 %v9235_v13  ;;  %v3658_v13 = vld [vmem:[#allocation8 + $0x60] sm:$0xff] }
 0xf1a   :  { %6195 = vmatpush1.bf16.msra.mxu0 %v9236_v19  ;;  %v3659_v19 = vld [vmem:[#allocation8 + $0x68] sm:$0xff] }
 0xf1b   :  { %6197 = vmatprep.subr.bf16.mxu0 %v9237_v60  ;;  %v6283_v60 = vpack.c.bf16 %v3659_v19, %v3658_v13 }
 0xf1e   :  { %6199 = vmatpush1.bf16.msra.mxu0 %v9238_v42  ;;  %v3660_v42 = vld [vmem:[#allocation8 + $0x70] sm:$0xff] }
 0xf1f   :  { %6201 = vmatprep.subr.bf16.mxu0 %v9239_v44  ;;  %v3661_v44 = vld [vmem:[#allocation8 + $0x78] sm:$0xff] }
 0xf22   :  { %6203 = vmatpush1.bf16.msra.mxu0 %v9240_v27  ;;  %v6286_v27 = vpack.c.bf16 %v3661_v44, %v3660_v42 }
 0xf23   :  { %6205 = vmatprep.subr.bf16.mxu0 %v9241_v43 }
 0xf26   :  { %6207 = vmatpush1.bf16.msra.mxu0 %v9242_v61 }
 0xf27   :  { %6264 = vmatprep.subr.bf16.mxu0 %v8703_v46 }
 0xf29   :  { %3449 = vmatmul.mubr.f32.vlgmr.msra.gmra.mrb[30].mxu0 %v8136_v28 }
 0xf2a   :  { %4277 = vmatprep.mubr.msk.f32.mxu0 %vm6576_vm5, %v8655_v3 }
 0xfbc   :  { %v3308_v37 = vpop.f32.mrb[28].mxu0  ;;  %v3379_v39 = vpop.f32.mrb[42].mxu1 }
 0xfbd   :  { %v3459_v50 = vadd.f32 %v3456_v34, %v3308_v37  ;;  %v3310_v15 = vpop.f32.mrb[29].mxu0  ;;  %v8263_v21 = vpop.f32.mrb[43].mxu1  ;;  %v3473_v33 = vadd.f32 %v8126_v6, %v3379_v39  ;;  %v9247_v37 = vld [vmem:[#allocation131_spill] sm:$0xff] }
 0xfbe   :  { %v3466_v38 = vadd.f32 %v3457_v40, %v3310_v15 }
 0xfbf   :  { %v3805_v14 = vmul.f32 -1.442695, %v3459_v50 }
 0xfc0   :  { %v3806_v11 = vmul.f32 -1.442695, %v3466_v38 }
 0xfc1   :  { %6444 = vpow2.f32 %v3805_v14 }
 0xfc2   :  { %6446 = vpow2.f32 %v3806_v11 }
 0xfcb   :  { %v6445_v54 = vpop.eup %6444 }
 0xfcc   :  { %v3463_v17 = vadd.f32 1.0, %v6445_v54  ;;  %v6447_v55 = vpop.eup %6446 }
 0xfcd   :  { %v3470_v57 = vadd.f32 1.0, %v6447_v55 }
 0xfce   :  { %6448 = vrcp.f32 %v3463_v17 }
 0xfcf   :  { %6450 = vrcp.f32 %v3470_v57 }
 0xfd8   :  { %v6449_v63 = vpop.eup %6448 }
 0xfd9   :  { %v3474_v4 = vmul.f32 %v6449_v63, %v3473_v33  ;;  %v6451_v12 = vpop.eup %6450 }
 0xfda   :  { %v3477_v5 = vsub.f32 1.0, %v6451_v12  ;;  %v3479_v48 = vmul.f32 %v6451_v12, %v8136_v28 }
 0xfdb   :  { %v3475_v16 = vadd.f32 %v3474_v4, %v3458_v30 }
 0xfdd   :  { %6452 = vtanh.f32 %v3475_v16 }
 0xfe7   :  { %v6453_v0 = vpop.eup %6452 }
 0xfe8   :  { %v3478_v51 = vmul.f32 %v6453_v0, %v3477_v5 }
 0xfea   :  { %v3480_v9 = vadd.f32 %v3479_v48, %v3478_v51  ;;  %v3809_v51 = vld [vmem:[%s8323_s8] ss:$0 sm:$0xff] }
 0xfec   :  { %v3481_v6 = vsel %vm3241_vm0, %v3480_v9, %v8136_v28 }
 0xfed   :  { %3547 = vmatmul.mubr.f32.vlgmr.msra.gmra.mrb[44].mxu1 %v3481_v6 }
 0xfee   :  { %6242 = vmatpush3.bf16.msra.mxu1 %v7095_v52  ;;  %4242 = vmatprep.mubr.msk.f32.mxu1 %vm6576_vm5, %v8655_v3  ;;  %v9243_v52 = vld [vmem:[#allocation126_spill] sm:$0xff]  ;;  %v9244_v3 = vld [vmem:[#allocation127_spill] sm:$0xff] }
 0xfef   :  { %6243 = vmatprep.subr.bf16.mxu1 %v8703_v46 }
 0xff2   :  { %6245 = vmatpush3.bf16.msra.mxu1 %v7103_v62  ;;  %v9245_v62 = vld [vmem:[#allocation128_spill] sm:$0xff] }
 0xff3   :  { %6246 = vmatprep.subr.bf16.mxu1 %v8703_v46 }
 0xff6   :  { %6248 = vmatpush3.bf16.msra.mxu1 %v7109_v7  ;;  %v9246_v7 = vld [vmem:[#allocation129_spill] sm:$0xff] }
 0xff7   :  { %6249 = vmatprep.subr.bf16.mxu1 %v8703_v46 }
 0xffa   :  { %6251 = vmatpush3.bf16.msra.mxu1 %v7113_v59  ;;  %v3646_v59 = vld [vmem:[#allocation8] sm:$0xff] }
 0xffb   :  { %6252 = vmatprep.subr.bf16.mxu1 %v8703_v46  ;;  %v6265_v32 = vpack.c.bf16 %v3647_v53, %v3646_v59 }
 0xffc   :  { %v3450_v28 = vpop.f32.mrb[30].mxu0 }
 0xffd   :  { %v3452_v56 = vpop.f32.mrb[31].mxu0  ;;  %6266 = vmatpush3.bf16.msra.mxu0 %v6265_v32 }
 0xffe   :  { %6254 = vmatpush3.bf16.msra.mxu1 %v9243_v52  ;;  %6267 = vmatprep.subr.bf16.mxu0 %v8703_v46  ;;  %v3811_v52 = vld [vmem:[#allocation2] ss:$0 sm:$0xff] }
 0xfff   :  { %6255 = vmatprep.subr.bf16.mxu1 %v8703_v46 }
0x1001   :  { %6269 = vmatpush3.bf16.msra.mxu0 %v6268_v31 }
0x1002   :  { %6257 = vmatpush3.bf16.msra.mxu1 %v9244_v3  ;;  %6270 = vmatprep.subr.bf16.mxu0 %v8703_v46 }
0x1003   :  { %6258 = vmatprep.subr.bf16.mxu1 %v8703_v46 }
0x1005   :  { %6272 = vmatpush3.bf16.msra.mxu0 %v6271_v47 }
0x1006   :  { %6260 = vmatpush3.bf16.msra.mxu1 %v9245_v62  ;;  %6273 = vmatprep.subr.bf16.mxu0 %v8703_v46 }
0x1007   :  { %6261 = vmatprep.subr.bf16.mxu1 %v8703_v46 }
0x1009   :  { %6275 = vmatpush3.bf16.msra.mxu0 %v6274_v22 }
0x100a   :  { %6263 = vmatpush3.bf16.msra.mxu1 %v9246_v7  ;;  %6276 = vmatprep.subr.bf16.mxu0 %v8703_v46 }
0x100d   :  { %4243 = vmatmul.mubr.f32.vlgmr.msra.gmra.mrb[46].mxu1 %v3481_v6  ;;  %6278 = vmatpush3.bf16.msra.mxu0 %v6277_v24  ;;  %v3810_v6 = vld [vmem:[%s8324_s9] ss:$0 sm:$0xff] }
0x100e   :  { %6279 = vmatprep.subr.bf16.mxu0 %v8703_v46 }
0x1011   :  { %6281 = vmatpush3.bf16.msra.mxu0 %v6280_v2 }
0x1012   :  { %6282 = vmatprep.subr.bf16.mxu0 %v8703_v46 }
0x1015   :  { %6284 = vmatpush3.bf16.msra.mxu0 %v6283_v60 }
0x1016   :  { %6285 = vmatprep.subr.bf16.mxu0 %v8703_v46  ;;  %v3637_v46 = vadd.f32 %v8196_v10, %v3452_v56 }
0x1019   :  { %6287 = vmatpush3.bf16.msra.mxu0 %v6286_v27 }
0x10c0   :  { %v3548_v43 = vpop.f32.mrb[44].mxu1 }
0x10c1   :  { %v3549_v61 = vadd.f32 %v3548_v43, %v9061_v20  ;;  %v3550_v34 = vpop.f32.mrb[45].mxu1 }
0x10c2   :  { %v3551_v39 = vadd.f32 %v3550_v34, %v9247_v37 }
0x10c3   :  { %v3623_v50 = vadd.f32 %v3549_v61, %v8263_v21 }
0x10c4   :  { %v3630_v15 = vadd.f32 %v3551_v39, %v3450_v28 }
0x10c5   :  { %v3807_v40 = vmul.f32 -1.442695, %v3623_v50 }
0x10c6   :  { %v3808_v14 = vmul.f32 -1.442695, %v3630_v15 }
0x10c7   :  { %6454 = vpow2.f32 %v3807_v40 }
0x10c8   :  { %6456 = vpow2.f32 %v3808_v14 }
0x10d1   :  { %v6455_v38 = vpop.eup %6454 }
0x10d2   :  { %v3627_v11 = vadd.f32 1.0, %v6455_v38  ;;  %v6457_v54 = vpop.eup %6456 }
0x10d3   :  { %v3634_v17 = vadd.f32 1.0, %v6457_v54 }
0x10d4   :  { %6458 = vrcp.f32 %v3627_v11 }
0x10d5   :  { %6460 = vrcp.f32 %v3634_v17 }
0x10de   :  { %v6459_v55 = vpop.eup %6458 }
0x10df   :  { %v3638_v57 = vmul.f32 %v6459_v55, %v3637_v46  ;;  %v6461_v30 = vpop.eup %6460 }
0x10e0   :  { %v3619_v20 = vpop.f32.mrb[46].mxu1  ;;  %v3641_v4 = vsub.f32 1.0, %v6461_v30  ;;  %v3643_v5 = vmul.f32 %v6461_v30, %v8204_v25 }
0x10e1   :  { %v3620_v33 = vadd.f32 %v3619_v20, %v7185_v1  ;;  %v4244_v63 = vpop.f32.mrb[47].mxu1 }
0x10e3   :  { %v3639_v21 = vadd.f32 %v3638_v57, %v3620_v33 }
0x10e5   :  { %6462 = vtanh.f32 %v3639_v21 }
0x10ef   :  { %v6463_v16 = vpop.eup %6462 }
0x10f0   :  { %v3642_v12 = vmul.f32 %v6463_v16, %v3641_v4 }
0x10f2   :  { %v3644_v0 = vadd.f32 %v3643_v5, %v3642_v12 }
0x10f4   :  { %v3645_v10 = vsel %vm3241_vm0, %v3644_v0, %v8204_v25 }
0x10f5   :  { %4278 = vmatmul.mubr.f32.vlgmr.msra.gmra.mrb[32].mxu0 %v3645_v10 }
0x11c8   :  { %v3735_v1 = vpop.f32.mrb[32].mxu0 }
0x11c9   :  { %v3736_v48 = vadd.f32 %v3809_v51, %v3735_v1  ;;  %v4279_v9 = vpop.f32.mrb[33].mxu0 }
0x11cb   :  { %v3739_v28 = vmax.f32 %v3736_v48, 0.0 }
0x11cd   :  { %v3747_v56 = vmul.f32 %v3810_v6, %v3739_v28 }
0x11cf   :  { %3748 = vadd.xlane.f32.xlu0 %v3747_v56 }
0x125c   :  { %v3749_v3 = vpop.xlane.xlu0 %3748 }
0x125d   :  { %v3757_v18 = vadd.f32 %v3811_v52, %v3749_v3 }
0x125f   :  { %3759 = vst.msk [vmem:[%s8326_s11] sm:$0xff] %vm3758_vm1, %v3757_v18 }
0x1260   :  { %3764 = vsyncpa [#allocation4], 1 }
0x1261   :  { %3765 = vsyncpa [#allocation6], 1 }
0x1262   :  { %3766 = vsyncpa [#allocation9], 1 }

</bundles_post_ra>
